<compile_context>
chip_gen: v7x
topology: tpu7x:2x2x1
jax: 0.10.0
libtpu: 0.0.40
codegen_flags: <defaults>
</compile_context>

<pallas_src>
import functools
import math

import jax
import jax.numpy as jnp
from jax.experimental import pallas as pl
from jax.experimental.pallas import tpu as pltpu

D_MODEL = 64
NHEAD = 8
HEAD_DIM = D_MODEL // NHEAD
LN_EPS = 1e-5
BN_EPS = 1e-5
LEAKY_SLOPE = 0.01
WINDOW_SIZE = 50
VMEM_LIMIT = 48 * 1024 * 1024          # stays under v7x's 64 MiB physical VMEM


# --------------------------------------------------------------------------
# Pallas kernels
# --------------------------------------------------------------------------
def embed_kernel(xw_ref, wA_ref, w2b_ref, w23a_ref, w23b_ref, w4a_ref, w4b_ref,
                 aux_ref, pe_ref, out_ref):
    """Fused multi-scale Window_Embedding + folded BatchNorms + cls token + positional encoding.

    xw:  (1, TB, T, 50) bf16 window rows for TB batch elements of one modality.
    wA:  (1, 50, 128)  = [proj1 | proj2.conv1 | proj3.conv1] (first conv of all branches).
    w2b: (1, 128, 32)  proj2.conv2, K zero-padded to h0's full 128 lanes (rows 16:96 nonzero).
    w23a:(1, 32, 48)   proj2.conv3 applied to h2 (cols 0:24 nonzero).
    w23b:(1, 128, 48)  proj3.conv2 applied to h0 (rows 96:128 / cols 24:48 nonzero).
    w4a: (1, 128, 64)  projection_4 rows fed by h0 (branch1, rows 0:16 nonzero, branch BN folded).
    w4b: (1, 48, 64)   projection_4 rows fed by h23 (branches 2/3, branch BN folded).
    aux: (1, 8, 128)   packed bias / BN-affine / (cls+pe[0]) rows.
    pe:  (T, 64)       positional encoding rows 1..T.
    out: (1, TB, T+1, 64) full per-epoch sequence (row 0 = cls token + pe[0]).
    """
    _, tb, T, W = xw_ref.shape
    D = out_ref.shape[-1]
    x = xw_ref[0].reshape(tb * T, W)                                  # (M, 50) bf16
    aux = aux_ref[0]                                                  # (8, 128) f32

    def mm(a, w_ref):
        return jnp.dot(a.astype(jnp.bfloat16), w_ref[0],
                       preferred_element_type=jnp.float32)

    def leaky(t):
        return jnp.where(t > 0, t, LEAKY_SLOPE * t)

    # First conv of all three branches in one lane-dense (M,50)x(50,128) matmul.
    h0 = leaky(mm(x, wA_ref) + aux[0:1, :])                           # (M, 128)
    # projection_2 middle conv: full-K padded weight, no mid-lane slice.
    h2 = leaky(mm(h0, w2b_ref) + aux[1:2, 0:32])                      # (M, 32)
    # Final convs of branches 2 and 3: sum of two padded partial matmuls, no lane concat.
    h23 = leaky(mm(h2, w23a_ref) + mm(h0, w23b_ref) + aux[2:3, 0:48]) # (M, 48)
    # projection_4 (branch BNs folded): sum of two padded partial matmuls.
    y = leaky(mm(h0, w4a_ref) + mm(h23, w4b_ref) + aux[3:4, 0:64])    # (M, 64)
    y = y * aux[4:5, 0:64] + aux[5:6, 0:64]                           # projection_4 BatchNorm (eval)

    body = y.reshape(tb, T, D) + pe_ref[...][None, :, :]              # + positional encoding rows 1..T
    cls_row = jnp.broadcast_to(aux[6:7, 0:D].reshape(1, 1, D), (tb, 1, D))
    out_ref[0, :, pl.ds(1, T), :] = body.astype(out_ref.dtype)
    out_ref[0, :, pl.ds(0, 1), :] = cls_row.astype(out_ref.dtype)     # cls token + pe[0]


def attn_kernel(src_ref, wqkv_ref, bqkv_ref, wo_ref, aux_ref, out_ref):
    """Fused MultiheadAttention(src,src,src) + residual + LayerNorm for a tile of batch elements.

    src:  (1, TB, S, D) rows of TB independent sequences (no cross-batch mask needed).
    wqkv: (1, D, 3D) head-major packed [h0:(q|k|v), h1:(q|k|v), ...] (single lane-dense matmul).
    bqkv: (1, 1, 3D) packed QKV bias.
    wo:   (1, D, D)  output projection (rows = concat-head features).
    aux:  (1, 8, D)  = [bo, ln_gamma, ln_beta, ...].
    """
    _, tb, S, D = src_ref.shape
    H, dh = NHEAD, HEAD_DIM
    R = tb * S
    x = src_ref[0].reshape(R, D)                                      # (R, D) f32
    aux = aux_ref[0]                                                  # (8, D) f32

    # Fused lane-dense QKV projection: one (R,64)@(64,192) MXU pass.
    qkv = jnp.dot(x.astype(jnp.bfloat16), wqkv_ref[0],
                  preferred_element_type=jnp.float32) + bqkv_ref[0]   # (R, 192)
    qkv = qkv.reshape(tb, S, 3 * D)

    # Per-head slabs stacked on the leading axis -> single-batch-dim einsums (batch = TB*H).
    qkv_h = jnp.concatenate(
        [qkv[:, :, h * 3 * dh:(h + 1) * 3 * dh] for h in range(H)], axis=0)  # (H*TB, S, 3*dh)
    scale = 1.0 / math.sqrt(dh)
    q = (qkv_h[:, :, 0:dh] * scale).astype(jnp.bfloat16)
    k = qkv_h[:, :, dh:2 * dh].astype(jnp.bfloat16)
    v = qkv_h[:, :, 2 * dh:3 * dh].astype(jnp.bfloat16)

    s = jnp.einsum("nqd,nkd->nqk", q, k,
                   preferred_element_type=jnp.float32)                # (H*TB, S, S)
    s = s - jnp.max(s, axis=-1, keepdims=True)
    e = jnp.exp(s)
    # approx reciprocal runs on the EUP (free slot); small relative error vs exact softmax.
    p = e * pl.reciprocal(jnp.sum(e, axis=-1, keepdims=True), approx=True)

    ctx = jnp.einsum("nqk,nkd->nqd", p.astype(jnp.bfloat16), v,
                     preferred_element_type=jnp.float32)              # (H*TB, S, dh)
    # Regroup heads onto lanes and run the fused (R,64)@(64,64) output projection.
    ctxc = jnp.concatenate([ctx[h * tb:(h + 1) * tb] for h in range(H)], axis=-1)  # (TB, S, D)
    proj = jnp.dot(ctxc.reshape(R, D).astype(jnp.bfloat16), wo_ref[0],
                   preferred_element_type=jnp.float32) + aux[0:1, :]  # (R, D)

    y = x + proj                                                      # residual (dropout = identity)
    mu = jnp.mean(y, axis=-1, keepdims=True)
    var = jnp.mean((y - mu) ** 2, axis=-1, keepdims=True)
    out = (y - mu) * jax.lax.rsqrt(var + LN_EPS) * aux[1:2, :] + aux[2:3, :]
    out_ref[0] = out.reshape(tb, S, D).astype(out_ref.dtype)


# --------------------------------------------------------------------------
# pallas_call wrappers
# --------------------------------------------------------------------------
def _divisor_tile(n, max_tile):
    """Largest divisor of n that is <= max_tile (>=1)."""
    t = int(max(1, min(n, max_tile)))
    while n % t:
        t -= 1
    return t


def window_embed(xw, ep, pe_body):
    """xw: (G, B, T, 50) bf16 -> (G, B, T+1, 64) full sequence (cls row + PE fused in)."""
    G, B, T, W = xw.shape
    S = T + 1
    tb = _divisor_tile(B, max(1, 512 // max(T, 1)))                   # ~512 window rows per step
    grid = (G, B // tb)
    warrs = [ep["wA"], ep["w2b"], ep["w23a"], ep["w23b"], ep["w4a"], ep["w4b"], ep["aux"]]
    w_specs = [pl.BlockSpec((1,) + tuple(a.shape[1:]), lambda g, b: (g, 0, 0)) for a in warrs]
    return pl.pallas_call(
        embed_kernel,
        out_shape=jax.ShapeDtypeStruct((G, B, S, D_MODEL), jnp.float32),
        grid=grid,
        in_specs=[pl.BlockSpec((1, tb, T, W), lambda g, b: (g, b, 0, 0))] + w_specs
                 + [pl.BlockSpec((T, D_MODEL), lambda g, b: (0, 0))],
        out_specs=pl.BlockSpec((1, tb, S, D_MODEL), lambda g, b: (g, b, 0, 0)),
        compiler_params=pltpu.CompilerParams(
            dimension_semantics=("parallel", "parallel"),
            vmem_limit_bytes=VMEM_LIMIT),
    )(xw, *warrs, pe_body)


def attention_block(src, ap, max_batch_tile):
    """src: (G, B, S, D) -> LayerNorm(src + MHA(src,src,src)), same shape. Linear in B."""
    G, B, S, D = src.shape
    tb = _divisor_tile(B, max_batch_tile)
    grid = (G, B // tb)
    warrs = [ap["wqkv"], ap["bqkv"], ap["wo"], ap["aux"]]
    w_specs = [pl.BlockSpec((1,) + tuple(a.shape[1:]), lambda g, b: (g, 0, 0)) for a in warrs]
    return pl.pallas_call(
        attn_kernel,
        out_shape=jax.ShapeDtypeStruct((G, B, S, D), jnp.float32),
        grid=grid,
        in_specs=[pl.BlockSpec((1, tb, S, D), lambda g, b: (g, b, 0, 0))] + w_specs,
        out_specs=pl.BlockSpec((1, tb, S, D), lambda g, b: (g, b, 0, 0)),
        compiler_params=pltpu.CompilerParams(
            dimension_semantics=("parallel", "parallel"),
            vmem_limit_bytes=VMEM_LIMIT),
    )(src, *warrs)


# --------------------------------------------------------------------------
# Forward pass (jitted)
# --------------------------------------------------------------------------
def epoch_cross_transformer(eeg, eog, prep):
    """eeg/eog: (B, 1, L) with L a multiple of WINDOW_SIZE."""
    B, _, L = eeg.shape
    T = L // WINDOW_SIZE
    S = T + 1

    def win(sig):
        return sig.reshape(B, T, WINDOW_SIZE)

    # bf16 at the kernel boundary: halves HBM->VMEM traffic, MXU path is bf16 anyway.
    xw = jnp.stack([win(eeg), win(eog)], axis=0).astype(jnp.bfloat16)  # (2, B, T, 50)

    # Fused window embedding + cls + PE for both modalities -> full (2, B, S, 64) sequence.
    seq = window_embed(xw, prep["embed"], prep["pe_body"])

    # Intra-modal attention (batch-tiled, both modalities; grid product even for v7x).
    intra = attention_block(seq, prep["intra"], max_batch_tile=max(1, 512 // S))
    self_eeg, self_eog = intra[0], intra[1]

    # Cross-modal attention over [cross_cls, eeg_cls, eog_cls]; force >=2 grid steps (v7x).
    cls_tok = jnp.broadcast_to(prep["cross_cls"].reshape(1, 1, D_MODEL), (B, 1, D_MODEL))
    cross_src = jnp.concatenate([cls_tok, self_eeg[:, 0:1, :], self_eog[:, 0:1, :]], axis=1)
    cross = attention_block(cross_src[None], prep["cross"],
                            max_batch_tile=max(1, B // 2) if B > 1 else 1)[0]   # (B, 3, D)

    cross_cls = cross[:, 0:1, :]
    cross_feat = cross[:, 1:3, :]
    ch_feat = jnp.stack([self_eeg[:, 1:, :], self_eog[:, 1:, :]], axis=1)       # (B, 2, T, D)
    return cross_cls, ch_feat, cross_feat


forward = jax.jit(epoch_cross_transformer)


# --------------------------------------------------------------------------
# Parameter preparation (hoisted: block-diag conv weights, folded eval-BN, PE, packing)
# --------------------------------------------------------------------------
def make_pe(length, d):
    pos = jnp.arange(length, dtype=jnp.float32)[:, None]
    div = jnp.exp(jnp.arange(0, d, 2, dtype=jnp.float32) * (-math.log(10000.0) / d))
    pe = jnp.zeros((length, d), jnp.float32)
    pe = pe.at[:, 0::2].set(jnp.sin(pos * div))
    pe = pe.at[:, 1::2].set(jnp.cos(pos * div))
    return pe


def _pad_row(v, width=128):
    v = v.reshape(-1).astype(jnp.float32)
    return jnp.pad(v, (0, width - v.shape[0]))


def _bn_affine(gamma, beta, rmean, rvar):
    # eval-mode BatchNorm1d folded to a per-channel affine using the real running statistics.
    scale = gamma.reshape(-1) / jnp.sqrt(rvar.reshape(-1) + BN_EPS)
    shift = beta.reshape(-1) - rmean.reshape(-1) * scale
    return scale, shift


def _conv_layer(w, b, p_in):
    """Conv1d(stride==kernel) on [pos, chan]-flattened columns as a block-diag matmul."""
    cout, cin, k = w.shape
    p_out = p_in // k
    blk = jnp.transpose(w, (2, 1, 0)).reshape(k * cin, cout)          # rows: (k, cin)-major
    eye = jnp.eye(p_out, dtype=jnp.float32)
    big = jnp.einsum("pq,rc->prqc", eye, blk).reshape(p_out * k * cin, p_out * cout)
    return big, jnp.tile(b.reshape(-1), p_out), p_out


def _prep_embed(wp, pe0):
    w1, b1, _ = _conv_layer(wp["p1_w"], wp["p1_b"], WINDOW_SIZE)      # (50, 16)
    w2a, b2a, p = _conv_layer(wp["p2_w1"], wp["p2_b1"], WINDOW_SIZE)  # (50, 80)
    w2b, b2b, p = _conv_layer(wp["p2_w2"], wp["p2_b2"], p)            # (80, 32)
    w2c, b2c, _ = _conv_layer(wp["p2_w3"], wp["p2_b3"], p)            # (32, 24)
    w3a, b3a, p3 = _conv_layer(wp["p3_w1"], wp["p3_b1"], WINDOW_SIZE) # (50, 32)
    w3b, b3b, _ = _conv_layer(wp["p3_w2"], wp["p3_b2"], p3)           # (32, 24)
    w4, b4, _ = _conv_layer(wp["p4_w"], wp["p4_b"], 1)                # (64, 64)

    wA = jnp.concatenate([w1, w2a, w3a], axis=1)                      # (50, 128)
    bA = jnp.concatenate([b1, b2a, b3a])                              # (128,)

    # Zero-pad K to the full width of the producing activation: no mid-lane slices in-kernel,
    # the MXU pads K to 128/256 anyway so the extra zero rows are free.
    w2b_pad = jnp.zeros((128, 32), jnp.float32).at[16:96, :].set(w2b)
    w23a = jnp.zeros((32, 48), jnp.float32).at[:, 0:24].set(w2c)
    w23b = jnp.zeros((128, 48), jnp.float32).at[96:128, 24:48].set(w3b)
    b23 = jnp.concatenate([b2c, b3b])                                 # (48,)

    # Fold the branch BatchNorms (after LeakyReLU) into projection_4, then split it by source.
    s1, t1 = _bn_affine(wp["bn1_g"], wp["bn1_b"], wp["bn1_rm"], wp["bn1_rv"])
    s2, t2 = _bn_affine(wp["bn2_g"], wp["bn2_b"], wp["bn2_rm"], wp["bn2_rv"])
    s3, t3 = _bn_affine(wp["bn3_g"], wp["bn3_b"], wp["bn3_rm"], wp["bn3_rv"])
    scale_br = jnp.concatenate([s1, s2, s3])                          # (64,)
    shift_br = jnp.concatenate([t1, t2, t3])
    w4f = scale_br[:, None] * w4
    b4f = shift_br @ w4 + b4
    w4a = jnp.zeros((128, 64), jnp.float32).at[0:16, :].set(w4f[0:16])
    w4b = w4f[16:64, :]                                               # (48, 64)

    s4, t4 = _bn_affine(wp["bn4_g"], wp["bn4_b"], wp["bn4_rm"], wp["bn4_rv"])
    cls_row = wp["cls"].reshape(-1).astype(jnp.float32) + pe0         # cls token + pe[0]

    aux = jnp.stack([
        _pad_row(bA), _pad_row(b2b), _pad_row(b23), _pad_row(b4f),
        _pad_row(s4), _pad_row(t4), _pad_row(cls_row),
        jnp.zeros((128,), jnp.float32)], axis=0)                      # (8, 128)

    return dict(wA=wA.astype(jnp.bfloat16), w2b=w2b_pad.astype(jnp.bfloat16),
                w23a=w23a.astype(jnp.bfloat16), w23b=w23b.astype(jnp.bfloat16),
                w4a=w4a.astype(jnp.bfloat16), w4b=w4b.astype(jnp.bfloat16),
                aux=aux)


def _prep_attn(ap):
    H, dh, D = NHEAD, HEAD_DIM, D_MODEL
    cols, bcols = [], []
    for h in range(H):
        sl = slice(h * dh, (h + 1) * dh)
        cols.append(jnp.concatenate([ap["wq"][:, sl], ap["wk"][:, sl], ap["wv"][:, sl]], axis=1))
        bcols.append(jnp.concatenate([ap["bq"].reshape(-1)[sl], ap["bk"].reshape(-1)[sl],
                                      ap["bv"].reshape(-1)[sl]]))
    wqkv = jnp.concatenate(cols, axis=1)                              # (D, 3D) head-major
    bqkv = jnp.concatenate(bcols).reshape(1, 3 * D)
    wo = ap["wo"]                                                     # (H*dh, D) concat-head rows
    aux = jnp.stack([ap["bo"].reshape(-1), ap["ln_g"].reshape(-1), ap["ln_b"].reshape(-1)]
                    + [jnp.zeros((D,), jnp.float32)] * 5, axis=0)     # (8, D)
    return dict(wqkv=wqkv.astype(jnp.bfloat16), bqkv=bqkv.astype(jnp.float32),
                wo=wo.astype(jnp.bfloat16), aux=aux.astype(jnp.float32))


def prepare_params(params, L):
    T = L // WINDOW_SIZE
    pe = make_pe(T + 1, D_MODEL)
    stack2 = lambda a, b: jnp.stack([a, b], axis=0)
    embed = jax.tree_util.tree_map(stack2, _prep_embed(params["eeg_we"], pe[0]),
                                   _prep_embed(params["eog_we"], pe[0]))
    intra = jax.tree_util.tree_map(stack2, _prep_attn(params["eeg_attn"]),
                                   _prep_attn(params["eog_attn"]))
    cross = jax.tree_util.tree_map(lambda a: a[None, ...], _prep_attn(params["cross_attn"]))
    return dict(embed=embed, intra=intra, cross=cross,
                cross_cls=params["cross_cls"].astype(jnp.float32),
                pe_body=pe[1:])


# --------------------------------------------------------------------------
# Deterministic parameter init (synthetic; no checkpoint load)
# --------------------------------------------------------------------------
def init_params(key):
    keys = iter(jax.random.split(key, 256))

    def nrm(shape, scale=0.05):
        return scale * jax.random.normal(next(keys), shape, dtype=jnp.float32)

    def we_params():
        e = D_MODEL
        c23 = (e - e // 4) // 2
        return dict(
            p1_w=nrm((e // 4, 1, WINDOW_SIZE)), p1_b=nrm((e // 4,)),
            bn1_g=1.0 + nrm((e // 4,)), bn1_b=nrm((e // 4,)),
            bn1_rm=jnp.zeros((e // 4,)), bn1_rv=jnp.ones((e // 4,)),
            p2_w1=nrm((e // 8, 1, 5)), p2_b1=nrm((e // 8,)),
            p2_w2=nrm((e // 4, e // 8, 5)), p2_b2=nrm((e // 4,)),
            p2_w3=nrm((c23, e // 4, 2)), p2_b3=nrm((c23,)),
            bn2_g=1.0 + nrm((c23,)), bn2_b=nrm((c23,)),
            bn2_rm=jnp.zeros((c23,)), bn2_rv=jnp.ones((c23,)),
            p3_w1=nrm((e // 4, 1, 25)), p3_b1=nrm((e // 4,)),
            p3_w2=nrm((c23, e // 4, 2)), p3_b2=nrm((c23,)),
            bn3_g=1.0 + nrm((c23,)), bn3_b=nrm((c23,)),
            bn3_rm=jnp.zeros((c23,)), bn3_rv=jnp.ones((c23,)),
            p4_w=nrm((e, e, 1)), p4_b=nrm((e,)),
            bn4_g=1.0 + nrm((e,)), bn4_b=nrm((e,)),
            bn4_rm=jnp.zeros((e,)), bn4_rv=jnp.ones((e,)),
            cls=nrm((1, 1, e), scale=1.0),
        )

    def attn_params():
        d = D_MODEL
        return dict(
            wq=nrm((d, d)), wk=nrm((d, d)), wv=nrm((d, d)),           # pre-transposed (x @ W)
            bq=nrm((1, d)), bk=nrm((1, d)), bv=nrm((1, d)),
            wo=nrm((d, d)), bo=nrm((1, d)),
            ln_g=1.0 + nrm((1, d)), ln_b=nrm((1, d)),
        )

    return dict(
        eeg_we=we_params(), eog_we=we_params(),
        eeg_attn=attn_params(), eog_attn=attn_params(),
        cross_attn=attn_params(),
        cross_cls=nrm((1, 1, D_MODEL), scale=1.0),
    )


if __name__ == "__main__":
    key = jax.random.PRNGKey(0)
    k_eeg, k_eog, k_par = jax.random.split(key, 3)
    B, L = 2, 200                                   # L must be a multiple of WINDOW_SIZE
    eeg = jax.random.normal(k_eeg, (B, 1, L), dtype=jnp.float32)
    eog = jax.random.normal(k_eog, (B, 1, L), dtype=jnp.float32)
    params = init_params(k_par)
    prep = prepare_params(params, L)                # hoisted once: block-diag weights, BN folds, PE

    cross_cls, ch_feat, cross_feat = forward(eeg, eog, prep)
    jax.block_until_ready((cross_cls, ch_feat, cross_feat))

    assert cross_cls.shape == (B, 1, D_MODEL)
    assert ch_feat.shape == (B, 2, L // WINDOW_SIZE, D_MODEL)
    assert cross_feat.shape == (B, 2, D_MODEL)
    assert all(bool(jnp.all(jnp.isfinite(t))) for t in (cross_cls, ch_feat, cross_feat))
    print("KERNEL_OK")
</pallas_src>

<mosaic_0001>
module attributes {stable_mosaic.version = 11 : i64} {
  func.func @attn_kernel(%arg0: i32, %arg1: i32, %arg2: memref<1x2x5x64xf32, #tpu.memory_space<vmem>>, %arg3: memref<1x64x192xbf16, #tpu.memory_space<vmem>>, %arg4: memref<1x1x192xf32, #tpu.memory_space<vmem>>, %arg5: memref<1x64x64xbf16, #tpu.memory_space<vmem>>, %arg6: memref<1x8x64xf32, #tpu.memory_space<vmem>>, %arg7: memref<1x2x5x64xf32, #tpu.memory_space<vmem>>) attributes {dimension_semantics = [#tpu.dimension_semantics<parallel>, #tpu.dimension_semantics<parallel>], iteration_bounds = array<i64: 2, 1>, scalar_prefetch = 0 : i64, scratch_operands = 0 : i64, tpu.core_type = #tpu.core_type<tc>, window_params = [{transform_indices = @transform_0, window_bounds = array<i64: 1, 2, 5, 64>}, {transform_indices = @transform_1, window_bounds = array<i64: 1, 64, 192>}, {transform_indices = @transform_2, window_bounds = array<i64: 1, 1, 192>}, {transform_indices = @transform_3, window_bounds = array<i64: 1, 64, 64>}, {transform_indices = @transform_4, window_bounds = array<i64: 1, 8, 64>}, {transform_indices = @transform_5, window_bounds = array<i64: 1, 2, 5, 64>}]} {
    %c0 = arith.constant 0 : index
    %c0_0 = arith.constant 0 : index
    %c0_1 = arith.constant 0 : index
    %c0_2 = arith.constant 0 : index
    %0 = vector.load %arg2[%c0, %c0_0, %c0_1, %c0_2] : memref<1x2x5x64xf32, #tpu.memory_space<vmem>>, vector<1x2x5x64xf32>
    %1 = vector.shape_cast %0 : vector<1x2x5x64xf32> to vector<2x5x64xf32>
    %2 = vector.shape_cast %1 : vector<2x5x64xf32> to vector<10x64xf32>
    %c0_3 = arith.constant 0 : index
    %c0_4 = arith.constant 0 : index
    %c0_5 = arith.constant 0 : index
    %3 = vector.load %arg6[%c0_3, %c0_4, %c0_5] : memref<1x8x64xf32, #tpu.memory_space<vmem>>, vector<1x8x64xf32>
    %4 = vector.shape_cast %3 : vector<1x8x64xf32> to vector<8x64xf32>
    %5 = arith.truncf %2 : vector<10x64xf32> to vector<10x64xbf16>
    %c0_6 = arith.constant 0 : index
    %c0_7 = arith.constant 0 : index
    %c0_8 = arith.constant 0 : index
    %6 = vector.load %arg3[%c0_6, %c0_7, %c0_8] : memref<1x64x192xbf16, #tpu.memory_space<vmem>>, vector<1x64x192xbf16>
    %7 = vector.shape_cast %6 : vector<1x64x192xbf16> to vector<64x192xbf16>
    %cst = arith.constant dense<0.000000e+00> : vector<10x192xf32>
    %8 = tpu.matmul %5, %7, %cst {dimension_numbers = #tpu.dot_dimension_numbers<[1], [0], [0], [1], [0, 0, 1, 1], [], []>} : vector<10x64xbf16>, vector<64x192xbf16>, vector<10x192xf32> -> vector<10x192xf32>
    %c0_9 = arith.constant 0 : index
    %c0_10 = arith.constant 0 : index
    %c0_11 = arith.constant 0 : index
    %9 = vector.load %arg4[%c0_9, %c0_10, %c0_11] : memref<1x1x192xf32, #tpu.memory_space<vmem>>, vector<1x1x192xf32>
    %10 = vector.shape_cast %9 : vector<1x1x192xf32> to vector<1x192xf32>
    %11 = vector.broadcast %10 : vector<1x192xf32> to vector<10x192xf32>
    %12 = arith.addf %8, %11 : vector<10x192xf32>
    %13 = vector.shape_cast %12 : vector<10x192xf32> to vector<2x5x192xf32>
    %14 = vector.extract_strided_slice %13 {offsets = [0, 0, 0], sizes = [2, 5, 24], strides = [1, 1, 1]} : vector<2x5x192xf32> to vector<2x5x24xf32>
    %15 = vector.extract_strided_slice %13 {offsets = [0, 0, 24], sizes = [2, 5, 24], strides = [1, 1, 1]} : vector<2x5x192xf32> to vector<2x5x24xf32>
    %16 = vector.extract_strided_slice %13 {offsets = [0, 0, 48], sizes = [2, 5, 24], strides = [1, 1, 1]} : vector<2x5x192xf32> to vector<2x5x24xf32>
    %17 = vector.extract_strided_slice %13 {offsets = [0, 0, 72], sizes = [2, 5, 24], strides = [1, 1, 1]} : vector<2x5x192xf32> to vector<2x5x24xf32>
    %18 = vector.extract_strided_slice %13 {offsets = [0, 0, 96], sizes = [2, 5, 24], strides = [1, 1, 1]} : vector<2x5x192xf32> to vector<2x5x24xf32>
    %19 = vector.extract_strided_slice %13 {offsets = [0, 0, 120], sizes = [2, 5, 24], strides = [1, 1, 1]} : vector<2x5x192xf32> to vector<2x5x24xf32>
    %20 = vector.extract_strided_slice %13 {offsets = [0, 0, 144], sizes = [2, 5, 24], strides = [1, 1, 1]} : vector<2x5x192xf32> to vector<2x5x24xf32>
    %21 = vector.extract_strided_slice %13 {offsets = [0, 0, 168], sizes = [2, 5, 24], strides = [1, 1, 1]} : vector<2x5x192xf32> to vector<2x5x24xf32>
    %22 = tpu.concatenate %14, %15, %16, %17, %18, %19, %20, %21 in 0 : vector<2x5x24xf32>, vector<2x5x24xf32>, vector<2x5x24xf32>, vector<2x5x24xf32>, vector<2x5x24xf32>, vector<2x5x24xf32>, vector<2x5x24xf32>, vector<2x5x24xf32> -> vector<16x5x24xf32>
    %23 = vector.extract_strided_slice %22 {offsets = [0, 0, 0], sizes = [16, 5, 8], strides = [1, 1, 1]} : vector<16x5x24xf32> to vector<16x5x8xf32>
    %cst_12 = arith.constant 0.353553385 : f32
    %24 = vector.broadcast %cst_12 : f32 to vector<16x5x8xf32>
    %25 = arith.mulf %23, %24 : vector<16x5x8xf32>
    %26 = arith.truncf %25 : vector<16x5x8xf32> to vector<16x5x8xbf16>
    %27 = vector.extract_strided_slice %22 {offsets = [0, 0, 8], sizes = [16, 5, 8], strides = [1, 1, 1]} : vector<16x5x24xf32> to vector<16x5x8xf32>
    %28 = arith.truncf %27 : vector<16x5x8xf32> to vector<16x5x8xbf16>
    %29 = vector.extract_strided_slice %22 {offsets = [0, 0, 16], sizes = [16, 5, 8], strides = [1, 1, 1]} : vector<16x5x24xf32> to vector<16x5x8xf32>
    %30 = arith.truncf %29 : vector<16x5x8xf32> to vector<16x5x8xbf16>
    "tpu.trace_start"() <{level = 10 : i32, message = "nqd,nkd->nqk"}> : () -> ()
    %cst_13 = arith.constant dense<0.000000e+00> : vector<16x5x5xf32>
    %31 = tpu.matmul %26, %28, %cst_13 {dimension_numbers = #tpu.dot_dimension_numbers<[2], [2], [1], [1], [0, 0, 0, 1, 1, 1], [0], [0]>} : vector<16x5x8xbf16>, vector<16x5x8xbf16>, vector<16x5x5xf32> -> vector<16x5x5xf32>
    "tpu.trace_stop"() : () -> ()
    %cst_14 = arith.constant dense<0xFF800000> : vector<16x5xf32>
    %32 = vector.multi_reduction <maximumf>, %31, %cst_14 [2] : vector<16x5x5xf32> to vector<16x5xf32>
    %33 = vector.shape_cast %32 : vector<16x5xf32> to vector<16x5x1xf32>
    %34 = vector.broadcast %33 : vector<16x5x1xf32> to vector<16x5x5xf32>
    %35 = arith.subf %31, %34 : vector<16x5x5xf32>
    %36 = math.exp %35 : vector<16x5x5xf32>
    %cst_15 = arith.constant dense<0.000000e+00> : vector<16x5xf32>
    %37 = vector.multi_reduction <add>, %36, %cst_15 [2] : vector<16x5x5xf32> to vector<16x5xf32>
    %38 = vector.shape_cast %37 : vector<16x5xf32> to vector<16x5x1xf32>
    %39 = tpu.reciprocal %38 {approx = true} : vector<16x5x1xf32> -> vector<16x5x1xf32>
    %40 = vector.broadcast %39 : vector<16x5x1xf32> to vector<16x5x5xf32>
    %41 = arith.mulf %36, %40 : vector<16x5x5xf32>
    %42 = arith.truncf %41 : vector<16x5x5xf32> to vector<16x5x5xbf16>
    "tpu.trace_start"() <{level = 10 : i32, message = "nqk,nkd->nqd"}> : () -> ()
    %cst_16 = arith.constant dense<0.000000e+00> : vector<16x5x8xf32>
    %43 = tpu.matmul %42, %30, %cst_16 {dimension_numbers = #tpu.dot_dimension_numbers<[2], [1], [1], [2], [0, 0, 0, 1, 1, 2], [0], [0]>} : vector<16x5x5xbf16>, vector<16x5x8xbf16>, vector<16x5x8xf32> -> vector<16x5x8xf32>
    "tpu.trace_stop"() : () -> ()
    %44 = vector.extract_strided_slice %43 {offsets = [0, 0, 0], sizes = [2, 5, 8], strides = [1, 1, 1]} : vector<16x5x8xf32> to vector<2x5x8xf32>
    %45 = vector.extract_strided_slice %43 {offsets = [2, 0, 0], sizes = [2, 5, 8], strides = [1, 1, 1]} : vector<16x5x8xf32> to vector<2x5x8xf32>
    %46 = vector.extract_strided_slice %43 {offsets = [4, 0, 0], sizes = [2, 5, 8], strides = [1, 1, 1]} : vector<16x5x8xf32> to vector<2x5x8xf32>
    %47 = vector.extract_strided_slice %43 {offsets = [6, 0, 0], sizes = [2, 5, 8], strides = [1, 1, 1]} : vector<16x5x8xf32> to vector<2x5x8xf32>
    %48 = vector.extract_strided_slice %43 {offsets = [8, 0, 0], sizes = [2, 5, 8], strides = [1, 1, 1]} : vector<16x5x8xf32> to vector<2x5x8xf32>
    %49 = vector.extract_strided_slice %43 {offsets = [10, 0, 0], sizes = [2, 5, 8], strides = [1, 1, 1]} : vector<16x5x8xf32> to vector<2x5x8xf32>
    %50 = vector.extract_strided_slice %43 {offsets = [12, 0, 0], sizes = [2, 5, 8], strides = [1, 1, 1]} : vector<16x5x8xf32> to vector<2x5x8xf32>
    %51 = vector.extract_strided_slice %43 {offsets = [14, 0, 0], sizes = [2, 5, 8], strides = [1, 1, 1]} : vector<16x5x8xf32> to vector<2x5x8xf32>
    %52 = tpu.concatenate %44, %45, %46, %47, %48, %49, %50, %51 in 2 : vector<2x5x8xf32>, vector<2x5x8xf32>, vector<2x5x8xf32>, vector<2x5x8xf32>, vector<2x5x8xf32>, vector<2x5x8xf32>, vector<2x5x8xf32>, vector<2x5x8xf32> -> vector<2x5x64xf32>
    %53 = vector.shape_cast %52 : vector<2x5x64xf32> to vector<10x64xf32>
    %54 = arith.truncf %53 : vector<10x64xf32> to vector<10x64xbf16>
    %c0_17 = arith.constant 0 : index
    %c0_18 = arith.constant 0 : index
    %c0_19 = arith.constant 0 : index
    %55 = vector.load %arg5[%c0_17, %c0_18, %c0_19] : memref<1x64x64xbf16, #tpu.memory_space<vmem>>, vector<1x64x64xbf16>
    %56 = vector.shape_cast %55 : vector<1x64x64xbf16> to vector<64x64xbf16>
    %cst_20 = arith.constant dense<0.000000e+00> : vector<10x64xf32>
    %57 = tpu.matmul %54, %56, %cst_20 {dimension_numbers = #tpu.dot_dimension_numbers<[1], [0], [0], [1], [0, 0, 1, 1], [], []>} : vector<10x64xbf16>, vector<64x64xbf16>, vector<10x64xf32> -> vector<10x64xf32>
    %58 = vector.extract_strided_slice %4 {offsets = [0, 0], sizes = [1, 64], strides = [1, 1]} : vector<8x64xf32> to vector<1x64xf32>
    %59 = vector.broadcast %58 : vector<1x64xf32> to vector<10x64xf32>
    %60 = arith.addf %57, %59 : vector<10x64xf32>
    %61 = arith.addf %2, %60 : vector<10x64xf32>
    %cst_21 = arith.constant dense<0.000000e+00> : vector<10xf32>
    %62 = vector.multi_reduction <add>, %61, %cst_21 [1] : vector<10x64xf32> to vector<10xf32>
    %63 = vector.shape_cast %62 : vector<10xf32> to vector<10x1xf32>
    %cst_22 = arith.constant 6.400000e+01 : f32
    %64 = vector.broadcast %cst_22 : f32 to vector<10x1xf32>
    %65 = arith.divf %63, %64 : vector<10x1xf32>
    %66 = vector.broadcast %65 : vector<10x1xf32> to vector<10x64xf32>
    %67 = arith.subf %61, %66 : vector<10x64xf32>
    %68 = arith.mulf %67, %67 : vector<10x64xf32>
    %cst_23 = arith.constant dense<0.000000e+00> : vector<10xf32>
    %69 = vector.multi_reduction <add>, %68, %cst_23 [1] : vector<10x64xf32> to vector<10xf32>
    %70 = vector.shape_cast %69 : vector<10xf32> to vector<10x1xf32>
    %cst_24 = arith.constant 6.400000e+01 : f32
    %71 = vector.broadcast %cst_24 : f32 to vector<10x1xf32>
    %72 = arith.divf %70, %71 : vector<10x1xf32>
    %73 = vector.broadcast %65 : vector<10x1xf32> to vector<10x64xf32>
    %74 = arith.subf %61, %73 : vector<10x64xf32>
    %cst_25 = arith.constant 9.99999974E-6 : f32
    %75 = vector.broadcast %cst_25 : f32 to vector<10x1xf32>
    %76 = arith.addf %72, %75 : vector<10x1xf32>
    %77 = math.rsqrt %76 : vector<10x1xf32>
    %78 = vector.broadcast %77 : vector<10x1xf32> to vector<10x64xf32>
    %79 = arith.mulf %74, %78 : vector<10x64xf32>
    %80 = vector.extract_strided_slice %4 {offsets = [1, 0], sizes = [1, 64], strides = [1, 1]} : vector<8x64xf32> to vector<1x64xf32>
    %81 = vector.broadcast %80 : vector<1x64xf32> to vector<10x64xf32>
    %82 = arith.mulf %79, %81 : vector<10x64xf32>
    %83 = vector.extract_strided_slice %4 {offsets = [2, 0], sizes = [1, 64], strides = [1, 1]} : vector<8x64xf32> to vector<1x64xf32>
    %84 = vector.broadcast %83 : vector<1x64xf32> to vector<10x64xf32>
    %85 = arith.addf %82, %84 : vector<10x64xf32>
    %86 = vector.shape_cast %85 : vector<10x64xf32> to vector<2x5x64xf32>
    %c0_26 = arith.constant 0 : index
    %c0_27 = arith.constant 0 : index
    %c0_28 = arith.constant 0 : index
    %c0_29 = arith.constant 0 : index
    %87 = vector.load %arg7[%c0_26, %c0_27, %c0_28, %c0_29] : memref<1x2x5x64xf32, #tpu.memory_space<vmem>>, vector<1x2x5x64xf32>
    %88 = vector.shape_cast %87 : vector<1x2x5x64xf32> to vector<2x5x64xf32>
    %89 = vector.shape_cast %86 : vector<2x5x64xf32> to vector<1x2x5x64xf32>
    tpu.vector_store %arg7[%c0_26, %c0_27, %c0_28, %c0_29], %89 {strides = array<i32>} : memref<1x2x5x64xf32, #tpu.memory_space<vmem>>, vector<1x2x5x64xf32>,
    return
  }
  func.func @transform_0(%arg0: i32, %arg1: i32) -> (i32, i32, i32, i32) {
    %c0_i32 = arith.constant 0 : i32
    %c0_i32_0 = arith.constant 0 : i32
    %c0_i32_1 = arith.constant 0 : i32
    return %arg0, %arg1, %c0_i32, %c0_i32_0 : i32, i32, i32, i32
  }
  func.func @transform_1(%arg0: i32, %arg1: i32) -> (i32, i32, i32) {
    %c0_i32 = arith.constant 0 : i32
    %c0_i32_0 = arith.constant 0 : i32
    %c0_i32_1 = arith.constant 0 : i32
    return %arg0, %c0_i32, %c0_i32_0 : i32, i32, i32
  }
  func.func @transform_2(%arg0: i32, %arg1: i32) -> (i32, i32, i32) {
    %c0_i32 = arith.constant 0 : i32
    %c0_i32_0 = arith.constant 0 : i32
    %c0_i32_1 = arith.constant 0 : i32
    return %arg0, %c0_i32, %c0_i32_0 : i32, i32, i32
  }
  func.func @transform_3(%arg0: i32, %arg1: i32) -> (i32, i32, i32) {
    %c0_i32 = arith.constant 0 : i32
    %c0_i32_0 = arith.constant 0 : i32
    %c0_i32_1 = arith.constant 0 : i32
    return %arg0, %c0_i32, %c0_i32_0 : i32, i32, i32
  }
  func.func @transform_4(%arg0: i32, %arg1: i32) -> (i32, i32, i32) {
    %c0_i32 = arith.constant 0 : i32
    %c0_i32_0 = arith.constant 0 : i32
    %c0_i32_1 = arith.constant 0 : i32
    return %arg0, %c0_i32, %c0_i32_0 : i32, i32, i32
  }
  func.func @transform_5(%arg0: i32, %arg1: i32) -> (i32, i32, i32, i32) {
    %c0_i32 = arith.constant 0 : i32
    %c0_i32_0 = arith.constant 0 : i32
    %c0_i32_1 = arith.constant 0 : i32
    return %arg0, %arg1, %c0_i32, %c0_i32_0 : i32, i32, i32, i32
  }
}

module attributes {stable_mosaic.version = 11 : i64} {
  func.func @embed_kernel(%arg0: i32, %arg1: i32, %arg2: memref<1x2x4x50xbf16, #tpu.memory_space<vmem>>, %arg3: memref<1x50x128xbf16, #tpu.memory_space<vmem>>, %arg4: memref<1x128x32xbf16, #tpu.memory_space<vmem>>, %arg5: memref<1x32x48xbf16, #tpu.memory_space<vmem>>, %arg6: memref<1x128x48xbf16, #tpu.memory_space<vmem>>, %arg7: memref<1x128x64xbf16, #tpu.memory_space<vmem>>, %arg8: memref<1x48x64xbf16, #tpu.memory_space<vmem>>, %arg9: memref<1x8x128xf32, #tpu.memory_space<vmem>>, %arg10: memref<4x64xf32, #tpu.memory_space<vmem>>, %arg11: memref<1x2x5x64xf32, #tpu.memory_space<vmem>>) attributes {dimension_semantics = [#tpu.dimension_semantics<parallel>, #tpu.dimension_semantics<parallel>], iteration_bounds = array<i64: 2, 1>, scalar_prefetch = 0 : i64, scratch_operands = 0 : i64, tpu.core_type = #tpu.core_type<tc>, window_params = [{transform_indices = @transform_0, window_bounds = array<i64: 1, 2, 4, 50>}, {transform_indices = @transform_1, window_bounds = array<i64: 1, 50, 128>}, {transform_indices = @transform_2, window_bounds = array<i64: 1, 128, 32>}, {transform_indices = @transform_3, window_bounds = array<i64: 1, 32, 48>}, {transform_indices = @transform_4, window_bounds = array<i64: 1, 128, 48>}, {transform_indices = @transform_5, window_bounds = array<i64: 1, 128, 64>}, {transform_indices = @transform_6, window_bounds = array<i64: 1, 48, 64>}, {transform_indices = @transform_7, window_bounds = array<i64: 1, 8, 128>}, {pipeline_mode = #tpu.pipeline_mode<synchronous>, transform_indices = @transform_8, window_bounds = array<i64: 4, 64>}, {transform_indices = @transform_9, window_bounds = array<i64: 1, 2, 5, 64>}]} {
    %c0 = arith.constant 0 : index
    %c0_0 = arith.constant 0 : index
    %c0_1 = arith.constant 0 : index
    %c0_2 = arith.constant 0 : index
    %0 = vector.load %arg2[%c0, %c0_0, %c0_1, %c0_2] : memref<1x2x4x50xbf16, #tpu.memory_space<vmem>>, vector<1x2x4x50xbf16>
    %1 = vector.shape_cast %0 : vector<1x2x4x50xbf16> to vector<2x4x50xbf16>
    %2 = vector.shape_cast %1 : vector<2x4x50xbf16> to vector<8x50xbf16>
    %c0_3 = arith.constant 0 : index
    %c0_4 = arith.constant 0 : index
    %c0_5 = arith.constant 0 : index
    %3 = vector.load %arg9[%c0_3, %c0_4, %c0_5] : memref<1x8x128xf32, #tpu.memory_space<vmem>>, vector<1x8x128xf32>
    %4 = vector.shape_cast %3 : vector<1x8x128xf32> to vector<8x128xf32>
    %c0_6 = arith.constant 0 : index
    %c0_7 = arith.constant 0 : index
    %c0_8 = arith.constant 0 : index
    %5 = vector.load %arg3[%c0_6, %c0_7, %c0_8] : memref<1x50x128xbf16, #tpu.memory_space<vmem>>, vector<1x50x128xbf16>
    %6 = vector.shape_cast %5 : vector<1x50x128xbf16> to vector<50x128xbf16>
    %cst = arith.constant dense<0.000000e+00> : vector<8x128xf32>
    %7 = tpu.matmul %2, %6, %cst {dimension_numbers = #tpu.dot_dimension_numbers<[1], [0], [0], [1], [0, 0, 1, 1], [], []>} : vector<8x50xbf16>, vector<50x128xbf16>, vector<8x128xf32> -> vector<8x128xf32>
    %8 = vector.extract_strided_slice %4 {offsets = [0, 0], sizes = [1, 128], strides = [1, 1]} : vector<8x128xf32> to vector<1x128xf32>
    %9 = vector.broadcast %8 : vector<1x128xf32> to vector<8x128xf32>
    %10 = arith.addf %7, %9 : vector<8x128xf32>
    %cst_9 = arith.constant 0.000000e+00 : f32
    %11 = vector.broadcast %cst_9 : f32 to vector<8x128xf32>
    %12 = arith.cmpf ogt, %10, %11 : vector<8x128xf32>
    %cst_10 = arith.constant 0.00999999977 : f32
    %13 = vector.broadcast %cst_10 : f32 to vector<8x128xf32>
    %14 = arith.mulf %13, %10 : vector<8x128xf32>
    %15 = arith.select %12, %10, %14 : vector<8x128xi1>, vector<8x128xf32>
    %16 = arith.truncf %15 : vector<8x128xf32> to vector<8x128xbf16>
    %c0_11 = arith.constant 0 : index
    %c0_12 = arith.constant 0 : index
    %c0_13 = arith.constant 0 : index
    %17 = vector.load %arg4[%c0_11, %c0_12, %c0_13] : memref<1x128x32xbf16, #tpu.memory_space<vmem>>, vector<1x128x32xbf16>
    %18 = vector.shape_cast %17 : vector<1x128x32xbf16> to vector<128x32xbf16>
    %cst_14 = arith.constant dense<0.000000e+00> : vector<8x32xf32>
    %19 = tpu.matmul %16, %18, %cst_14 {dimension_numbers = #tpu.dot_dimension_numbers<[1], [0], [0], [1], [0, 0, 1, 1], [], []>} : vector<8x128xbf16>, vector<128x32xbf16>, vector<8x32xf32> -> vector<8x32xf32>
    %20 = vector.extract_strided_slice %4 {offsets = [1, 0], sizes = [1, 32], strides = [1, 1]} : vector<8x128xf32> to vector<1x32xf32>
    %21 = vector.broadcast %20 : vector<1x32xf32> to vector<8x32xf32>
    %22 = arith.addf %19, %21 : vector<8x32xf32>
    %cst_15 = arith.constant 0.000000e+00 : f32
    %23 = vector.broadcast %cst_15 : f32 to vector<8x32xf32>
    %24 = arith.cmpf ogt, %22, %23 : vector<8x32xf32>
    %cst_16 = arith.constant 0.00999999977 : f32
    %25 = vector.broadcast %cst_16 : f32 to vector<8x32xf32>
    %26 = arith.mulf %25, %22 : vector<8x32xf32>
    %27 = arith.select %24, %22, %26 : vector<8x32xi1>, vector<8x32xf32>
    %28 = arith.truncf %27 : vector<8x32xf32> to vector<8x32xbf16>
    %c0_17 = arith.constant 0 : index
    %c0_18 = arith.constant 0 : index
    %c0_19 = arith.constant 0 : index
    %29 = vector.load %arg5[%c0_17, %c0_18, %c0_19] : memref<1x32x48xbf16, #tpu.memory_space<vmem>>, vector<1x32x48xbf16>
    %30 = vector.shape_cast %29 : vector<1x32x48xbf16> to vector<32x48xbf16>
    %cst_20 = arith.constant dense<0.000000e+00> : vector<8x48xf32>
    %31 = tpu.matmul %28, %30, %cst_20 {dimension_numbers = #tpu.dot_dimension_numbers<[1], [0], [0], [1], [0, 0, 1, 1], [], []>} : vector<8x32xbf16>, vector<32x48xbf16>, vector<8x48xf32> -> vector<8x48xf32>
    %32 = arith.truncf %15 : vector<8x128xf32> to vector<8x128xbf16>
    %c0_21 = arith.constant 0 : index
    %c0_22 = arith.constant 0 : index
    %c0_23 = arith.constant 0 : index
    %33 = vector.load %arg6[%c0_21, %c0_22, %c0_23] : memref<1x128x48xbf16, #tpu.memory_space<vmem>>, vector<1x128x48xbf16>
    %34 = vector.shape_cast %33 : vector<1x128x48xbf16> to vector<128x48xbf16>
    %cst_24 = arith.constant dense<0.000000e+00> : vector<8x48xf32>
    %35 = tpu.matmul %32, %34, %cst_24 {dimension_numbers = #tpu.dot_dimension_numbers<[1], [0], [0], [1], [0, 0, 1, 1], [], []>} : vector<8x128xbf16>, vector<128x48xbf16>, vector<8x48xf32> -> vector<8x48xf32>
    %36 = arith.addf %31, %35 : vector<8x48xf32>
    %37 = vector.extract_strided_slice %4 {offsets = [2, 0], sizes = [1, 48], strides = [1, 1]} : vector<8x128xf32> to vector<1x48xf32>
    %38 = vector.broadcast %37 : vector<1x48xf32> to vector<8x48xf32>
    %39 = arith.addf %36, %38 : vector<8x48xf32>
    %cst_25 = arith.constant 0.000000e+00 : f32
    %40 = vector.broadcast %cst_25 : f32 to vector<8x48xf32>
    %41 = arith.cmpf ogt, %39, %40 : vector<8x48xf32>
    %cst_26 = arith.constant 0.00999999977 : f32
    %42 = vector.broadcast %cst_26 : f32 to vector<8x48xf32>
    %43 = arith.mulf %42, %39 : vector<8x48xf32>
    %44 = arith.select %41, %39, %43 : vector<8x48xi1>, vector<8x48xf32>
    %45 = arith.truncf %15 : vector<8x128xf32> to vector<8x128xbf16>
    %c0_27 = arith.constant 0 : index
    %c0_28 = arith.constant 0 : index
    %c0_29 = arith.constant 0 : index
    %46 = vector.load %arg7[%c0_27, %c0_28, %c0_29] : memref<1x128x64xbf16, #tpu.memory_space<vmem>>, vector<1x128x64xbf16>
    %47 = vector.shape_cast %46 : vector<1x128x64xbf16> to vector<128x64xbf16>
    %cst_30 = arith.constant dense<0.000000e+00> : vector<8x64xf32>
    %48 = tpu.matmul %45, %47, %cst_30 {dimension_numbers = #tpu.dot_dimension_numbers<[1], [0], [0], [1], [0, 0, 1, 1], [], []>} : vector<8x128xbf16>, vector<128x64xbf16>, vector<8x64xf32> -> vector<8x64xf32>
    %49 = arith.truncf %44 : vector<8x48xf32> to vector<8x48xbf16>
    %c0_31 = arith.constant 0 : index
    %c0_32 = arith.constant 0 : index
    %c0_33 = arith.constant 0 : index
    %50 = vector.load %arg8[%c0_31, %c0_32, %c0_33] : memref<1x48x64xbf16, #tpu.memory_space<vmem>>, vector<1x48x64xbf16>
    %51 = vector.shape_cast %50 : vector<1x48x64xbf16> to vector<48x64xbf16>
    %cst_34 = arith.constant dense<0.000000e+00> : vector<8x64xf32>
    %52 = tpu.matmul %49, %51, %cst_34 {dimension_numbers = #tpu.dot_dimension_numbers<[1], [0], [0], [1], [0, 0, 1, 1], [], []>} : vector<8x48xbf16>, vector<48x64xbf16>, vector<8x64xf32> -> vector<8x64xf32>
    %53 = arith.addf %48, %52 : vector<8x64xf32>
    %54 = vector.extract_strided_slice %4 {offsets = [3, 0], sizes = [1, 64], strides = [1, 1]} : vector<8x128xf32> to vector<1x64xf32>
    %55 = vector.broadcast %54 : vector<1x64xf32> to vector<8x64xf32>
    %56 = arith.addf %53, %55 : vector<8x64xf32>
    %cst_35 = arith.constant 0.000000e+00 : f32
    %57 = vector.broadcast %cst_35 : f32 to vector<8x64xf32>
    %58 = arith.cmpf ogt, %56, %57 : vector<8x64xf32>
    %cst_36 = arith.constant 0.00999999977 : f32
    %59 = vector.broadcast %cst_36 : f32 to vector<8x64xf32>
    %60 = arith.mulf %59, %56 : vector<8x64xf32>
    %61 = arith.select %58, %56, %60 : vector<8x64xi1>, vector<8x64xf32>
    %62 = vector.extract_strided_slice %4 {offsets = [4, 0], sizes = [1, 64], strides = [1, 1]} : vector<8x128xf32> to vector<1x64xf32>
    %63 = vector.broadcast %62 : vector<1x64xf32> to vector<8x64xf32>
    %64 = arith.mulf %61, %63 : vector<8x64xf32>
    %65 = vector.extract_strided_slice %4 {offsets = [5, 0], sizes = [1, 64], strides = [1, 1]} : vector<8x128xf32> to vector<1x64xf32>
    %66 = vector.broadcast %65 : vector<1x64xf32> to vector<8x64xf32>
    %67 = arith.addf %64, %66 : vector<8x64xf32>
    %68 = vector.shape_cast %67 : vector<8x64xf32> to vector<2x4x64xf32>
    %c0_37 = arith.constant 0 : index
    %c0_38 = arith.constant 0 : index
    %69 = vector.load %arg10[%c0_37, %c0_38] : memref<4x64xf32, #tpu.memory_space<vmem>>, vector<4x64xf32>
    %70 = vector.shape_cast %69 : vector<4x64xf32> to vector<1x4x64xf32>
    %71 = vector.broadcast %70 : vector<1x4x64xf32> to vector<2x4x64xf32>
    %72 = arith.addf %68, %71 : vector<2x4x64xf32>
    %73 = vector.extract_strided_slice %4 {offsets = [6, 0], sizes = [1, 64], strides = [1, 1]} : vector<8x128xf32> to vector<1x64xf32>
    %74 = vector.shape_cast %73 : vector<1x64xf32> to vector<1x1x64xf32>
    %75 = vector.shape_cast %74 : vector<1x1x64xf32> to vector<1x1x64xf32>
    %76 = vector.broadcast %75 : vector<1x1x64xf32> to vector<2x1x64xf32>
    %c0_39 = arith.constant 0 : index
    %c0_40 = arith.constant 0 : index
    %c1 = arith.constant 1 : index
    %c0_41 = arith.constant 0 : index
    %77 = vector.load %arg11[%c0_39, %c0_40, %c1, %c0_41] : memref<1x2x5x64xf32, #tpu.memory_space<vmem>>, vector<1x2x4x64xf32>
    %78 = vector.shape_cast %77 : vector<1x2x4x64xf32> to vector<2x4x64xf32>
    %79 = vector.shape_cast %72 : vector<2x4x64xf32> to vector<1x2x4x64xf32>
    tpu.vector_store %arg11[%c0_39, %c0_40, %c1, %c0_41], %79 {strides = array<i32>} : memref<1x2x5x64xf32, #tpu.memory_space<vmem>>, vector<1x2x4x64xf32>,
    %c0_42 = arith.constant 0 : index
    %c0_43 = arith.constant 0 : index
    %c0_44 = arith.constant 0 : index
    %c0_45 = arith.constant 0 : index
    %80 = vector.load %arg11[%c0_42, %c0_43, %c0_44, %c0_45] : memref<1x2x5x64xf32, #tpu.memory_space<vmem>>, vector<1x2x1x64xf32>
    %81 = vector.shape_cast %80 : vector<1x2x1x64xf32> to vector<2x1x64xf32>
    %82 = vector.shape_cast %76 : vector<2x1x64xf32> to vector<1x2x1x64xf32>
    tpu.vector_store %arg11[%c0_42, %c0_43, %c0_44, %c0_45], %82 {strides = array<i32>} : memref<1x2x5x64xf32, #tpu.memory_space<vmem>>, vector<1x2x1x64xf32>,
    return
  }
  func.func @transform_0(%arg0: i32, %arg1: i32) -> (i32, i32, i32, i32) {
    %c0_i32 = arith.constant 0 : i32
    %c0_i32_0 = arith.constant 0 : i32
    %c0_i32_1 = arith.constant 0 : i32
    return %arg0, %arg1, %c0_i32, %c0_i32_0 : i32, i32, i32, i32
  }
  func.func @transform_1(%arg0: i32, %arg1: i32) -> (i32, i32, i32) {
    %c0_i32 = arith.constant 0 : i32
    %c0_i32_0 = arith.constant 0 : i32
    %c0_i32_1 = arith.constant 0 : i32
    return %arg0, %c0_i32, %c0_i32_0 : i32, i32, i32
  }
  func.func @transform_2(%arg0: i32, %arg1: i32) -> (i32, i32, i32) {
    %c0_i32 = arith.constant 0 : i32
    %c0_i32_0 = arith.constant 0 : i32
    %c0_i32_1 = arith.constant 0 : i32
    return %arg0, %c0_i32, %c0_i32_0 : i32, i32, i32
  }
  func.func @transform_3(%arg0: i32, %arg1: i32) -> (i32, i32, i32) {
    %c0_i32 = arith.constant 0 : i32
    %c0_i32_0 = arith.constant 0 : i32
    %c0_i32_1 = arith.constant 0 : i32
    return %arg0, %c0_i32, %c0_i32_0 : i32, i32, i32
  }
  func.func @transform_4(%arg0: i32, %arg1: i32) -> (i32, i32, i32) {
    %c0_i32 = arith.constant 0 : i32
    %c0_i32_0 = arith.constant 0 : i32
    %c0_i32_1 = arith.constant 0 : i32
    return %arg0, %c0_i32, %c0_i32_0 : i32, i32, i32
  }
  func.func @transform_5(%arg0: i32, %arg1: i32) -> (i32, i32, i32) {
    %c0_i32 = arith.constant 0 : i32
    %c0_i32_0 = arith.constant 0 : i32
    %c0_i32_1 = arith.constant 0 : i32
    return %arg0, %c0_i32, %c0_i32_0 : i32, i32, i32
  }
  func.func @transform_6(%arg0: i32, %arg1: i32) -> (i32, i32, i32) {
    %c0_i32 = arith.constant 0 : i32
    %c0_i32_0 = arith.constant 0 : i32
    %c0_i32_1 = arith.constant 0 : i32
    return %arg0, %c0_i32, %c0_i32_0 : i32, i32, i32
  }
  func.func @transform_7(%arg0: i32, %arg1: i32) -> (i32, i32, i32) {
    %c0_i32 = arith.constant 0 : i32
    %c0_i32_0 = arith.constant 0 : i32
    %c0_i32_1 = arith.constant 0 : i32
    return %arg0, %c0_i32, %c0_i32_0 : i32, i32, i32
  }
  func.func @transform_8(%arg0: i32, %arg1: i32) -> (i32, i32) {
    %c0_i32 = arith.constant 0 : i32
    %c0_i32_0 = arith.constant 0 : i32
    %c0_i32_1 = arith.constant 0 : i32
    return %c0_i32, %c0_i32_0 : i32, i32
  }
  func.func @transform_9(%arg0: i32, %arg1: i32) -> (i32, i32, i32, i32) {
    %c0_i32 = arith.constant 0 : i32
    %c0_i32_0 = arith.constant 0 : i32
    %c0_i32_1 = arith.constant 0 : i32
    return %arg0, %arg1, %c0_i32, %c0_i32_0 : i32, i32, i32, i32
  }
}

module attributes {stable_mosaic.version = 11 : i64} {
  func.func @attn_kernel(%arg0: i32, %arg1: i32, %arg2: memref<1x1x3x64xf32, #tpu.memory_space<vmem>>, %arg3: memref<1x64x192xbf16, #tpu.memory_space<vmem>>, %arg4: memref<1x1x192xf32, #tpu.memory_space<vmem>>, %arg5: memref<1x64x64xbf16, #tpu.memory_space<vmem>>, %arg6: memref<1x8x64xf32, #tpu.memory_space<vmem>>, %arg7: memref<1x1x3x64xf32, #tpu.memory_space<vmem>>) attributes {dimension_semantics = [#tpu.dimension_semantics<parallel>, #tpu.dimension_semantics<parallel>], iteration_bounds = array<i64: 1, 2>, scalar_prefetch = 0 : i64, scratch_operands = 0 : i64, tpu.core_type = #tpu.core_type<tc>, window_params = [{transform_indices = @transform_0, window_bounds = array<i64: 1, 1, 3, 64>}, {transform_indices = @transform_1, window_bounds = array<i64: 1, 64, 192>}, {transform_indices = @transform_2, window_bounds = array<i64: 1, 1, 192>}, {transform_indices = @transform_3, window_bounds = array<i64: 1, 64, 64>}, {transform_indices = @transform_4, window_bounds = array<i64: 1, 8, 64>}, {transform_indices = @transform_5, window_bounds = array<i64: 1, 1, 3, 64>}]} {
    %c0 = arith.constant 0 : index
    %c0_0 = arith.constant 0 : index
    %c0_1 = arith.constant 0 : index
    %c0_2 = arith.constant 0 : index
    %0 = vector.load %arg2[%c0, %c0_0, %c0_1, %c0_2] : memref<1x1x3x64xf32, #tpu.memory_space<vmem>>, vector<1x1x3x64xf32>
    %1 = vector.shape_cast %0 : vector<1x1x3x64xf32> to vector<1x3x64xf32>
    %2 = vector.shape_cast %1 : vector<1x3x64xf32> to vector<3x64xf32>
    %c0_3 = arith.constant 0 : index
    %c0_4 = arith.constant 0 : index
    %c0_5 = arith.constant 0 : index
    %3 = vector.load %arg6[%c0_3, %c0_4, %c0_5] : memref<1x8x64xf32, #tpu.memory_space<vmem>>, vector<1x8x64xf32>
    %4 = vector.shape_cast %3 : vector<1x8x64xf32> to vector<8x64xf32>
    %5 = arith.truncf %2 : vector<3x64xf32> to vector<3x64xbf16>
    %c0_6 = arith.constant 0 : index
    %c0_7 = arith.constant 0 : index
    %c0_8 = arith.constant 0 : index
    %6 = vector.load %arg3[%c0_6, %c0_7, %c0_8] : memref<1x64x192xbf16, #tpu.memory_space<vmem>>, vector<1x64x192xbf16>
    %7 = vector.shape_cast %6 : vector<1x64x192xbf16> to vector<64x192xbf16>
    %cst = arith.constant dense<0.000000e+00> : vector<3x192xf32>
    %8 = tpu.matmul %5, %7, %cst {dimension_numbers = #tpu.dot_dimension_numbers<[1], [0], [0], [1], [0, 0, 1, 1], [], []>} : vector<3x64xbf16>, vector<64x192xbf16>, vector<3x192xf32> -> vector<3x192xf32>
    %c0_9 = arith.constant 0 : index
    %c0_10 = arith.constant 0 : index
    %c0_11 = arith.constant 0 : index
    %9 = vector.load %arg4[%c0_9, %c0_10, %c0_11] : memref<1x1x192xf32, #tpu.memory_space<vmem>>, vector<1x1x192xf32>
    %10 = vector.shape_cast %9 : vector<1x1x192xf32> to vector<1x192xf32>
    %11 = vector.broadcast %10 : vector<1x192xf32> to vector<3x192xf32>
    %12 = arith.addf %8, %11 : vector<3x192xf32>
    %13 = vector.shape_cast %12 : vector<3x192xf32> to vector<1x3x192xf32>
    %14 = vector.extract_strided_slice %13 {offsets = [0, 0, 0], sizes = [1, 3, 24], strides = [1, 1, 1]} : vector<1x3x192xf32> to vector<1x3x24xf32>
    %15 = vector.extract_strided_slice %13 {offsets = [0, 0, 24], sizes = [1, 3, 24], strides = [1, 1, 1]} : vector<1x3x192xf32> to vector<1x3x24xf32>
    %16 = vector.extract_strided_slice %13 {offsets = [0, 0, 48], sizes = [1, 3, 24], strides = [1, 1, 1]} : vector<1x3x192xf32> to vector<1x3x24xf32>
    %17 = vector.extract_strided_slice %13 {offsets = [0, 0, 72], sizes = [1, 3, 24], strides = [1, 1, 1]} : vector<1x3x192xf32> to vector<1x3x24xf32>
    %18 = vector.extract_strided_slice %13 {offsets = [0, 0, 96], sizes = [1, 3, 24], strides = [1, 1, 1]} : vector<1x3x192xf32> to vector<1x3x24xf32>
    %19 = vector.extract_strided_slice %13 {offsets = [0, 0, 120], sizes = [1, 3, 24], strides = [1, 1, 1]} : vector<1x3x192xf32> to vector<1x3x24xf32>
    %20 = vector.extract_strided_slice %13 {offsets = [0, 0, 144], sizes = [1, 3, 24], strides = [1, 1, 1]} : vector<1x3x192xf32> to vector<1x3x24xf32>
    %21 = vector.extract_strided_slice %13 {offsets = [0, 0, 168], sizes = [1, 3, 24], strides = [1, 1, 1]} : vector<1x3x192xf32> to vector<1x3x24xf32>
    %22 = tpu.concatenate %14, %15, %16, %17, %18, %19, %20, %21 in 0 : vector<1x3x24xf32>, vector<1x3x24xf32>, vector<1x3x24xf32>, vector<1x3x24xf32>, vector<1x3x24xf32>, vector<1x3x24xf32>, vector<1x3x24xf32>, vector<1x3x24xf32> -> vector<8x3x24xf32>
    %23 = vector.extract_strided_slice %22 {offsets = [0, 0, 0], sizes = [8, 3, 8], strides = [1, 1, 1]} : vector<8x3x24xf32> to vector<8x3x8xf32>
    %cst_12 = arith.constant 0.353553385 : f32
    %24 = vector.broadcast %cst_12 : f32 to vector<8x3x8xf32>
    %25 = arith.mulf %23, %24 : vector<8x3x8xf32>
    %26 = arith.truncf %25 : vector<8x3x8xf32> to vector<8x3x8xbf16>
    %27 = vector.extract_strided_slice %22 {offsets = [0, 0, 8], sizes = [8, 3, 8], strides = [1, 1, 1]} : vector<8x3x24xf32> to vector<8x3x8xf32>
    %28 = arith.truncf %27 : vector<8x3x8xf32> to vector<8x3x8xbf16>
    %29 = vector.extract_strided_slice %22 {offsets = [0, 0, 16], sizes = [8, 3, 8], strides = [1, 1, 1]} : vector<8x3x24xf32> to vector<8x3x8xf32>
    %30 = arith.truncf %29 : vector<8x3x8xf32> to vector<8x3x8xbf16>
    "tpu.trace_start"() <{level = 10 : i32, message = "nqd,nkd->nqk"}> : () -> ()
    %cst_13 = arith.constant dense<0.000000e+00> : vector<8x3x3xf32>
    %31 = tpu.matmul %26, %28, %cst_13 {dimension_numbers = #tpu.dot_dimension_numbers<[2], [2], [1], [1], [0, 0, 0, 1, 1, 1], [0], [0]>} : vector<8x3x8xbf16>, vector<8x3x8xbf16>, vector<8x3x3xf32> -> vector<8x3x3xf32>
    "tpu.trace_stop"() : () -> ()
    %cst_14 = arith.constant dense<0xFF800000> : vector<8x3xf32>
    %32 = vector.multi_reduction <maximumf>, %31, %cst_14 [2] : vector<8x3x3xf32> to vector<8x3xf32>
    %33 = vector.shape_cast %32 : vector<8x3xf32> to vector<8x3x1xf32>
    %34 = vector.broadcast %33 : vector<8x3x1xf32> to vector<8x3x3xf32>
    %35 = arith.subf %31, %34 : vector<8x3x3xf32>
    %36 = math.exp %35 : vector<8x3x3xf32>
    %cst_15 = arith.constant dense<0.000000e+00> : vector<8x3xf32>
    %37 = vector.multi_reduction <add>, %36, %cst_15 [2] : vector<8x3x3xf32> to vector<8x3xf32>
    %38 = vector.shape_cast %37 : vector<8x3xf32> to vector<8x3x1xf32>
    %39 = tpu.reciprocal %38 {approx = true} : vector<8x3x1xf32> -> vector<8x3x1xf32>
    %40 = vector.broadcast %39 : vector<8x3x1xf32> to vector<8x3x3xf32>
    %41 = arith.mulf %36, %40 : vector<8x3x3xf32>
    %42 = arith.truncf %41 : vector<8x3x3xf32> to vector<8x3x3xbf16>
    "tpu.trace_start"() <{level = 10 : i32, message = "nqk,nkd->nqd"}> : () -> ()
    %cst_16 = arith.constant dense<0.000000e+00> : vector<8x3x8xf32>
    %43 = tpu.matmul %42, %30, %cst_16 {dimension_numbers = #tpu.dot_dimension_numbers<[2], [1], [1], [2], [0, 0, 0, 1, 1, 2], [0], [0]>} : vector<8x3x3xbf16>, vector<8x3x8xbf16>, vector<8x3x8xf32> -> vector<8x3x8xf32>
    "tpu.trace_stop"() : () -> ()
    %44 = vector.extract_strided_slice %43 {offsets = [0, 0, 0], sizes = [1, 3, 8], strides = [1, 1, 1]} : vector<8x3x8xf32> to vector<1x3x8xf32>
    %45 = vector.extract_strided_slice %43 {offsets = [1, 0, 0], sizes = [1, 3, 8], strides = [1, 1, 1]} : vector<8x3x8xf32> to vector<1x3x8xf32>
    %46 = vector.extract_strided_slice %43 {offsets = [2, 0, 0], sizes = [1, 3, 8], strides = [1, 1, 1]} : vector<8x3x8xf32> to vector<1x3x8xf32>
    %47 = vector.extract_strided_slice %43 {offsets = [3, 0, 0], sizes = [1, 3, 8], strides = [1, 1, 1]} : vector<8x3x8xf32> to vector<1x3x8xf32>
    %48 = vector.extract_strided_slice %43 {offsets = [4, 0, 0], sizes = [1, 3, 8], strides = [1, 1, 1]} : vector<8x3x8xf32> to vector<1x3x8xf32>
    %49 = vector.extract_strided_slice %43 {offsets = [5, 0, 0], sizes = [1, 3, 8], strides = [1, 1, 1]} : vector<8x3x8xf32> to vector<1x3x8xf32>
    %50 = vector.extract_strided_slice %43 {offsets = [6, 0, 0], sizes = [1, 3, 8], strides = [1, 1, 1]} : vector<8x3x8xf32> to vector<1x3x8xf32>
    %51 = vector.extract_strided_slice %43 {offsets = [7, 0, 0], sizes = [1, 3, 8], strides = [1, 1, 1]} : vector<8x3x8xf32> to vector<1x3x8xf32>
    %52 = tpu.concatenate %44, %45, %46, %47, %48, %49, %50, %51 in 2 : vector<1x3x8xf32>, vector<1x3x8xf32>, vector<1x3x8xf32>, vector<1x3x8xf32>, vector<1x3x8xf32>, vector<1x3x8xf32>, vector<1x3x8xf32>, vector<1x3x8xf32> -> vector<1x3x64xf32>
    %53 = vector.shape_cast %52 : vector<1x3x64xf32> to vector<3x64xf32>
    %54 = arith.truncf %53 : vector<3x64xf32> to vector<3x64xbf16>
    %c0_17 = arith.constant 0 : index
    %c0_18 = arith.constant 0 : index
    %c0_19 = arith.constant 0 : index
    %55 = vector.load %arg5[%c0_17, %c0_18, %c0_19] : memref<1x64x64xbf16, #tpu.memory_space<vmem>>, vector<1x64x64xbf16>
    %56 = vector.shape_cast %55 : vector<1x64x64xbf16> to vector<64x64xbf16>
    %cst_20 = arith.constant dense<0.000000e+00> : vector<3x64xf32>
    %57 = tpu.matmul %54, %56, %cst_20 {dimension_numbers = #tpu.dot_dimension_numbers<[1], [0], [0], [1], [0, 0, 1, 1], [], []>} : vector<3x64xbf16>, vector<64x64xbf16>, vector<3x64xf32> -> vector<3x64xf32>
    %58 = vector.extract_strided_slice %4 {offsets = [0, 0], sizes = [1, 64], strides = [1, 1]} : vector<8x64xf32> to vector<1x64xf32>
    %59 = vector.broadcast %58 : vector<1x64xf32> to vector<3x64xf32>
    %60 = arith.addf %57, %59 : vector<3x64xf32>
    %61 = arith.addf %2, %60 : vector<3x64xf32>
    %cst_21 = arith.constant dense<0.000000e+00> : vector<3xf32>
    %62 = vector.multi_reduction <add>, %61, %cst_21 [1] : vector<3x64xf32> to vector<3xf32>
    %63 = vector.shape_cast %62 : vector<3xf32> to vector<3x1xf32>
    %cst_22 = arith.constant 6.400000e+01 : f32
    %64 = vector.broadcast %cst_22 : f32 to vector<3x1xf32>
    %65 = arith.divf %63, %64 : vector<3x1xf32>
    %66 = vector.broadcast %65 : vector<3x1xf32> to vector<3x64xf32>
    %67 = arith.subf %61, %66 : vector<3x64xf32>
    %68 = arith.mulf %67, %67 : vector<3x64xf32>
    %cst_23 = arith.constant dense<0.000000e+00> : vector<3xf32>
    %69 = vector.multi_reduction <add>, %68, %cst_23 [1] : vector<3x64xf32> to vector<3xf32>
    %70 = vector.shape_cast %69 : vector<3xf32> to vector<3x1xf32>
    %cst_24 = arith.constant 6.400000e+01 : f32
    %71 = vector.broadcast %cst_24 : f32 to vector<3x1xf32>
    %72 = arith.divf %70, %71 : vector<3x1xf32>
    %73 = vector.broadcast %65 : vector<3x1xf32> to vector<3x64xf32>
    %74 = arith.subf %61, %73 : vector<3x64xf32>
    %cst_25 = arith.constant 9.99999974E-6 : f32
    %75 = vector.broadcast %cst_25 : f32 to vector<3x1xf32>
    %76 = arith.addf %72, %75 : vector<3x1xf32>
    %77 = math.rsqrt %76 : vector<3x1xf32>
    %78 = vector.broadcast %77 : vector<3x1xf32> to vector<3x64xf32>
    %79 = arith.mulf %74, %78 : vector<3x64xf32>
    %80 = vector.extract_strided_slice %4 {offsets = [1, 0], sizes = [1, 64], strides = [1, 1]} : vector<8x64xf32> to vector<1x64xf32>
    %81 = vector.broadcast %80 : vector<1x64xf32> to vector<3x64xf32>
    %82 = arith.mulf %79, %81 : vector<3x64xf32>
    %83 = vector.extract_strided_slice %4 {offsets = [2, 0], sizes = [1, 64], strides = [1, 1]} : vector<8x64xf32> to vector<1x64xf32>
    %84 = vector.broadcast %83 : vector<1x64xf32> to vector<3x64xf32>
    %85 = arith.addf %82, %84 : vector<3x64xf32>
    %86 = vector.shape_cast %85 : vector<3x64xf32> to vector<1x3x64xf32>
    %c0_26 = arith.constant 0 : index
    %c0_27 = arith.constant 0 : index
    %c0_28 = arith.constant 0 : index
    %c0_29 = arith.constant 0 : index
    %87 = vector.load %arg7[%c0_26, %c0_27, %c0_28, %c0_29] : memref<1x1x3x64xf32, #tpu.memory_space<vmem>>, vector<1x1x3x64xf32>
    %88 = vector.shape_cast %87 : vector<1x1x3x64xf32> to vector<1x3x64xf32>
    %89 = vector.shape_cast %86 : vector<1x3x64xf32> to vector<1x1x3x64xf32>
    tpu.vector_store %arg7[%c0_26, %c0_27, %c0_28, %c0_29], %89 {strides = array<i32>} : memref<1x1x3x64xf32, #tpu.memory_space<vmem>>, vector<1x1x3x64xf32>,
    return
  }
  func.func @transform_0(%arg0: i32, %arg1: i32) -> (i32, i32, i32, i32) {
    %c0_i32 = arith.constant 0 : i32
    %c0_i32_0 = arith.constant 0 : i32
    %c0_i32_1 = arith.constant 0 : i32
    return %arg0, %arg1, %c0_i32, %c0_i32_0 : i32, i32, i32, i32
  }
  func.func @transform_1(%arg0: i32, %arg1: i32) -> (i32, i32, i32) {
    %c0_i32 = arith.constant 0 : i32
    %c0_i32_0 = arith.constant 0 : i32
    %c0_i32_1 = arith.constant 0 : i32
    return %arg0, %c0_i32, %c0_i32_0 : i32, i32, i32
  }
  func.func @transform_2(%arg0: i32, %arg1: i32) -> (i32, i32, i32) {
    %c0_i32 = arith.constant 0 : i32
    %c0_i32_0 = arith.constant 0 : i32
    %c0_i32_1 = arith.constant 0 : i32
    return %arg0, %c0_i32, %c0_i32_0 : i32, i32, i32
  }
  func.func @transform_3(%arg0: i32, %arg1: i32) -> (i32, i32, i32) {
    %c0_i32 = arith.constant 0 : i32
    %c0_i32_0 = arith.constant 0 : i32
    %c0_i32_1 = arith.constant 0 : i32
    return %arg0, %c0_i32, %c0_i32_0 : i32, i32, i32
  }
  func.func @transform_4(%arg0: i32, %arg1: i32) -> (i32, i32, i32) {
    %c0_i32 = arith.constant 0 : i32
    %c0_i32_0 = arith.constant 0 : i32
    %c0_i32_1 = arith.constant 0 : i32
    return %arg0, %c0_i32, %c0_i32_0 : i32, i32, i32
  }
  func.func @transform_5(%arg0: i32, %arg1: i32) -> (i32, i32, i32, i32) {
    %c0_i32 = arith.constant 0 : i32
    %c0_i32_0 = arith.constant 0 : i32
    %c0_i32_1 = arith.constant 0 : i32
    return %arg0, %arg1, %c0_i32, %c0_i32_0 : i32, i32, i32, i32
  }
}

</mosaic_0001>

<bundles_post_ra>
// kernel: epoch_cross_transformer.3
= control target key start
LH: loop header
LB: loop body
LE: loop exit
PB: predicated region body
PF: predicated region fallthrough
CT: control target
= control target key end

     0   :  { %s1597_s30 = smov 0   ;;  %s1599_s10 = smov 0   ;;  %s1767_s0 = inlined_call_operand.vmem [shape: bf16[2,2,4,50], index: 0, kind: input, shape index: {}]   ;;  %s1768_s1 = inlined_call_operand.vmem [shape: bf16[2,50,128], index: 1, kind: input, shape index: {}]   ;;  %s1769_s2 = inlined_call_operand.vmem [shape: bf16[2,128,32], index: 2, kind: input, shape index: {}]   ;;  %s1770_s3 = inlined_call_operand.vmem [shape: bf16[2,32,48], index: 3, kind: input, shape index: {}]   ;;  %s1771_s4 = inlined_call_operand.vmem [shape: bf16[2,128,48], index: 4, kind: input, shape index: {}]   ;;  %s1772_s5 = inlined_call_operand.vmem [shape: bf16[2,128,64], index: 5, kind: input, shape index: {}]   ;;  %s1773_s6 = inlined_call_operand.vmem [shape: bf16[2,48,64], index: 6, kind: input, shape index: {}]   ;;  %s1774_s7 = inlined_call_operand.vmem [shape: f32[2,8,128], index: 7, kind: input, shape index: {}]   ;;  %s1775_s8 = inlined_call_operand.vmem [shape: f32[4,64], index: 8, kind: input, shape index: {}]   ;;  %s1776_s9 = inlined_call_operand.vmem [shape: f32[2,2,5,64], index: 9, kind: output, shape index: {}]  }
   0x1   :  { %s1601_s11 = smov 0  }
   0x2 LB: > { %s31_s12 = sadd.s32 1, %s1538_s10  ;;  %p1269_p0 = scmp.ge.s32.totalorder %s1542_s11, 1  ;;  %s1542_s11 = sphi %s1601_s11, %s19_s11   ;;  %s1538_s10 = sphi %s1599_s10, %s1778_s10   ;;  %s1534_s30 = sphi %s1597_s30, %s1777_s30  }
   0x3   : > { %p33_p1 = scmp.ge.s32.totalorder %s31_s12, 2  ;;  %p377_p2 = scmp.lt.s32.totalorder %s1542_s11, 3 }
   0x5   : > { %s1780_s12 = smov (%p33_p1, %s31_s12), 0  ;;  %p378_p3 = pnand %p1269_p0, %p377_p2 }
   0x6   : > { %p456_p4 = scmp.lt.s32.totalorder (!%p378_p3), %s1534_s30, 1  ;;  %v1544_v0 = vmov (!%p378_p3), 0.0   ;;  %vm1545_vm0 = vmmov (!%p378_p3), 0   ;;  %v520_v3 = vlaneseq (!%p378_p3)  ;;  %v1546_v4 = vmov (!%p378_p3), 1983009808  }
   0x7   : > { %381 = sbr.rel (%p378_p3) target bundleno = 921 (0x399), region = 56  ;;  %1368 = vmatprep.subr.bf16.mxu1 (!%p378_p3), %v1544_v0  ;;  %1376 = vmatprep.mubr.msk.bf16.mxu1 (!%p378_p3), %vm1545_vm0, %v1544_v0  ;;  %v528_v5 = vunpack.c.l.s4 (!%p378_p3), %v1546_v4  ;;  %vm559_vm1 = vcmask (!%p378_p3), 1040384   ;;  %vm555_vm2 = vcmask (!%p378_p3), 408576   ;;  %vm1091_vm4 = vcmask (!%p378_p3), 522246  }
   0x8   : > { %1400 = vmatprep.subr.bf16.mxu0 (!%p378_p3), %v1544_v0  ;;  %1416 = vmatprep.mubr.msk.bf16.mxu0 (!%p378_p3), %vm1545_vm0, %v1544_v0  ;;  %v1649_v11 = vshrl.u32 (!%p378_p3), %v520_v3, 7  ;;  %vm839_vm6 = vcmask (!%p378_p3), 261120   ;;  %vm932_vm8 = vcmask (!%p378_p3), 392192   ;;  %vm1088_vm10 = vcmask (!%p378_p3), 519168  }
   0x9   : > { %v529_v12 = vunpack.c.0.s8 (!%p378_p3), %v528_v5 }
   0xa   : > { %v522_v32 = vsub.s32 (!%p378_p3), 0, %v1649_v11  ;;  %v625_v53 = vsub.s32 (!%p378_p3), 1, %v1649_v11 }
   0xb   : > { %v532_v16 = vsub.s32 (!%p378_p3), %v529_v12, %v1649_v11  ;;  %v885_v12 = vsub.s32 (!%p378_p3), 2, %v1649_v11 }
   0xe   : > { %s1782_s30 = smov (!%p456_p4, %s1534_s30), 1 }
   0xf   : > { %s1458_s13 = smul.u32 28, %s1782_s30  ;;  %s1625_s14 = sshll.u32 %s1782_s30, 6 }
  0x10   : > { %s1631_s17 = scalar_lea.vmem %s1771_s4, %s1625_s14  ;;  %s1323_s21 = sshll.u32 %s1782_s30, 2 }
  0x11   : > { %s469_s20 = scalar_lea.vmem %s1768_s1, %s1458_s13  ;;  %v1491_v1 = vld [vmem:[%s1631_s17] sm:$0xff]   ;;  %s463_s24 = scalar_lea.vmem %s1767_s0, %s1323_s21  ;;  %v1493_v13 = vld [vmem:[%s1631_s17 + $0x8] sm:$0xff]   ;;  %v1495_v14 = vld [vmem:[%s1631_s17 + $0x10] sm:$0xff]  }
  0x12   : > { %v1487_v2 = vld [vmem:[%s469_s20] sm:$0xff]   ;;  %1401 = vmatpush3.bf16.msra.mxu0 %v1491_v1  ;;  %v1488_v6 = vld [vmem:[%s469_s20 + $0x8] sm:$0xff]   ;;  %s1646_s27 = scalar_lea.vmem %s1769_s2, %s1625_s14  ;;  %v1489_v7 = vld [vmem:[%s469_s20 + $0x10] sm:$0xff]   ;;  %s1668_s13 = scalar_lea.vmem %s1772_s5, %s1625_s14 }
  0x13   : > { %1369 = vmatpush3.bf16.msra.mxu1 %v1487_v2  ;;  %1402 = vmatprep.subr.bf16.mxu0 %v1544_v0  ;;  %v510_v8 = vld [vmem:[%s463_s24] sm:$0x3]  ;;  %v511_v9 = vld [vmem:[%s463_s24 + $0x2] sm:$0x3]  ;;  %v1497_v18 = vld [vmem:[%s1631_s17 + $0x18] sm:$0xff]   ;;  %s1282_s14 = sshll.u32 %s1782_s30, 3 }
  0x14   : > { %1370 = vmatprep.subr.bf16.mxu1 %v1544_v0  ;;  %v1490_v10 = vld [vmem:[%s469_s20 + $0x18] ss:$0 sps:$4 sm:$0x11]   ;;  %v526_v15 = vcombine.low %v510_v8, %v511_v9  ;;  %v1492_v20 = vld [vmem:[%s1646_s27] sm:$0xff]   ;;  %v1494_v22 = vld [vmem:[%s1646_s27 + $0x8] sm:$0xff]   ;;  %s498_s18 = scalar_lea.vmem %s1774_s7, %s1282_s14  ;;  %s1459_s25 = smul.u32 24, %s1782_s30 }
  0x15   : > { %v561_v17 = vsel %vm559_vm1, %v1490_v10, 0  ;;  %v1499_v21 = vld [vmem:[%s1631_s17 + $0x20] sm:$0xff]   ;;  %v1501_v23 = vld [vmem:[%s1631_s17 + $0x28] sm:$0xff]   ;;  %v1496_v24 = vld [vmem:[%s1646_s27 + $0x10] sm:$0xff]  }
  0x16   : > { %1403 = vmatpush3.bf16.msra.mxu0 %v1493_v13  ;;  %v533_v19 = vrot.slane %v526_v15, %v532_v16  ;;  %v1498_v25 = vld [vmem:[%s1646_s27 + $0x18] sm:$0xff]   ;;  %v1500_v26 = vld [vmem:[%s1646_s27 + $0x20] sm:$0xff]   ;;  %v1502_v27 = vld [vmem:[%s1646_s27 + $0x28] sm:$0xff]   ;;  %s494_s28 = scalar_lea.vmem %s1773_s6, %s1459_s25 }
  0x17   : > { %1371 = vmatpush3.bf16.msra.mxu1 %v1488_v6  ;;  %1404 = vmatprep.subr.bf16.mxu0 %v1544_v0  ;;  %v1503_v28 = vld [vmem:[%s1631_s17 + $0x30] sm:$0xff]   ;;  %v1505_v30 = vld [vmem:[%s1631_s17 + $0x38] sm:$0xff]   ;;  %v1698_v33 = vld [vmem:[%s498_s18] sm:$0xff]  ;;  %s1325_s17 = sshll.u32 %s1782_s30, 4 }
  0x18   : > { %1372 = vmatprep.subr.bf16.mxu1 %v1544_v0  ;;  %v1504_v29 = vld [vmem:[%s1646_s27 + $0x30] sm:$0xff]   ;;  %v1506_v31 = vld [vmem:[%s1646_s27 + $0x38] sm:$0xff]   ;;  %v523_v34 = vrot.slane %v1698_v33, %v522_v32  ;;  %v1507_v42 = vld [vmem:[%s1668_s13] sm:$0xff]   ;;  %s479_s21 = scalar_lea.vmem %s1770_s3, %s1325_s17  ;;  %s1728_s24 = scalar_lea.vmem %s1776_s9, %s1325_s17  ;;  %v626_v54 = vrot.slane %v1698_v33, %v625_v53  ;;  %v886_v13 = vrot.slane %v1698_v33, %v885_v12 }
  0x19   : > { %v1508_v44 = vld [vmem:[%s1668_s13 + $0x8] sm:$0xff]   ;;  %v1509_v45 = vld [vmem:[%s1668_s13 + $0x10] sm:$0xff]   ;;  %v1510_v46 = vld [vmem:[%s1668_s13 + $0x18] sm:$0xff]   ;;  %1092 = vst.msk [vmem:[%s1728_s24 - $0x6] sm:$0x40] %vm1091_vm4, %v1698_v33 }
  0x1a   : > { %1405 = vmatpush3.bf16.msra.mxu0 %v1495_v14  ;;  %v1511_v47 = vld [vmem:[%s1668_s13 + $0x20] sm:$0xff]   ;;  %v1512_v48 = vld [vmem:[%s1668_s13 + $0x28] sm:$0xff]   ;;  %v1513_v49 = vld [vmem:[%s1668_s13 + $0x30] sm:$0xff]   ;;  %1093 = vst.msk [vmem:[%s1728_s24 + $0x2] sm:$0x40] %vm1091_vm4, %v1698_v33 }
  0x1b   : > { %1373 = vmatpush3.bf16.msra.mxu1 %v1489_v7  ;;  %1406 = vmatprep.subr.bf16.mxu0 %v1544_v0  ;;  %v1514_v50 = vld [vmem:[%s1668_s13 + $0x38] sm:$0xff]   ;;  %v1515_v51 = vld [vmem:[%s479_s21] sm:$0xff]   ;;  %v1516_v52 = vld [vmem:[%s479_s21 + $0x8] sm:$0xff]  }
  0x1c   : > { %1374 = vmatprep.subr.bf16.mxu1 %v1544_v0  ;;  %v1517_v3 = vld [vmem:[%s494_s28] sm:$0xff]   ;;  %v1518_v9 = vld [vmem:[%s494_s28 + $0x8] sm:$0xff]   ;;  %v1519_v10 = vld [vmem:[%s494_s28 + $0x10] sm:$0xff]  }
  0x1e   : > { %1407 = vmatpush3.bf16.msra.mxu0 %v1497_v18 }
  0x1f   : > { %1375 = vmatpush3.bf16.msra.mxu1 %v561_v17  ;;  %1408 = vmatprep.subr.bf16.mxu0 %v1544_v0 }
  0x20   : > { %1380 = vmatprep.subr.bf16.mxu1 %v1544_v0 }
  0x22   : > { %1377 = vmatmul.mubr.msk.bf16.vlgmr.msra.gmra.mrb[0].mxu1 %vm555_vm2, %v533_v19  ;;  %1409 = vmatpush3.bf16.msra.mxu0 %v1499_v21 }
  0x23   : > { %1381 = vmatpush3.bf16.msra.mxu1 %v1492_v20  ;;  %1396 = vmatprep.mubr.msk.bf16.mxu1 %vm1545_vm0, %v1544_v0 }
  0x24   : > { %1382 = vmatprep.subr.bf16.mxu1 %v1544_v0  ;;  %1410 = vmatprep.subr.bf16.mxu0 %v1544_v0 }
  0x26   : > { %1411 = vmatpush3.bf16.msra.mxu0 %v1501_v23 }
  0x27   : > { %1383 = vmatpush3.bf16.msra.mxu1 %v1494_v22  ;;  %1412 = vmatprep.subr.bf16.mxu0 %v1544_v0 }
  0x28   : > { %1384 = vmatprep.subr.bf16.mxu1 %v1544_v0 }
  0x2a   : > { %1413 = vmatpush3.bf16.msra.mxu0 %v1503_v28  ;;  %v1079_v28 = vsub.s32 5, %v1649_v11 }
  0x2b   : > { %1385 = vmatpush3.bf16.msra.mxu1 %v1496_v24  ;;  %1414 = vmatprep.subr.bf16.mxu0 %v1544_v0 }
  0x2c   : > { %1386 = vmatprep.subr.bf16.mxu1 %v1544_v0 }
  0x2e   : > { %1415 = vmatpush3.bf16.msra.mxu0 %v1505_v30 }
  0x2f   : > { %1387 = vmatpush3.bf16.msra.mxu1 %v1498_v25  ;;  %1438 = vmatprep.subr.bf16.mxu0 %v1544_v0  ;;  %v1074_v25 = vsub.s32 4, %v1649_v11 }
  0x30   : > { %1388 = vmatprep.subr.bf16.mxu1 %v1544_v0 }
  0x31   : > { %v1075_v32 = vrot.slane %v1698_v33, %v1074_v25 }
  0x33   : > { %1389 = vmatpush3.bf16.msra.mxu1 %v1500_v26 }
  0x34   : > { %1390 = vmatprep.subr.bf16.mxu1 %v1544_v0 }
  0x37   : > { %1391 = vmatpush3.bf16.msra.mxu1 %v1502_v27 }
  0x38   : > { %1392 = vmatprep.subr.bf16.mxu1 %v1544_v0 }
  0x3b   : > { %1393 = vmatpush3.bf16.msra.mxu1 %v1504_v29 }
  0x3c   : > { %1394 = vmatprep.subr.bf16.mxu1 %v1544_v0 }
  0x3f   : > { %1395 = vmatpush3.bf16.msra.mxu1 %v1506_v31 }
  0x40   : > { %1420 = vmatprep.subr.bf16.mxu1 %v1544_v0 }
  0xf5   : > { %v597_v35 = vpop.f32.mrb[0].mxu1 }
  0xf6   : > { %v598_v36 = vadd.f32 %v597_v35, %v523_v34  ;;  %v1378_v37 = vpop.f32.mrb[1].mxu1  ;;  %v1080_v35 = vrot.slane %v1698_v33, %v1079_v28 }
  0xf7   : > { %v600_v38 = vpop.f32.mrb[2].mxu1 }
  0xf8   : > { %vm603_vm3 = vcmp.gt.f32.partialorder %v598_v36, 0.0  ;;  %v604_v39 = vmul.f32 0.01, %v598_v36  ;;  %v1379_v40 = vpop.f32.mrb[3].mxu1  ;;  %v1085_v38 = vld [vmem:[%s1775_s8] sm:$0xf] }
  0xfa   : > { %v605_v41 = vsel %vm603_vm3, %v598_v36, %v604_v39 }
  0xfb   : > { %v606_v43 = vpack.c.bf16 %v605_v41, %v605_v41 }
  0xfd   : > { %1397 = vmatmul.mubr.bf16.vlgmr.msra.gmra.mrb[4].mxu1 %v606_v43  ;;  %1417 = vmatmul.mubr.bf16.vlgmr.msra.gmra.mrb[0].mxu0 %v606_v43 }
  0xfe   : > { %1439 = vmatpush3.bf16.msra.mxu0 %v1507_v42  ;;  %1454 = vmatprep.mubr.msk.bf16.mxu0 %vm1545_vm0, %v1544_v0 }
  0xff   : > { %1440 = vmatprep.subr.bf16.mxu0 %v1544_v0  ;;  %1424 = vmatprep.mubr.msk.bf16.mxu1 %vm1545_vm0, %v1544_v0 }
 0x100   : > { %1421 = vmatpush3.bf16.msra.mxu1 %v1515_v51 }
 0x101   : > { %1422 = vmatprep.subr.bf16.mxu1 %v1544_v0 }
 0x102   : > { %1441 = vmatpush3.bf16.msra.mxu0 %v1508_v44 }
 0x103   : > { %1442 = vmatprep.subr.bf16.mxu0 %v1544_v0 }
 0x104   : > { %1423 = vmatpush3.bf16.msra.mxu1 %v1516_v52 }
 0x105   : > { %1428 = vmatprep.subr.bf16.mxu1 %v1544_v0 }
 0x106   : > { %1443 = vmatpush3.bf16.msra.mxu0 %v1509_v45 }
 0x107   : > { %1444 = vmatprep.subr.bf16.mxu0 %v1544_v0 }
 0x10a   : > { %1445 = vmatpush3.bf16.msra.mxu0 %v1510_v46 }
 0x10b   : > { %1446 = vmatprep.subr.bf16.mxu0 %v1544_v0 }
 0x10e   : > { %1447 = vmatpush3.bf16.msra.mxu0 %v1511_v47 }
 0x10f   : > { %1448 = vmatprep.subr.bf16.mxu0 %v1544_v0 }
 0x112   : > { %1449 = vmatpush3.bf16.msra.mxu0 %v1512_v48 }
 0x113   : > { %1450 = vmatprep.subr.bf16.mxu0 %v1544_v0 }
 0x116   : > { %1451 = vmatpush3.bf16.msra.mxu0 %v1513_v49 }
 0x117   : > { %1452 = vmatprep.subr.bf16.mxu0 %v1544_v0 }
 0x11a   : > { %1453 = vmatpush3.bf16.msra.mxu0 %v1514_v50 }
 0x11d   : > { %1455 = vmatmul.mubr.bf16.vlgmr.msra.gmra.mrb[4].mxu0 %v606_v43 }
 0x1d0   : > { %v709_v55 = vpop.f32.mrb[4].mxu1  ;;  %v821_v56 = vpop.f32.mrb[0].mxu0 }
 0x1d1   : > { %v710_v57 = vadd.f32 %v709_v55, %v626_v54  ;;  %v1398_v58 = vpop.f32.mrb[5].mxu1  ;;  %v1418_v59 = vpop.f32.mrb[1].mxu0 }
 0x1d2   : > { %v712_v60 = vpop.f32.mrb[6].mxu1  ;;  %v824_v61 = vpop.f32.mrb[2].mxu0 }
 0x1d3   : > { %vm715_vm5 = vcmp.gt.f32.partialorder %v710_v57, 0.0  ;;  %v716_v62 = vmul.f32 0.01, %v710_v57  ;;  %v1399_v63 = vpop.f32.mrb[7].mxu1  ;;  %v1419_v1 = vpop.f32.mrb[3].mxu0 }
 0x1d5   : > { %v717_v2 = vsel %vm715_vm5, %v710_v57, %v716_v62 }
 0x1d6   : > { %v718_v4 = vpack.c.bf16 %v717_v2, %v717_v2 }
 0x1d8   : > { %1425 = vmatmul.mubr.msk.bf16.vlgmr.msra.gmra.mrb[8].mxu1 %vm839_vm6, %v718_v4 }
 0x1d9   : > { %1429 = vmatpush3.bf16.msra.mxu1 %v1517_v3  ;;  %1434 = vmatprep.mubr.msk.bf16.mxu1 %vm1545_vm0, %v1544_v0 }
 0x1da   : > { %1430 = vmatprep.subr.bf16.mxu1 %v1544_v0 }
 0x1dd   : > { %1431 = vmatpush3.bf16.msra.mxu1 %v1518_v9 }
 0x1de   : > { %1432 = vmatprep.subr.bf16.mxu1 %v1544_v0  ;;  %v1066_v0 = vsub.s32 3, %v1649_v11 }
 0x1e0   : > { %v1067_v23 = vrot.slane %v1698_v33, %v1066_v0 }
 0x1e1   : > { %1433 = vmatpush3.bf16.msra.mxu1 %v1519_v10 }
 0x1f0   : > { %v1058_v5 = vpop.f32.mrb[4].mxu0 }
 0x1f1   : > { %v1456_v6 = vpop.f32.mrb[5].mxu0 }
 0x1f2   : > { %v1061_v7 = vpop.f32.mrb[6].mxu0 }
 0x1f3   : > { %v1457_v8 = vpop.f32.mrb[7].mxu0 }
 0x2ab   : > { %v877_v14 = vpop.f32.mrb[8].mxu1 }
 0x2ac   : > { %v878_v15 = vadd.f32 %v877_v14, %v821_v56  ;;  %v1426_v16 = vpop.f32.mrb[9].mxu1 }
 0x2ad   : > { %v880_v17 = vpop.f32.mrb[10].mxu1 }
 0x2ae   : > { %v887_v18 = vadd.f32 %v886_v13, %v878_v15  ;;  %v1427_v19 = vpop.f32.mrb[11].mxu1 }
 0x2b0   : > { %vm888_vm7 = vcmp.gt.f32.partialorder %v887_v18, 0.0  ;;  %v889_v20 = vmul.f32 0.01, %v887_v18 }
 0x2b2   : > { %v890_v21 = vsel %vm888_vm7, %v887_v18, %v889_v20 }
 0x2b3   : > { %v907_v22 = vpack.c.bf16 %v890_v21, %v890_v21 }
 0x2b5   : > { %1435 = vmatmul.mubr.msk.bf16.vlgmr.msra.gmra.mrb[12].mxu1 %vm932_vm8, %v907_v22 }
 0x388   : > { %v970_v24 = vpop.f32.mrb[12].mxu1 }
 0x389   : > { %v1059_v26 = vadd.f32 %v1058_v5, %v970_v24  ;;  %v1436_v27 = vpop.f32.mrb[13].mxu1 }
 0x38a   : > { %v973_v29 = vpop.f32.mrb[14].mxu1 }
 0x38b   : > { %v1068_v30 = vadd.f32 %v1067_v23, %v1059_v26  ;;  %v1437_v31 = vpop.f32.mrb[15].mxu1 }
 0x38d   : > { %vm1069_vm9 = vcmp.gt.f32.partialorder %v1068_v30, 0.0  ;;  %v1070_v34 = vmul.f32 0.01, %v1068_v30 }
 0x38f   : > { %v1071_v36 = vsel %vm1069_vm9, %v1068_v30, %v1070_v34 }
 0x390   : > { %v1076_v37 = vmul.f32 %v1075_v32, %v1071_v36 }
 0x392   : > { %v1081_v39 = vadd.f32 %v1080_v35, %v1076_v37 }
 0x394   : > { %v1083_v11 = vcombine.high %v1081_v39, %v1081_v39  ;;  %v1086_v40 = vadd.f32 %v1085_v38, %v1081_v39 }
 0x396   : > { %v1087_v41 = vadd.f32 %v1085_v38, %v1083_v11  ;;  %1089 = vst.msk [vmem:[%s1728_s24 + $0x1] sm:$0xf] %vm1088_vm10, %v1086_v40 }
 0x398   : > { %1090 = vst.msk [vmem:[%s1728_s24 + $0x9] sm:$0xf] %vm1088_vm10, %v1087_v41 }
 0x399 PF: > { %s19_s11 = sadd.s32 1, %s1542_s11   ;;  %s1777_s30 = smov %s1538_s10 }
 0x39a   : > { %p16_p5 = scmp.ge.s32.totalorder %s19_s11, 4   ;;  %s1778_s10 = smov %s1780_s12 }
 0x39c   :  { %18 = sbr.rel (!%p16_p5) target bundleno = 2 (0x2), region = 107 }

// kernel: epoch_cross_transformer.5
= control target key start
LH: loop header
LB: loop body
LE: loop exit
PB: predicated region body
PF: predicated region fallthrough
CT: control target
= control target key end

     0   :  { %s2008_s18 = smov 0   ;;  %s2010_s19 = smov 0   ;;  %s2294_s0 = inlined_call_operand.vmem [shape: f32[1,2,3,64], index: 0, kind: input, shape index: {}]   ;;  %s2295_s1 = inlined_call_operand.vmem [shape: bf16[1,64,192], index: 1, kind: input, shape index: {}]   ;;  %s2296_s2 = inlined_call_operand.vmem [shape: f32[1,1,192], index: 2, kind: input, shape index: {}]   ;;  %s2297_s3 = inlined_call_operand.vmem [shape: bf16[1,64,64], index: 3, kind: input, shape index: {}]   ;;  %s2298_s4 = inlined_call_operand.vmem [shape: f32[1,8,64], index: 4, kind: input, shape index: {}]   ;;  %s2299_s5 = inlined_call_operand.vmem [shape: f32[1,2,3,64], index: 5, kind: output, shape index: {}]  }
   0x1   :  { %s2012_s20 = smov 0  }
   0x2 LB: > { %s24_s21 = sadd.s32 1, %s1956_s19  ;;  %p1668_p0 = scmp.ge.s32.totalorder %s1960_s20, 1  ;;  %s1960_s20 = sphi %s2012_s20, %s15_s20   ;;  %s1956_s19 = sphi %s2010_s19, %s2301_s19   ;;  %s1952_s18 = sphi %s2008_s18, %s2300_s18  }
   0x3   : > { %p25_p1 = scmp.ge.s32.totalorder %s24_s21, 2  ;;  %p244_p2 = scmp.lt.s32.totalorder %s1960_s20, 3 }
   0x5   : > { %s2303_s21 = smov (%p25_p1, %s24_s21), 0  ;;  %p245_p3 = pnand %p1668_p0, %p244_p2 }
   0x6   : > { %v1888_v0 = vld [vmem:[%s2295_s1 + $0x4] ss:$8 sps:$4 sm:$0xff] (!%p245_p3)   ;;  %p298_p4 = scmp.lt.s32.totalorder (!%p245_p3), %s1952_s18, 1  ;;  %v1890_v1 = vld [vmem:[%s2295_s1] ss:$8 sps:$4 sm:$0xff] (!%p245_p3)   ;;  %v1962_v2 = vmov (!%p245_p3), 0   ;;  %v344_v11 = vlaneseq (!%p245_p3) }
   0x7   : > { %248 = sbr.rel (%p245_p3) target bundleno = 1943 (0x797), region = 40  ;;  %430 = vmatprep.mubr.bf16.mxu0 (!%p245_p3), %v1962_v2  ;;  %398 = vmatprep.subr.bf16.mxu0 (!%p245_p3), %v1888_v0  ;;  %v1891_v3 = vld [vmem:[%s2295_s1 + $0x14] ss:$8 sps:$4 sm:$0xff] (!%p245_p3)   ;;  %v1893_v4 = vld [vmem:[%s2295_s1 + $0x10] ss:$8 sps:$4 sm:$0xff] (!%p245_p3)   ;;  %vm394_vm0 = vcmask (!%p245_p3), 523264  }
   0x8   : > { %399 = vmatpush1.bf16.msra.mxu0 (!%p245_p3), %v1890_v1  ;;  %v1894_v5 = vld [vmem:[%s2295_s1 + $0x24] ss:$8 sps:$4 sm:$0xff] (!%p245_p3)   ;;  %v1896_v6 = vld [vmem:[%s2295_s1 + $0x20] ss:$8 sps:$4 sm:$0xff] (!%p245_p3)   ;;  %v1897_v7 = vld [vmem:[%s2295_s1 + $0x34] ss:$8 sps:$4 sm:$0xff] (!%p245_p3)  }
   0x9   : > { %400 = vmatprep.subr.bf16.mxu0 (!%p245_p3), %v1891_v3  ;;  %v1899_v8 = vld [vmem:[%s2295_s1 + $0x30] ss:$8 sps:$4 sm:$0xff] (!%p245_p3)   ;;  %v2063_v12 = vshrl.u32 (!%p245_p3), %v344_v11, 7  ;;  %v342_v14 = vld [vmem:[%s2296_s2] sm:$0x3] (!%p245_p3)  ;;  %s1963_s23 = smov (!%p245_p3), 56  }
   0xa   : > { %s1964_s24 = smov (!%p245_p3), 104   ;;  %v1965_v23 = vmov (!%p245_p3), 0.0   ;;  %s1966_s25 = smov (!%p245_p3), 32   ;;  %vm1968_vm1 = vmmov (!%p245_p3), 0   ;;  %vm457_vm2 = vcmask (!%p245_p3), 64512   ;;  %vm985_vm3 = vcmask (!%p245_p3), 1040384  }
   0xb   : > { %v346_v13 = vsub.s32 (!%p245_p3), 0, %v2063_v12  ;;  %v350_v18 = vsub.s32 (!%p245_p3), 1, %v2063_v12  ;;  %1740 = vmatprep.subr.bf16.mxu1 (!%p245_p3), %v1965_v23  ;;  %s1967_s26 = smov (!%p245_p3), 80   ;;  %1742 = vmatprep.mubr.msk.bf16.mxu1 (!%p245_p3), %vm1968_vm1, %v1965_v23  ;;  %s1969_s27 = smov (!%p245_p3), 8   ;;  %vm986_vm4 = vcmask (!%p245_p3), 1041408   ;;  %v1973_v62 = vmov (!%p245_p3), 65535  }
   0xc   : > { %401 = vmatpush1.bf16.msra.mxu0 (!%p245_p3), %v1893_v4  ;;  %s1970_s28 = smov (!%p245_p3), 88   ;;  %s1971_s29 = smov (!%p245_p3), 112   ;;  %v987_v63 = vsel (!%p245_p3), %vm985_vm3, 4294967295, %v1973_v62  ;;  %vm882_vm5 = vcmask (!%p245_p3), 18432   ;;  %vm981_vm6 = vcmask (!%p245_p3), 23552   ;;  %vm1397_vm7 = vcmask (!%p245_p3), 130048  }
   0xd   : > { %402 = vmatprep.subr.bf16.mxu0 (!%p245_p3), %v1894_v5  ;;  %v347_v15 = vrot.slane (!%p245_p3), %v342_v14, %v346_v13  ;;  %v351_v22 = vrot.slane (!%p245_p3), %v342_v14, %v350_v18  ;;  %s1972_s30 = smov (!%p245_p3), 120   ;;  %v2143_v2 = vsel (!%p245_p3), %vm986_vm4, %v987_v63, 0  ;;  %s1974_s6 = smov (!%p245_p3), 16   ;;  %vm1399_vm8 = vcmask (!%p245_p3), 195584  }
   0xe   : > { %s2305_s18 = smov (!%p298_p4, %s1952_s18), 1  ;;  %s1975_s7 = smov 24   ;;  %vm1401_vm9 = vcmask 261120   ;;  %vm1403_vm10 = vcmask 326656   ;;  %vm1405_vm11 = vcmask 392192   ;;  %vm1407_vm12 = vcmask 457728  }
   0xf   : > { %s1669_s9 = sshll.u32 %s2305_s18, 2  ;;  %s1976_s15 = smov 48   ;;  %vm1490_vm13 = vcmask 518144  }
  0x10   : > { %s303_s14 = scalar_lea.vmem %s2294_s0, %s1669_s9  ;;  %403 = vmatpush1.bf16.msra.mxu0 %v1896_v6  ;;  %s1977_s22 = smov 40  }
  0x11   : > { %v2058_v9 = vld [vmem:[%s303_s14] sm:$0x7]  ;;  %404 = vmatprep.subr.bf16.mxu0 %v1897_v7 }
  0x12   : > { %v333_v10 = vpack.c.bf16 %v2058_v9, %v2058_v9 }
  0x14   : > { %405 = vmatpush1.bf16.msra.mxu0 %v1899_v8 }
  0x15   : > { %1764 = vmatprep.subr.bf16.mxu0 %v1965_v23 }
  0x17   : > { %1679 = vmatmul.mubr.msk.bf16.vlgmr.msra.gmra.mrb[0].mxu0 %vm394_vm0, %v333_v10 }
  0x18   : > { %1766 = vmatprep.mubr.msk.bf16.mxu0 %vm1968_vm1, %v1965_v23 }
  0xea   : > { %v432_v16 = vpop.f32.mrb[0].mxu0 }
  0xeb   : > { %v433_v17 = vadd.f32 %v432_v16, %v347_v15  ;;  %v434_v19 = vpop.f32.mrb[1].mxu0 }
  0xec   : > { %v436_v20 = vpop.f32.mrb[2].mxu0  ;;  %v435_v24 = vadd.f32 %v434_v19, %v351_v22 }
  0xed   : > { %v437_v21 = vpop.f32.mrb[3].mxu0  ;;  %446 = vrot.lane.b32.xlu1 %v433_v17, %s1963_s23  ;;  %440 = vrot.lane.b32.xlu0 %v433_v17, %s1964_s24  ;;  %v482_v25 = vpack.c.bf16 %v433_v17, %v433_v17  ;;  %v466_v44 = vmul.f32 0.35355338, %v433_v17 }
  0xef   : > { %v474_v45 = vpack.c.bf16 %v466_v44, %v466_v44 }
  0xf1   : > { %449 = vrot.lane.b32.xlu1 %v433_v17, %s1966_s25  ;;  %443 = vrot.lane.b32.xlu0 %v433_v17, %s1967_s26 }
  0xf5   : > { %455 = vrot.lane.b32.xlu1 %v435_v24, %s1969_s27  ;;  %453 = vrot.lane.b32.xlu0 %v433_v17, %s1969_s27 }
  0xf9   : > { %463 = vrot.lane.b32.xlu1 %v435_v24, %s1970_s28  ;;  %460 = vrot.lane.b32.xlu0 %v435_v24, %s1971_s29 }
  0xfd   : > { %491 = vrot.lane.b32.xlu0 %v482_v25, %s1972_s30 }
 0x15f   : > { %v2085_v26 = vpop.permute.xlu1 %446  ;;  %v441_v27 = vpop.permute.xlu0 %440 }
 0x160   : > { %v483_v28 = vpack.c.bf16 %v441_v27, %v441_v27  ;;  %v2089_v31 = vpack.c.bf16 %v2085_v26, %v2085_v26  ;;  %v467_v48 = vmul.f32 0.35355338, %v441_v27  ;;  %v469_v0 = vmul.f32 0.35355338, %v2085_v26 }
 0x162   : > { %540 = vrot.lane.b32.xlu1 %v483_v28, %s1972_s30  ;;  %v475_v50 = vpack.c.bf16 %v467_v48, %v467_v48  ;;  %v477_v5 = vpack.c.bf16 %v469_v0, %v469_v0 }
 0x163   : > { %v450_v29 = vpop.permute.xlu1 %449  ;;  %v444_v30 = vpop.permute.xlu0 %443 }
 0x164   : > { %v2091_v32 = vpack.c.bf16 %v444_v30, %v444_v30  ;;  %v2095_v35 = vpack.c.bf16 %v450_v29, %v450_v29  ;;  %v470_v54 = vmul.f32 0.35355338, %v450_v29  ;;  %v468_v55 = vmul.f32 0.35355338, %v444_v30 }
 0x166   : > { %638 = vrot.lane.b32.xlu1 %v2089_v31, %s1972_s30  ;;  %589 = vrot.lane.b32.xlu0 %v2091_v32, %s1972_s30  ;;  %v478_v58 = vpack.c.bf16 %v470_v54, %v470_v54  ;;  %v476_v59 = vpack.c.bf16 %v468_v55, %v468_v55 }
 0x167   : > { %v456_v33 = vpop.permute.xlu1 %455  ;;  %v454_v34 = vpop.permute.xlu0 %453 }
 0x168   : > { %v2098_v36 = vsel %vm457_vm2, %v454_v34, %v456_v33 }
 0x169   : > { %v2102_v37 = vpack.c.bf16 %v2098_v36, %v2098_v36  ;;  %v471_v10 = vmul.f32 0.35355338, %v2098_v36 }
 0x16a   : > { %687 = vrot.lane.b32.xlu0 %v2095_v35, %s1972_s30 }
 0x16b   : > { %v2105_v38 = vpop.permute.xlu1 %463  ;;  %736 = vrot.lane.b32.xlu1 %v2102_v37, %s1972_s30  ;;  %v461_v39 = vpop.permute.xlu0 %460  ;;  %v479_v14 = vpack.c.bf16 %v471_v10, %v471_v10 }
 0x16c   : > { %v2110_v40 = vpack.c.bf16 %v2105_v38, %v2105_v38  ;;  %v2112_v41 = vpack.c.bf16 %v461_v39, %v461_v39  ;;  %v472_v1 = vmul.f32 0.35355338, %v461_v39  ;;  %v473_v16 = vmul.f32 0.35355338, %v2105_v38 }
 0x16e   : > { %785 = vrot.lane.b32.xlu0 %v2112_v41, %s1972_s30  ;;  %v480_v6 = vpack.c.bf16 %v472_v1, %v472_v1  ;;  %v481_v19 = vpack.c.bf16 %v473_v16, %v473_v16 }
 0x16f   : > { %834 = vrot.lane.b32.xlu1 %v2110_v40, %s1972_s30  ;;  %v492_v42 = vpop.permute.xlu0 %491 }
 0x170   : > { %v497_v43 = vsel %vm457_vm2, %v492_v42, 0 }
 0x171   : > { %1741 = vmatpush3.bf16.xpose.msra.mxu1 %v497_v43 }
 0x172   : > { %979 = vrot.lane.b32.xlu0 %v482_v25, %s1971_s29  ;;  %1746 = vmatprep.subr.bf16.mxu1 %v1965_v23 }
 0x173   : > { %1032 = vrot.lane.b32.xlu1 %v483_v28, %s1971_s29 }
 0x178   : > { %1743 = vmatmul.mubr.msk.bf16.vlgmr.msra.gmra.mrb[0].mxu1 %vm457_vm2, %v474_v45 }
 0x179   : > { %1748 = vmatprep.mubr.msk.bf16.mxu1 %vm1968_vm1, %v1965_v23 }
 0x1d4   : > { %v541_v46 = vpop.permute.xlu1 %540 }
 0x1d5   : > { %v546_v47 = vsel %vm457_vm2, %v541_v46, 0 }
 0x1d6   : > { %1747 = vmatpush3.bf16.xpose.msra.mxu1 %v546_v47 }
 0x1d7   : > { %1752 = vmatprep.subr.bf16.mxu1 %v1965_v23 }
 0x1d8   : > { %v590_v49 = vpop.permute.xlu0 %589  ;;  %v639_v56 = vpop.permute.xlu1 %638 }
 0x1d9   : > { %v595_v52 = vsel %vm457_vm2, %v590_v49, 0  ;;  %v644_v60 = vsel %vm457_vm2, %v639_v56, 0 }
 0x1dc   : > { %v688_v51 = vpop.permute.xlu0 %687 }
 0x1dd   : > { %v693_v53 = vsel %vm457_vm2, %v688_v51, 0  ;;  %1749 = vmatmul.mubr.msk.bf16.vlgmr.msra.gmra.mrb[4].mxu1 %vm457_vm2, %v475_v50  ;;  %v737_v4 = vpop.permute.xlu1 %736 }
 0x1de   : > { %1753 = vmatpush3.bf16.xpose.msra.mxu1 %v595_v52  ;;  %1765 = vmatpush3.bf16.xpose.msra.mxu0 %v693_v53  ;;  %v742_v8 = vsel %vm457_vm2, %v737_v4, 0 }
 0x1df   : > { %1754 = vmatprep.mubr.msk.bf16.mxu1 %vm1968_vm1, %v1965_v23  ;;  %1758 = vmatprep.subr.bf16.mxu1 %v1965_v23 }
 0x1e0   : > { %1776 = vmatprep.subr.bf16.mxu0 %v1965_v23  ;;  %v786_v57 = vpop.permute.xlu0 %785 }
 0x1e1   : > { %v791_v61 = vsel %vm457_vm2, %v786_v57, 0  ;;  %v835_v11 = vpop.permute.xlu1 %834 }
 0x1e2   : > { %v840_v15 = vsel %vm457_vm2, %v835_v11, 0 }
 0x1e4   : > { %v980_v3 = vpop.permute.xlu0 %979 }
 0x1e5   : > { %1755 = vmatmul.mubr.msk.bf16.vlgmr.msra.gmra.mrb[8].mxu1 %vm457_vm2, %v476_v59  ;;  %1767 = vmatmul.mubr.msk.bf16.vlgmr.msra.gmra.mrb[4].mxu0 %vm457_vm2, %v478_v58  ;;  %v990_v7 = vand.u32 %v2143_v2, %v980_v3  ;;  %v1033_v17 = vpop.permute.xlu1 %1032 }
 0x1e6   : > { %1759 = vmatpush3.bf16.xpose.msra.mxu1 %v644_v60  ;;  %1777 = vmatpush3.bf16.xpose.msra.mxu0 %v791_v61  ;;  %v1038_v20 = vand.u32 %v1033_v17, %v2143_v2 }
 0x1e7   : > { %1760 = vmatprep.mubr.msk.bf16.mxu1 %vm1968_vm1, %v1965_v23  ;;  %1778 = vmatprep.mubr.msk.bf16.mxu0 %vm1968_vm1, %v1965_v23 }
 0x1e8   : > { %1770 = vmatprep.subr.bf16.mxu1 %v1965_v23  ;;  %1788 = vmatprep.subr.bf16.mxu0 %v1965_v23 }
 0x1ed   : > { %1761 = vmatmul.mubr.msk.bf16.vlgmr.msra.gmra.mrb[12].mxu1 %vm457_vm2, %v477_v5  ;;  %1779 = vmatmul.mubr.msk.bf16.vlgmr.msra.gmra.mrb[8].mxu0 %vm457_vm2, %v480_v6 }
 0x1ee   : > { %1771 = vmatpush3.bf16.xpose.msra.mxu1 %v742_v8  ;;  %1789 = vmatpush3.bf16.msra.mxu0 %v990_v7 }
 0x1ef   : > { %1772 = vmatprep.mubr.msk.bf16.mxu1 %vm1968_vm1, %v1965_v23  ;;  %1782 = vmatprep.subr.bf16.mxu1 %v1965_v23 }
 0x1f0   : > { %1790 = vmatprep.mubr.msk.bf16.mxu0 %vm1968_vm1, %v1965_v23  ;;  %1800 = vmatprep.subr.bf16.mxu0 %v1965_v23 }
 0x1f5   : > { %1773 = vmatmul.mubr.msk.bf16.vlgmr.msra.gmra.mrb[16].mxu1 %vm457_vm2, %v479_v14 }
 0x1f6   : > { %1783 = vmatpush3.bf16.xpose.msra.mxu1 %v840_v15  ;;  %1784 = vmatprep.mubr.msk.bf16.mxu1 %vm1968_vm1, %v1965_v23 }
 0x1f7   : > { %1794 = vmatprep.subr.bf16.mxu1 %v1965_v23 }
 0x1fd   : > { %1785 = vmatmul.mubr.msk.bf16.vlgmr.msra.gmra.mrb[20].mxu1 %vm457_vm2, %v481_v19 }
 0x1fe   : > { %1795 = vmatpush3.bf16.msra.mxu1 %v1038_v20  ;;  %1796 = vmatprep.mubr.msk.bf16.mxu1 %vm1968_vm1, %v1965_v23 }
 0x1ff   : > { %1806 = vmatprep.subr.bf16.mxu1 %v1965_v23 }
 0x24b   : > { %v533_v21 = vpop.f32.mrb[0].mxu1 }
 0x24c   : > { %v1744_v22 = vpop.f32.mrb[1].mxu1  ;;  %v883_v24 = vsel %vm882_vm5, %v533_v21, -inf }
 0x24d   : > { %884 = vmax.xlane.f32.xlu0 %v883_v24  ;;  %v536_v25 = vpop.f32.mrb[2].mxu1 }
 0x24e   : > { %v1745_v26 = vpop.f32.mrb[3].mxu1 }
 0x2b0   : > { %v582_v27 = vpop.f32.mrb[4].mxu1 }
 0x2b1   : > { %v1750_v28 = vpop.f32.mrb[5].mxu1  ;;  %v886_v29 = vsel %vm882_vm5, %v582_v27, -inf }
 0x2b2   : > { %887 = vmax.xlane.f32.xlu1 %v886_v29  ;;  %v585_v30 = vpop.f32.mrb[6].mxu1 }
 0x2b3   : > { %v1751_v33 = vpop.f32.mrb[7].mxu1 }
 0x2b8   : > { %v631_v34 = vpop.f32.mrb[8].mxu1  ;;  %v729_v36 = vpop.f32.mrb[4].mxu0 }
 0x2b9   : > { %v1756_v38 = vpop.f32.mrb[9].mxu1  ;;  %v1768_v39 = vpop.f32.mrb[5].mxu0  ;;  %v895_v42 = vsel %vm882_vm5, %v729_v36, -inf  ;;  %v889_v43 = vsel %vm882_vm5, %v631_v34, -inf }
 0x2ba   : > { %v732_v44 = vpop.f32.mrb[6].mxu0  ;;  %896 = vmax.xlane.f32.xlu1 %v895_v42  ;;  %890 = vmax.xlane.f32.xlu0 %v889_v43  ;;  %v634_v45 = vpop.f32.mrb[10].mxu1 }
 0x2bb   : > { %v1757_v46 = vpop.f32.mrb[11].mxu1  ;;  %v1769_v47 = vpop.f32.mrb[7].mxu0 }
 0x2c0   : > { %v680_v48 = vpop.f32.mrb[12].mxu1  ;;  %v827_v49 = vpop.f32.mrb[8].mxu0 }
 0x2c1   : > { %v1762_v50 = vpop.f32.mrb[13].mxu1  ;;  %v1780_v51 = vpop.f32.mrb[9].mxu0  ;;  %v901_v52 = vsel %vm882_vm5, %v827_v49, -inf  ;;  %v892_v53 = vsel %vm882_vm5, %v680_v48, -inf }
 0x2c2   : > { %v830_v54 = vpop.f32.mrb[10].mxu0  ;;  %902 = vmax.xlane.f32.xlu1 %v901_v52  ;;  %893 = vmax.xlane.f32.xlu0 %v892_v53  ;;  %v683_v55 = vpop.f32.mrb[14].mxu1 }
 0x2c3   : > { %v1763_v56 = vpop.f32.mrb[15].mxu1  ;;  %v1781_v57 = vpop.f32.mrb[11].mxu0 }
 0x2c8   : > { %v2173_v58 = vpop.f32.mrb[16].mxu1 }
 0x2c9   : > { %v1774_v59 = vpop.f32.mrb[17].mxu1  ;;  %v898_v60 = vsel %vm882_vm5, %v2173_v58, -inf }
 0x2ca   : > { %899 = vmax.xlane.f32.xlu0 %v898_v60  ;;  %v781_v61 = vpop.f32.mrb[18].mxu1 }
 0x2cb   : > { %v1775_v62 = vpop.f32.mrb[19].mxu1 }
 0x2d0   : > { %v876_v63 = vpop.f32.mrb[20].mxu1 }
 0x2d1   : > { %v1786_v0 = vpop.f32.mrb[21].mxu1  ;;  %v904_v1 = vsel %vm882_vm5, %v876_v63, -inf }
 0x2d2   : > { %905 = vmax.xlane.f32.xlu0 %v904_v1  ;;  %v879_v3 = vpop.f32.mrb[22].mxu1 }
 0x2d3   : > { %1128 = vrot.lane.b32.xlu1 %v2089_v31, %s1971_s29  ;;  %v1787_v4 = vpop.f32.mrb[23].mxu1 }
 0x2da   : > { %v885_v5 = vpop.xlane.xlu0 %884 }
 0x2db   : > { %v907_v6 = vsub.f32 %v533_v21, %v885_v5 }
 0x2dd   : > { %v915_v7 = vmul.f32 1.442695, %v907_v6 }
 0x2df   : > { %1904 = vpow2.f32 %v915_v7 }
 0x2e8   : > { %1080 = vrot.lane.b32.xlu0 %v2091_v32, %s1971_s29 }
 0x2e9   : > { %v1905_v8 = vpop.eup %1904 }
 0x2ea   : > { %v931_v10 = vsel %vm882_vm5, %v1905_v8, 0.0 }
 0x2f7   : > { %932 = vadd.xlane.f32.xlu1 %v931_v10 }
 0x33f   : > { %v888_v11 = vpop.xlane.xlu1 %887 }
 0x340   : > { %v908_v14 = vsub.f32 %v582_v27, %v888_v11 }
 0x342   : > { %v917_v15 = vmul.f32 1.442695, %v908_v14 }
 0x344   : > { %1906 = vpow2.f32 %v917_v15 }
 0x347   : > { %v897_v16 = vpop.xlane.xlu1 %896  ;;  %v891_v17 = vpop.xlane.xlu0 %890 }
 0x348   : > { %v911_v19 = vsub.f32 %v729_v36, %v897_v16  ;;  %v909_v31 = vsub.f32 %v631_v34, %v891_v17 }
 0x34a   : > { %v923_v20 = vmul.f32 1.442695, %v911_v19  ;;  %v919_v22 = vmul.f32 1.442695, %v909_v31 }
 0x34c   : > { %1908 = vpow2.f32 %v923_v20 }
 0x34d   : > { %1910 = vpow2.f32 %v919_v22 }
 0x34e   : > { %v1907_v21 = vpop.eup %1906 }
 0x34f   : > { %v903_v24 = vpop.xlane.xlu1 %902  ;;  %v894_v32 = vpop.xlane.xlu0 %893  ;;  %v934_v25 = vsel %vm882_vm5, %v1907_v21, 0.0 }
 0x350   : > { %v913_v26 = vsub.f32 %v827_v49, %v903_v24  ;;  %v910_v28 = vsub.f32 %v680_v48, %v894_v32  ;;  %935 = vadd.xlane.f32.xlu0 %v934_v25 }
 0x352   : > { %v927_v29 = vmul.f32 1.442695, %v913_v26  ;;  %v921_v27 = vmul.f32 1.442695, %v910_v28 }
 0x353   : > { %v1129_v47 = vpop.permute.xlu1 %1128 }
 0x354   : > { %1912 = vpow2.f32 %v927_v29  ;;  %v1134_v1 = vand.u32 %v1129_v47, %v2143_v2 }
 0x355   : > { %1914 = vpow2.f32 %v921_v27 }
 0x356   : > { %v2184_v30 = vpop.eup %1908 }
 0x357   : > { %v943_v33 = vsel %vm882_vm5, %v2184_v30, 0.0  ;;  %v1911_v34 = vpop.eup %1910  ;;  %v900_v44 = vpop.xlane.xlu0 %899 }
 0x358   : > { %944 = vadd.xlane.f32.xlu1 %v943_v33  ;;  %v937_v36 = vsel %vm882_vm5, %v1911_v34, 0.0  ;;  %v912_v48 = vsub.f32 %v2173_v58, %v900_v44 }
 0x35a   : > { %v925_v50 = vmul.f32 1.442695, %v912_v48 }
 0x35c   : > { %938 = vadd.xlane.f32.xlu1 %v937_v36 }
 0x35e   : > { %v2189_v38 = vpop.eup %1912 }
 0x35f   : > { %v1915_v39 = vpop.eup %1914  ;;  %v949_v42 = vsel %vm882_vm5, %v2189_v38, 0.0  ;;  %v906_v45 = vpop.xlane.xlu0 %905 }
 0x360   : > { %950 = vadd.xlane.f32.xlu1 %v949_v42  ;;  %v940_v43 = vsel %vm882_vm5, %v1915_v39, 0.0  ;;  %v914_v46 = vsub.f32 %v876_v63, %v906_v45 }
 0x361   : > { %941 = vadd.xlane.f32.xlu0 %v940_v43 }
 0x362   : > { %v929_v49 = vmul.f32 1.442695, %v914_v46 }
 0x363   : > { %v1081_v53 = vpop.permute.xlu0 %1080 }
 0x364   : > { %v1086_v56 = vand.u32 %v1081_v53, %v2143_v2 }
 0x371   : > { %1224 = vrot.lane.b32.xlu1 %v2102_v37, %s1971_s29 }
 0x377   : > { %1176 = vrot.lane.b32.xlu0 %v2095_v35, %s1971_s29 }
 0x384   : > { %v933_v51 = vpop.xlane.xlu1 %932 }
 0x385   : > { %1916 = vrcp.f32 %v933_v51 }
 0x386   : > { %1918 = vpow2.f32 %v929_v49 }
 0x387   : > { %1920 = vpow2.f32 %v925_v50 }
 0x38f   : > { %v1917_v52 = vpop.eup %1916 }
 0x390   : > { %v963_v54 = vmul.f32 %v1917_v52, %v1905_v8  ;;  %v2199_v55 = vpop.eup %1918 }
 0x391   : > { %v2201_v37 = vpop.eup %1920  ;;  %v952_v57 = vsel %vm882_vm5, %v2199_v55, 0.0 }
 0x392   : > { %v971_v35 = vpack.c.bf16 %v963_v54, %v963_v54  ;;  %v946_v58 = vsel %vm882_vm5, %v2201_v37, 0.0 }
 0x394   : > { %1791 = vmatmul.mubr.msk.bf16.vlgmr.msra.gmra.mrb[12].mxu0 %vm981_vm6, %v971_v35 }
 0x395   : > { %1801 = vmatpush3.bf16.msra.mxu0 %v1086_v56  ;;  %953 = vadd.xlane.f32.xlu1 %v952_v57  ;;  %v1900_v57 = vld [vmem:[%s2297_s3] sm:$0xff]  }
 0x396   : > { %947 = vadd.xlane.f32.xlu0 %v946_v58  ;;  %1802 = vmatprep.mubr.msk.bf16.mxu0 %vm1968_vm1, %v1965_v23  ;;  %v1901_v58 = vld [vmem:[%s2297_s3 + $0x8] sm:$0xff]  }
 0x397   : > { %1812 = vmatprep.subr.bf16.mxu0 %v1965_v23 }
 0x3a6   : > { %1320 = vrot.lane.b32.xlu1 %v2110_v40, %s1971_s29 }
 0x3ac   : > { %1272 = vrot.lane.b32.xlu0 %v2112_v41, %s1971_s29 }
 0x3dd   : > { %v936_v59 = vpop.xlane.xlu0 %935 }
 0x3de   : > { %1922 = vrcp.f32 %v936_v59  ;;  %v1902_v59 = vld [vmem:[%s2297_s3 + $0x10] sm:$0xff]  }
 0x3e5   : > { %v945_v60 = vpop.xlane.xlu1 %944 }
 0x3e8   : > { %v1923_v61 = vpop.eup %1922 }
 0x3e9   : > { %v964_v62 = vmul.f32 %v1923_v61, %v1907_v21  ;;  %v939_v63 = vpop.xlane.xlu1 %938 }
 0x3ea   : > { %1924 = vrcp.f32 %v939_v63 }
 0x3eb   : > { %v972_v0 = vpack.c.bf16 %v964_v62, %v964_v62  ;;  %1926 = vrcp.f32 %v945_v60  ;;  %v1903_v62 = vld [vmem:[%s2297_s3 + $0x18] sm:$0xff]  }
 0x3ed   : > { %1797 = vmatmul.mubr.msk.bf16.vlgmr.msra.gmra.mrb[24].mxu1 %vm981_vm6, %v972_v0  ;;  %v951_v41 = vpop.xlane.xlu1 %950 }
 0x3ee   : > { %1807 = vmatpush3.bf16.msra.mxu1 %v1134_v1  ;;  %v942_v3 = vpop.xlane.xlu0 %941  ;;  %1808 = vmatprep.mubr.msk.bf16.mxu1 %vm1968_vm1, %v1965_v23 }
 0x3ef   : > { %1928 = vrcp.f32 %v942_v3  ;;  %1818 = vmatprep.subr.bf16.mxu1 %v1965_v23 }
 0x3f0   : > { %1930 = vrcp.f32 %v951_v41 }
 0x3f1   : > { %v1225_v14 = vpop.permute.xlu1 %1224 }
 0x3f2   : > { %v1177_v5 = vpop.permute.xlu0 %1176  ;;  %v1230_v17 = vand.u32 %v1225_v14, %v2143_v2 }
 0x3f3   : > { %v1182_v8 = vand.u32 %v1177_v5, %v2143_v2 }
 0x3f4   : > { %v1925_v40 = vpop.eup %1924 }
 0x3f5   : > { %v965_v4 = vmul.f32 %v1925_v40, %v1911_v34  ;;  %v1927_v7 = vpop.eup %1926 }
 0x3f6   : > { %v967_v15 = vmul.f32 %v1927_v7, %v2184_v30 }
 0x3f7   : > { %v973_v6 = vpack.c.bf16 %v965_v4, %v965_v4 }
 0x3f8   : > { %v975_v19 = vpack.c.bf16 %v967_v15, %v967_v15 }
 0x3f9   : > { %v1929_v10 = vpop.eup %1928  ;;  %1803 = vmatmul.mubr.msk.bf16.vlgmr.msra.gmra.mrb[16].mxu0 %vm981_vm6, %v973_v6 }
 0x3fa   : > { %v966_v11 = vmul.f32 %v1929_v10, %v1915_v39  ;;  %1813 = vmatpush3.bf16.msra.mxu0 %v1182_v8  ;;  %1814 = vmatprep.mubr.msk.bf16.mxu0 %vm1968_vm1, %v1965_v23  ;;  %v1931_v20 = vpop.eup %1930 }
 0x3fb   : > { %1824 = vmatprep.subr.bf16.mxu0 %v1965_v23  ;;  %v969_v21 = vmul.f32 %v1931_v20, %v2189_v38 }
 0x3fc   : > { %v974_v16 = vpack.c.bf16 %v966_v11, %v966_v11 }
 0x3fd   : > { %v977_v25 = vpack.c.bf16 %v969_v21, %v969_v21 }
 0x3fe   : > { %1809 = vmatmul.mubr.msk.bf16.vlgmr.msra.gmra.mrb[28].mxu1 %vm981_vm6, %v974_v16 }
 0x3ff   : > { %1819 = vmatpush3.bf16.msra.mxu1 %v1230_v17  ;;  %1820 = vmatprep.mubr.msk.bf16.mxu1 %vm1968_vm1, %v1965_v23 }
 0x400   : > { %1830 = vmatprep.subr.bf16.mxu1 %v1965_v23 }
 0x401   : > { %1815 = vmatmul.mubr.msk.bf16.vlgmr.msra.gmra.mrb[20].mxu0 %vm981_vm6, %v975_v19 }
 0x402   : > { %1826 = vmatprep.mubr.msk.bf16.mxu0 %vm1968_vm1, %v1965_v23 }
 0x422   : > { %v954_v22 = vpop.xlane.xlu1 %953 }
 0x423   : > { %v948_v31 = vpop.xlane.xlu0 %947 }
 0x424   : > { %1932 = vrcp.f32 %v948_v31 }
 0x425   : > { %1934 = vrcp.f32 %v954_v22 }
 0x426   : > { %v1321_v29 = vpop.permute.xlu1 %1320 }
 0x427   : > { %v1273_v24 = vpop.permute.xlu0 %1272  ;;  %v1326_v33 = vand.u32 %v1321_v29, %v2143_v2 }
 0x428   : > { %v1278_v32 = vand.u32 %v1273_v24, %v2143_v2 }
 0x42a   : > { %1825 = vmatpush3.bf16.msra.mxu0 %v1278_v32 }
 0x42b   : > { %1836 = vmatprep.subr.bf16.mxu0 %v1965_v23 }
 0x42d   : > { %1827 = vmatmul.mubr.msk.bf16.vlgmr.msra.gmra.mrb[24].mxu0 %vm981_vm6, %v977_v25  ;;  %v332_v25 = vld [vmem:[%s2298_s4] sm:$0xff] }
 0x42e   : > { %v1933_v26 = vpop.eup %1932  ;;  %1844 = vmatprep.mubr.msk.bf16.mxu0 %vm1968_vm1, %v1965_v23  ;;  %1837 = vmatpush3.bf16.msra.mxu0 %v1900_v57 }
 0x42f   : > { %v968_v28 = vmul.f32 %v1933_v26, %v2201_v37  ;;  %v1935_v30 = vpop.eup %1934  ;;  %1838 = vmatprep.subr.bf16.mxu0 %v1965_v23  ;;  %v1421_v26 = vrot.slane %v332_v25, %v346_v13 }
 0x430   : > { %v970_v34 = vmul.f32 %v1935_v30, %v2199_v55 }
 0x431   : > { %v976_v27 = vpack.c.bf16 %v968_v28, %v968_v28 }
 0x432   : > { %v978_v36 = vpack.c.bf16 %v970_v34, %v970_v34  ;;  %1839 = vmatpush3.bf16.msra.mxu0 %v1901_v58 }
 0x433   : > { %1821 = vmatmul.mubr.msk.bf16.vlgmr.msra.gmra.mrb[32].mxu1 %vm981_vm6, %v976_v27  ;;  %1840 = vmatprep.subr.bf16.mxu0 %v1965_v23 }
 0x434   : > { %1831 = vmatpush3.bf16.msra.mxu1 %v1326_v33  ;;  %1832 = vmatprep.mubr.msk.bf16.mxu1 %vm1968_vm1, %v1965_v23 }
 0x436   : > { %1841 = vmatpush3.bf16.msra.mxu0 %v1902_v59 }
 0x437   : > { %1842 = vmatprep.subr.bf16.mxu0 %v1965_v23 }
 0x43a   : > { %1843 = vmatpush3.bf16.msra.mxu0 %v1903_v62 }
 0x43b   : > { %1833 = vmatmul.mubr.msk.bf16.vlgmr.msra.gmra.mrb[36].mxu1 %vm981_vm6, %v978_v36 }
 0x467   : > { %v1026_v38 = vpop.f32.mrb[12].mxu0 }
 0x468   : > { %v1792_v39 = vpop.f32.mrb[13].mxu0 }
 0x469   : > { %v1029_v42 = vpop.f32.mrb[14].mxu0 }
 0x46a   : > { %v1793_v43 = vpop.f32.mrb[15].mxu0 }
 0x4c0   : > { %v1074_v44 = vpop.f32.mrb[24].mxu1 }
 0x4c1   : > { %1369 = vrot.lane.b32.xlu0 %v1074_v44, %s1969_s27  ;;  %v1798_v45 = vpop.f32.mrb[25].mxu1  ;;  %s329_s27 = scalar_lea.vmem %s2299_s5, %s1669_s9 }
 0x4c2   : > { %v1077_v2 = vpop.f32.mrb[26].mxu1 }
 0x4c3   : > { %v1799_v46 = vpop.f32.mrb[27].mxu1 }
 0x4c4   : > { %v1512_v46 = vsub.s32 2, %v2063_v12 }
 0x4cc   : > { %v1122_v47 = vpop.f32.mrb[16].mxu0 }
 0x4cd   : > { %1373 = vrot.lane.b32.xlu1 %v1122_v47, %s1974_s6  ;;  %v1804_v48 = vpop.f32.mrb[17].mxu0 }
 0x4ce   : > { %v1125_v49 = vpop.f32.mrb[18].mxu0  ;;  %v1513_v48 = vrot.slane %v332_v25, %v1512_v46 }
 0x4cf   : > { %v1805_v50 = vpop.f32.mrb[19].mxu0 }
 0x4d1   : > { %v1170_v51 = vpop.f32.mrb[28].mxu1 }
 0x4d2   : > { %1377 = vrot.lane.b32.xlu0 %v1170_v51, %s1975_s7  ;;  %v1810_v52 = vpop.f32.mrb[29].mxu1 }
 0x4d3   : > { %v1173_v53 = vpop.f32.mrb[30].mxu1 }
 0x4d4   : > { %v1811_v54 = vpop.f32.mrb[31].mxu1  ;;  %v1218_v55 = vpop.f32.mrb[20].mxu0 }
 0x4d5   : > { %1381 = vrot.lane.b32.xlu1 %v1218_v55, %s1966_s25  ;;  %v1816_v37 = vpop.f32.mrb[21].mxu0 }
 0x4d6   : > { %v1221_v35 = vpop.f32.mrb[22].mxu0 }
 0x4d7   : > { %v1817_v56 = vpop.f32.mrb[23].mxu0 }
 0x500   : > { %v1314_v60 = vpop.f32.mrb[24].mxu0 }
 0x501   : > { %1389 = vrot.lane.b32.xlu1 %v1314_v60, %s1976_s15  ;;  %v1828_v61 = vpop.f32.mrb[25].mxu0 }
 0x502   : > { %v1317_v63 = vpop.f32.mrb[26].mxu0 }
 0x503   : > { %v1829_v0 = vpop.f32.mrb[27].mxu0 }
 0x506   : > { %v1266_v1 = vpop.f32.mrb[32].mxu1 }
 0x507   : > { %1385 = vrot.lane.b32.xlu0 %v1266_v1, %s1977_s22  ;;  %v1822_v3 = vpop.f32.mrb[33].mxu1 }
 0x508   : > { %v1269_v40 = vpop.f32.mrb[34].mxu1 }
 0x509   : > { %v1823_v41 = vpop.f32.mrb[35].mxu1 }
 0x50e   : > { %v1362_v4 = vpop.f32.mrb[36].mxu1 }
 0x50f   : > { %1393 = vrot.lane.b32.xlu0 %v1362_v4, %s1963_s23  ;;  %v1834_v23 = vpop.f32.mrb[37].mxu1 }
 0x510   : > { %v1365_v5 = vpop.f32.mrb[38].mxu1 }
 0x511   : > { %v1835_v6 = vpop.f32.mrb[39].mxu1 }
 0x533   : > { %v1370_v7 = vpop.permute.xlu0 %1369 }
 0x534   : > { %v1396_v11 = vsel %vm457_vm2, %v1026_v38, %v1370_v7 }
 0x53f   : > { %v1374_v8 = vpop.permute.xlu1 %1373 }
 0x540   : > { %v1398_v15 = vsel %vm1397_vm7, %v1396_v11, %v1374_v8 }
 0x544   : > { %v1378_v10 = vpop.permute.xlu0 %1377 }
 0x545   : > { %v1400_v17 = vsel %vm1399_vm8, %v1398_v15, %v1378_v10 }
 0x547   : > { %v1382_v14 = vpop.permute.xlu1 %1381 }
 0x548   : > { %v1402_v19 = vsel %vm1401_vm9, %v1400_v17, %v1382_v14 }
 0x573   : > { %v1390_v20 = vpop.permute.xlu1 %1389 }
 0x579   : > { %v1386_v16 = vpop.permute.xlu0 %1385 }
 0x57a   : > { %v1404_v31 = vsel %vm1403_vm10, %v1402_v19, %v1386_v16 }
 0x57b   : > { %v1406_v22 = vsel %vm1405_vm11, %v1404_v31, %v1390_v20 }
 0x581   : > { %v1394_v21 = vpop.permute.xlu0 %1393 }
 0x582   : > { %v1408_v24 = vsel %vm1407_vm12, %v1406_v22, %v1394_v21 }
 0x583   : > { %v1409_v32 = vpack.c.bf16 %v1408_v24, %v1408_v24 }
 0x585   : > { %1845 = vmatmul.mubr.msk.bf16.vlgmr.msra.gmra.mrb[28].mxu0 %vm394_vm0, %v1409_v32 }
 0x658   : > { %v1483_v28 = vpop.f32.mrb[28].mxu0 }
 0x659   : > { %v1484_v29 = vadd.f32 %v1483_v28, %v1421_v26  ;;  %v1846_v27 = vpop.f32.mrb[29].mxu0 }
 0x65a   : > { %v1486_v30 = vpop.f32.mrb[30].mxu0 }
 0x65b   : > { %v1847_v33 = vpop.f32.mrb[31].mxu0  ;;  %v1489_v34 = vadd.f32 %v1484_v29, %v2058_v9  ;;  %v1508_v9 = vrot.slane %v332_v25, %v350_v18 }
 0x65d   : > { %v1491_v36 = vsel %vm1490_vm13, %v1489_v34, 0.0 }
 0x65e   : > { %1492 = vadd.xlane.f32.xlu1 %v1491_v36 }
 0x6eb   : > { %v1493_v38 = vpop.xlane.xlu1 %1492 }
 0x6ec   : > { %v1495_v39 = vmul.f32 0.015625, %v1493_v38 }
 0x6ee   : > { %v1496_v42 = vsub.f32 %v1489_v34, %v1495_v39 }
 0x6f0   : > { %v1497_v43 = vmul.f32 %v1496_v42, %v1496_v42 }
 0x6f2   : > { %v1498_v44 = vsel %vm1490_vm13, %v1497_v43, 0.0 }
 0x6f3   : > { %1499 = vadd.xlane.f32.xlu0 %v1498_v44 }
 0x780   : > { %v1500_v13 = vpop.xlane.xlu0 %1499 }
 0x781   : > { %v1501_v45 = vmul.f32 0.015625, %v1500_v13 }
 0x783   : > { %v1502_v2 = vadd.f32 1e-05, %v1501_v45 }
 0x785   : > { %1936 = vrsqrt.f32 %v1502_v2 }
 0x78f   : > { %v1937_v47 = vpop.eup %1936 }
 0x790   : > { %v1504_v49 = vmul.f32 %v1937_v47, %v1496_v42 }
 0x792   : > { %v1509_v50 = vmul.f32 %v1508_v9, %v1504_v49 }
 0x794   : > { %v1514_v51 = vadd.f32 %v1513_v48, %v1509_v50 }
 0x796   : > { %1515 = vst.msk [vmem:[%s329_s27] sm:$0x7] %vm1490_vm13, %v1514_v51 }
 0x797 PF: > { %s15_s20 = sadd.s32 1, %s1960_s20   ;;  %s2300_s18 = smov %s1956_s19 }
 0x798   : > { %p12_p5 = scmp.ge.s32.totalorder %s15_s20, 4   ;;  %s2301_s19 = smov %s2303_s21 }
 0x79a   :  { %14 = sbr.rel (!%p12_p5) target bundleno = 2 (0x2), region = 82 }

// kernel: epoch_cross_transformer.4
= control target key start
LH: loop header
LB: loop body
LE: loop exit
PB: predicated region body
PF: predicated region fallthrough
CT: control target
= control target key end

     0   :  { %s5783_s18 = smov 0   ;;  %s5785_s19 = smov 0   ;;  %s7344_s0 = inlined_call_operand.vmem [shape: f32[2,2,5,64], index: 0, kind: input, shape index: {}]   ;;  %s7345_s1 = inlined_call_operand.vmem [shape: bf16[2,64,192], index: 1, kind: input, shape index: {}]   ;;  %s7346_s2 = inlined_call_operand.vmem [shape: f32[2,1,192], index: 2, kind: input, shape index: {}]   ;;  %s7347_s3 = inlined_call_operand.vmem [shape: bf16[2,64,64], index: 3, kind: input, shape index: {}]   ;;  %s7348_s4 = inlined_call_operand.vmem [shape: f32[2,8,64], index: 4, kind: input, shape index: {}]   ;;  %s7349_s5 = inlined_call_operand.vmem [shape: f32[2,2,5,64], index: 5, kind: output, shape index: {}]  }
   0x1   :  { %s5787_s20 = smov 0  }
   0x2 LB: > { %s27_s21 = sadd.s32 1, %s5730_s19  ;;  %p5246_p0 = scmp.ge.s32.totalorder %s5734_s20, 1  ;;  %s5734_s20 = sphi %s5787_s20, %s15_s20   ;;  %s5730_s19 = sphi %s5785_s19, %s7502_s19   ;;  %s5726_s18 = sphi %s5783_s18, %s7501_s18  }
   0x3   : > { %p29_p1 = scmp.ge.s32.totalorder %s27_s21, 2  ;;  %p246_p2 = scmp.lt.s32.totalorder %s5734_s20, 3 }
   0x5   : > { %s7504_s21 = smov (%p29_p1, %s27_s21), 0  ;;  %p247_p3 = pnand %p5246_p0, %p246_p2 }
   0x7   : > { %250 = sbr.rel (%p247_p3) target bundleno = 2155 (0x86b), region = 40 }
   0xe   : > { %p301_p4 = scmp.lt.s32.totalorder %s5726_s18, 1  ;;  %v347_v0 = vlaneseq  ;;  %v5736_v1 = vmov 0   ;;  %v5737_v2 = vmov 1966171168   ;;  %vm559_vm0 = vcmask 523264   ;;  %s5738_s9 = smov 104  }
   0xf   : > { %595 = vmatprep.mubr.bf16.mxu0 %v5736_v1  ;;  %v345_v3 = vunpack.c.l.s4 %v5737_v2  ;;  %s5739_s10 = smov 80   ;;  %s5740_s11 = smov 56   ;;  %vm5747_vm1 = vmmov 0   ;;  %vm843_vm2 = vcmask 64512   ;;  %vm3399_vm3 = vcmask 1041408  }
  0x10   : > { %s7506_s18 = smov (!%p301_p4, %s5726_s18), 1  ;;  %v5804_v5 = vshrl.u32 %v347_v0, 7  ;;  %s5741_s12 = smov 32   ;;  %vm3400_vm4 = vcmask 1042432   ;;  %vm3200_vm5 = vcmask 36864   ;;  %vm3395_vm6 = vcmask 39936  }
  0x11   : > { %s5309_s22 = sshll.u32 %s7506_s18, 6  ;;  %v346_v4 = vunpack.c.0.s8 %v345_v3  ;;  %s5308_s26 = sshll.u32 %s7506_s18, 4  ;;  %vm4224_vm7 = vcmask 130048   ;;  %vm4227_vm8 = vcmask 195584   ;;  %vm4230_vm9 = vcmask 261120  }
  0x12   : > { %7401 = vst [vmem:[#allocation2_spill] sm:$0xff] %v5804_v5  ;;  %s5809_s25 = scalar_lea.vmem %s7345_s1, %s5309_s22  ;;  %s308_s29 = scalar_lea.vmem %s7344_s0, %s5308_s26  ;;  %v5882_v50 = vsub.s32 0, %v5804_v5  ;;  %v5885_v52 = vsub.s32 1, %v5804_v5  ;;  %vm4233_vm10 = vcmask 326656   ;;  %vm4239_vm11 = vcmask 457728  }
  0x13   : > { %v5626_v6 = vld [vmem:[%s5809_s25 + $0x4] ss:$8 sps:$4 sm:$0xff]   ;;  %v5628_v7 = vld [vmem:[%s5809_s25] ss:$8 sps:$4 sm:$0xff]   ;;  %v5629_v8 = vld [vmem:[%s5809_s25 + $0x14] ss:$8 sps:$4 sm:$0xff]   ;;  %v5821_v9 = vsub.s32 %v346_v4, %v5804_v5 }
  0x14   : > { %563 = vmatprep.subr.bf16.mxu0 %v5626_v6  ;;  %v5631_v10 = vld [vmem:[%s5809_s25 + $0x10] ss:$8 sps:$4 sm:$0xff]   ;;  %v5632_v11 = vld [vmem:[%s5809_s25 + $0x24] ss:$8 sps:$4 sm:$0xff]   ;;  %v5634_v18 = vld [vmem:[%s5809_s25 + $0x20] ss:$8 sps:$4 sm:$0xff]  }
  0x15   : > { %564 = vmatpush1.bf16.msra.mxu0 %v5628_v7  ;;  %v339_v12 = vld [vmem:[%s308_s29] sm:$0x1f]  ;;  %v340_v13 = vld [vmem:[%s308_s29 + $0x8] sm:$0x1f]  ;;  %v5635_v19 = vld [vmem:[%s5809_s25 + $0x34] ss:$8 sps:$4 sm:$0xff]  }
  0x16   : > { %565 = vmatprep.subr.bf16.mxu0 %v5629_v8  ;;  %v343_v14 = vcombine.high %v339_v12, %v339_v12  ;;  %v350_v15 = vrot.slane %v339_v12, %v5821_v9  ;;  %v382_v16 = vcombine.high %v340_v13, %v340_v13  ;;  %v389_v17 = vrot.slane %v340_v13, %v5821_v9  ;;  %v5637_v28 = vld [vmem:[%s5809_s25 + $0x30] ss:$8 sps:$4 sm:$0xff]   ;;  %s5251_s30 = sshll.u32 %s7506_s18, 1  ;;  %s5742_s13 = smov 8  }
  0x17   : > { %s318_s8 = scalar_lea.vmem %s7346_s2, %s5251_s30  ;;  %7410 = vst [vmem:[#allocation11_spill] sm:$0xff] %v5882_v50  ;;  %7411 = vst [vmem:[#allocation12_spill] sm:$0xff] %v5885_v52  ;;  %s5743_s14 = smov 112   ;;  %vm4236_vm12 = vcmask 392192   ;;  %vm4641_vm13 = vcmask 517120   ;;  %vm5104_vm14 = vcmask 520192  }
  0x18   : > { %v357_v20 = vrot.slane %v343_v14, %v5821_v9  ;;  %v358_v21 = vcombine.high %v350_v15, %v350_v15  ;;  %v5831_v22 = vrot.slane %v350_v15, %v5821_v9  ;;  %v396_v23 = vrot.slane %v382_v16, %v5821_v9  ;;  %v507_v51 = vld [vmem:[%s318_s8] sm:$0x3]  ;;  %s5744_s15 = smov 88   ;;  %s5746_s16 = smov 120  }
  0x19   : > { %566 = vmatpush1.bf16.msra.mxu0 %v5631_v10  ;;  %v397_v24 = vcombine.high %v389_v17, %v389_v17  ;;  %v5835_v25 = vrot.slane %v389_v17, %v5821_v9  ;;  %v512_v53 = vrot.slane %v507_v51, %v5882_v50  ;;  %v516_v54 = vrot.slane %v507_v51, %v5885_v52  ;;  %s5749_s17 = smov 16   ;;  %s5750_s22 = smov 24  }
  0x1a   : > { %567 = vmatprep.subr.bf16.mxu0 %v5632_v11  ;;  %7402 = vst [vmem:[#allocation3_spill] sm:$0xff] %v5831_v22  ;;  %v5838_v26 = vrot.slane %v357_v20, %v5821_v9  ;;  %v5841_v27 = vrot.slane %v358_v21, %v5821_v9  ;;  %v5845_v29 = vrot.slane %v396_v23, %v5821_v9  ;;  %s5751_s23 = smov 40   ;;  %s5752_s24 = smov 48  }
  0x1b   : > { %7403 = vst [vmem:[#allocation4_spill] sm:$0xff] %v5835_v25  ;;  %v5848_v30 = vrot.slane %v397_v24, %v5821_v9  ;;  %v5852_v31 = vcombine.high %v5835_v25, %v5835_v25  ;;  %s5310_s25 = sshll.u32 %s7506_s18, 5  ;;  %s5254_s30 = sshll.u32 %s7506_s18, 3 }
  0x1c   : > { %7404 = vst [vmem:[#allocation5_spill] sm:$0xff] %v5838_v26  ;;  %7405 = vst [vmem:[#allocation6_spill] sm:$0xff] %v5841_v27  ;;  %v432_v32 = vcombine.low %v5831_v22, %v5841_v27  ;;  %v5257_v33 = vcombine.high %v5831_v22, %v5841_v27  ;;  %v434_v34 = vcombine.low %v5838_v26, %v5835_v25  ;;  %s323_s29 = scalar_lea.vmem %s7347_s3, %s5310_s25  ;;  %s327_s8 = scalar_lea.vmem %s7348_s4, %s5254_s30 }
  0x1d   : > { %568 = vmatpush1.bf16.msra.mxu0 %v5634_v18  ;;  %7406 = vst [vmem:[#allocation7_spill] sm:$0xff] %v5845_v29  ;;  %7407 = vst [vmem:[#allocation8_spill] sm:$0xff] %v5848_v30  ;;  %v5862_v35 = vcombine.high %v5848_v30, %v5848_v30  ;;  %v435_v36 = vcombine.low %v5848_v30, %v5852_v31 }
  0x1e   : > { %7408 = vst [vmem:[#allocation9_spill] sm:$0xff] %v5852_v31  ;;  %569 = vmatprep.subr.bf16.mxu0 %v5635_v19  ;;  %v442_v37 = vrot.slane %v432_v32, %v5821_v9  ;;  %v449_v38 = vrot.slane %v5257_v33, %v5821_v9  ;;  %v456_v39 = vrot.slane %v434_v34, %v5821_v9 }
  0x1f   : > { %7409 = vst [vmem:[#allocation10_spill] sm:$0xff] %v5862_v35  ;;  %v463_v40 = vrot.slane %v435_v36, %v5821_v9  ;;  %v481_v41 = vcombine.low %v5862_v35, %v5845_v29 }
  0x20   : > { %v464_v42 = vcombine.low %v442_v37, %v449_v38 }
  0x21   : > { %570 = vmatpush1.bf16.msra.mxu0 %v5637_v28  ;;  %v465_v43 = vcombine.low %v456_v39, %v463_v40  ;;  %v488_v44 = vrot.slane %v481_v41, %v5821_v9 }
  0x22   : > { %v472_v45 = vrot.slane %v464_v42, %v5821_v9 }
  0x23   : > { %v479_v46 = vrot.slane %v465_v43, %v5821_v9  ;;  %v495_v47 = vrot.slane %v488_v44, %v5821_v9 }
  0x25   : > { %v480_v48 = vcombine.low %v472_v45, %v479_v46  ;;  %v7350_v46 = vmov 0.0  }
  0x26   : > { %5381 = vmatprep.subr.bf16.mxu1 %v7350_v46  ;;  %5405 = vmatprep.subr.bf16.mxu0 %v7350_v46 }
  0x27   : > { %v498_v49 = vpack.c.bf16 %v495_v47, %v480_v48  ;;  %5383 = vmatprep.mubr.msk.bf16.mxu1 %vm5747_vm1, %v7350_v46 }
  0x29   : > { %5266 = vmatmul.mubr.msk.bf16.vlgmr.msra.gmra.mrb[0].mxu0 %vm559_vm0, %v498_v49 }
  0x2a   : > { %5407 = vmatprep.mubr.msk.bf16.mxu0 %vm5747_vm1, %v7350_v46 }
  0xfc   : > { %v597_v55 = vpop.f32.mrb[0].mxu0 }
  0xfd   : > { %v598_v56 = vadd.f32 %v597_v55, %v512_v53  ;;  %v599_v57 = vpop.f32.mrb[1].mxu0 }
  0xfe   : > { %v600_v58 = vadd.f32 %v599_v57, %v516_v54  ;;  %v601_v59 = vpop.f32.mrb[2].mxu0 }
  0xff   : > { %v602_v60 = vadd.f32 %v601_v59, %v512_v53  ;;  %v603_v61 = vpop.f32.mrb[3].mxu0 }
 0x100   : > { %v610_v62 = vcombine.low %v598_v56, %v600_v58  ;;  %v611_v63 = vcombine.high %v598_v56, %v600_v58  ;;  %v604_v0 = vadd.f32 %v603_v61, %v516_v54 }
 0x102   : > { %v618_v1 = vrot.slane %v610_v62, %v5821_v9  ;;  %v625_v2 = vrot.slane %v611_v63, %v5821_v9  ;;  %v660_v3 = vcombine.low %v602_v60, %v604_v0 }
 0x104   : > { %v5892_v4 = vrot.slane %v618_v1, %v5821_v9  ;;  %v627_v6 = vcombine.high %v625_v2, %v625_v2  ;;  %v5901_v8 = vrot.slane %v625_v2, %v5821_v9  ;;  %v626_v10 = vcombine.high %v618_v1, %v618_v1 }
 0x105   : > { %v667_v13 = vrot.slane %v660_v3, %v5821_v9 }
 0x106   : > { %693 = vrot.lane.b32.xlu0 %v5892_v4, %s5738_s9  ;;  %v5898_v7 = vcombine.high %v5892_v4, %v5892_v4  ;;  %v5906_v11 = vrot.slane %v627_v6, %v5821_v9  ;;  %v5913_v12 = vrot.slane %v626_v10, %v5821_v9  ;;  %v5924_v14 = vcombine.high %v5901_v8, %v5901_v8 }
 0x107   : > { %v5929_v15 = vrot.slane %v667_v13, %v5821_v9  ;;  %v668_v17 = vcombine.high %v667_v13, %v667_v13  ;;  %v1782_v41 = vrot.slane %v5901_v8, %v5821_v9  ;;  %v944_v35 = vmul.f32 0.35355338, %v5892_v4 }
 0x108   : > { %697 = vrot.lane.b32.xlu1 %v5898_v7, %s5738_s9  ;;  %v5987_v16 = vcombine.high %v5913_v12, %v5913_v12  ;;  %v5995_v18 = vcombine.high %v5906_v11, %v5906_v11  ;;  %v1760_v21 = vcombine.low %v5892_v4, %v5913_v12  ;;  %v5267_v23 = vcombine.high %v5892_v4, %v5913_v12 }
 0x109   : > { %v6000_v19 = vrot.slane %v668_v17, %v5821_v9  ;;  %v1799_v39 = vcombine.low %v5906_v11, %v5924_v14  ;;  %v1797_v48 = vrot.slane %v1782_v41, %v5821_v9  ;;  %v945_v30 = vmul.f32 0.35355338, %v5913_v12 }
 0x10a   : > { %701 = vrot.lane.b32.xlu0 %v5901_v8, %s5738_s9  ;;  %v1768_v32 = vrot.slane %v1760_v21, %v5821_v9  ;;  %v1775_v33 = vrot.slane %v5267_v23, %v5821_v9  ;;  %v1800_v36 = vcombine.low %v5995_v18, %v5929_v15  ;;  %v947_v31 = vmul.f32 0.35355338, %v5987_v16 }
 0x10b   : > { %v1807_v45 = vrot.slane %v1799_v39, %v5821_v9  ;;  %v1821_v54 = vrot.slane %v6000_v19, %v5821_v9  ;;  %v946_v29 = vmul.f32 0.35355338, %v5898_v7  ;;  %v951_v27 = vmul.f32 0.35355338, %v5995_v18 }
 0x10c   : > { %703 = vrot.lane.b32.xlu1 %v5906_v11, %s5738_s9  ;;  %v1783_v38 = vcombine.low %v1768_v32, %v1775_v33  ;;  %v1814_v42 = vrot.slane %v1800_v36, %v5821_v9  ;;  %v1104_v50 = vcombine.low %v944_v35, %v945_v30 }
 0x10d   : > { %v1836_v59 = vrot.slane %v1821_v54, %v5821_v9  ;;  %v1105_v26 = vcombine.low %v946_v29, %v947_v31  ;;  %v952_v29 = vmul.f32 0.35355338, %v5929_v15 }
 0x10e   : > { %723 = vrot.lane.b32.xlu0 %v5892_v4, %s5739_s10  ;;  %v1790_v44 = vrot.slane %v1783_v38, %v5821_v9  ;;  %v1822_v49 = vcombine.low %v1807_v45, %v1814_v42 }
 0x10f   : > { %v1144_v30 = vcombine.low %v951_v27, %v952_v29 }
 0x110   : > { %725 = vrot.lane.b32.xlu1 %v5913_v12, %s5739_s10  ;;  %v1798_v53 = vcombine.low %v1790_v44, %v1797_v48  ;;  %v1829_v56 = vrot.slane %v1822_v49, %v5821_v9 }
 0x112   : > { %731 = vrot.lane.b32.xlu0 %v5901_v8, %s5739_s10  ;;  %v6105_v58 = vpack.c.bf16 %v1798_v53, %v1798_v53  ;;  %v1837_v61 = vcombine.low %v1829_v56, %v1836_v59 }
 0x114   : > { %735 = vrot.lane.b32.xlu1 %v5924_v14, %s5739_s10  ;;  %v6124_v0 = vpack.c.bf16 %v1837_v61, %v1837_v61 }
 0x116   : > { %753 = vrot.lane.b32.xlu0 %v5892_v4, %s5740_s11 }
 0x118   : > { %739 = vrot.lane.b32.xlu1 %v5929_v15, %s5739_s10 }
 0x11a   : > { %761 = vrot.lane.b32.xlu0 %v5901_v8, %s5740_s11 }
 0x11c   : > { %755 = vrot.lane.b32.xlu1 %v5913_v12, %s5740_s11 }
 0x11e   : > { %783 = vrot.lane.b32.xlu0 %v5892_v4, %s5741_s12 }
 0x120   : > { %765 = vrot.lane.b32.xlu1 %v5924_v14, %s5740_s11 }
 0x122   : > { %791 = vrot.lane.b32.xlu0 %v5901_v8, %s5741_s12 }
 0x124   : > { %769 = vrot.lane.b32.xlu1 %v5929_v15, %s5740_s11 }
 0x126   : > { %813 = vrot.lane.b32.xlu0 %v5892_v4, %s5742_s13 }
 0x128   : > { %785 = vrot.lane.b32.xlu1 %v5913_v12, %s5741_s12 }
 0x12a   : > { %821 = vrot.lane.b32.xlu0 %v5901_v8, %s5742_s13 }
 0x12c   : > { %795 = vrot.lane.b32.xlu1 %v5924_v14, %s5741_s12 }
 0x12e   : > { %864 = vrot.lane.b32.xlu0 %v5892_v4, %s5743_s14 }
 0x130   : > { %799 = vrot.lane.b32.xlu1 %v5929_v15, %s5741_s12 }
 0x132   : > { %695 = vrot.lane.b32.xlu0 %v5913_v12, %s5738_s9 }
 0x134   : > { %815 = vrot.lane.b32.xlu1 %v5913_v12, %s5742_s13 }
 0x136   : > { %705 = vrot.lane.b32.xlu0 %v5924_v14, %s5738_s9 }
 0x138   : > { %825 = vrot.lane.b32.xlu1 %v5924_v14, %s5742_s13 }
 0x13a   : > { %709 = vrot.lane.b32.xlu0 %v5929_v15, %s5738_s9 }
 0x13c   : > { %829 = vrot.lane.b32.xlu1 %v5929_v15, %s5742_s13 }
 0x13e   : > { %727 = vrot.lane.b32.xlu0 %v5898_v7, %s5739_s10 }
 0x140   : > { %866 = vrot.lane.b32.xlu1 %v5913_v12, %s5743_s14 }
 0x142   : > { %733 = vrot.lane.b32.xlu0 %v5906_v11, %s5739_s10 }
 0x144   : > { %876 = vrot.lane.b32.xlu1 %v5924_v14, %s5743_s14 }
 0x146   : > { %757 = vrot.lane.b32.xlu0 %v5898_v7, %s5740_s11 }
 0x148   : > { %880 = vrot.lane.b32.xlu1 %v5929_v15, %s5743_s14 }
 0x14a   : > { %763 = vrot.lane.b32.xlu0 %v5906_v11, %s5740_s11 }
 0x14c   : > { %699 = vrot.lane.b32.xlu1 %v5987_v16, %s5738_s9 }
 0x14e   : > { %787 = vrot.lane.b32.xlu0 %v5898_v7, %s5741_s12 }
 0x150   : > { %707 = vrot.lane.b32.xlu1 %v5995_v18, %s5738_s9 }
 0x152   : > { %793 = vrot.lane.b32.xlu0 %v5906_v11, %s5741_s12 }
 0x154   : > { %711 = vrot.lane.b32.xlu1 %v6000_v19, %s5738_s9 }
 0x156   : > { %817 = vrot.lane.b32.xlu0 %v5898_v7, %s5742_s13 }
 0x158   : > { %729 = vrot.lane.b32.xlu1 %v5987_v16, %s5739_s10 }
 0x15a   : > { %823 = vrot.lane.b32.xlu0 %v5906_v11, %s5742_s13 }
 0x15c   : > { %741 = vrot.lane.b32.xlu1 %v6000_v19, %s5739_s10 }
 0x15e   : > { %868 = vrot.lane.b32.xlu0 %v5898_v7, %s5743_s14 }
 0x160   : > { %759 = vrot.lane.b32.xlu1 %v5987_v16, %s5740_s11 }
 0x162   : > { %874 = vrot.lane.b32.xlu0 %v5906_v11, %s5743_s14 }
 0x164   : > { %906 = vrot.lane.b32.xlu1 %v5913_v12, %s5744_s15 }
 0x166   : > { %737 = vrot.lane.b32.xlu0 %v5995_v18, %s5739_s10 }
 0x168   : > { %771 = vrot.lane.b32.xlu1 %v6000_v19, %s5740_s11 }
 0x16a   : > { %872 = vrot.lane.b32.xlu0 %v5901_v8, %s5743_s14 }
 0x16c   : > { %789 = vrot.lane.b32.xlu1 %v5987_v16, %s5741_s12 }
 0x16e   : > { %767 = vrot.lane.b32.xlu0 %v5995_v18, %s5740_s11 }
 0x170   : > { %801 = vrot.lane.b32.xlu1 %v6000_v19, %s5741_s12 }
 0x172   : > { %904 = vrot.lane.b32.xlu0 %v5892_v4, %s5744_s15  ;;  %v949_v4 = vmul.f32 0.35355338, %v5906_v11 }
 0x174   : > { %819 = vrot.lane.b32.xlu1 %v5987_v16, %s5742_s13 }
 0x176   : > { %797 = vrot.lane.b32.xlu0 %v5995_v18, %s5741_s12 }
 0x178   : > { %v6040_v20 = vpop.permute.xlu0 %693  ;;  %916 = vrot.lane.b32.xlu1 %v5924_v14, %s5744_s15 }
 0x179   : > { %7412 = vst [vmem:[#allocation13_spill] sm:$0xff] %v6040_v20 }
 0x17a   : > { %v6048_v24 = vpop.permute.xlu1 %697  ;;  %827 = vrot.lane.b32.xlu0 %v5995_v18, %s5742_s13 }
 0x17c   : > { %v6052_v28 = vpop.permute.xlu0 %701  ;;  %831 = vrot.lane.b32.xlu1 %v6000_v19, %s5742_s13 }
 0x17d   : > { %7413 = vst [vmem:[#allocation14_spill] sm:$0xff] %v6052_v28 }
 0x17e   : > { %v6058_v34 = vpop.permute.xlu1 %703  ;;  %908 = vrot.lane.b32.xlu0 %v5898_v7, %s5744_s15  ;;  %v1860_v7 = vrot.slane %v6052_v28, %v5821_v9 }
 0x17f   : > { %7414 = vst [vmem:[#allocation15_spill] sm:$0xff] %v6058_v34 }
 0x180   : > { %v6064_v37 = vpop.permute.xlu0 %723  ;;  %920 = vrot.lane.b32.xlu1 %v5929_v15, %s5744_s15  ;;  %v1875_v28 = vrot.slane %v1860_v7, %v5821_v9  ;;  %v1112_v15 = vrot.slane %v1104_v50, %v5821_v9 }
 0x181   : > { %7415 = vst [vmem:[#allocation16_spill] sm:$0xff] %v6064_v37 }
 0x182   : > { %v6070_v40 = vpop.permute.xlu1 %725  ;;  %914 = vrot.lane.b32.xlu0 %v5906_v11, %s5744_s15 }
 0x183   : > { %7416 = vst [vmem:[#allocation17_spill] sm:$0xff] %v6070_v40  ;;  %v1916_v7 = vcombine.low %v6064_v37, %v6070_v40 }
 0x184   : > { %v6077_v43 = vpop.permute.xlu0 %731  ;;  %870 = vrot.lane.b32.xlu1 %v5987_v16, %s5743_s14 }
 0x185   : > { %7417 = vst [vmem:[#allocation18_spill] sm:$0xff] %v6077_v43 }
 0x186   : > { %v6085_v47 = vpop.permute.xlu1 %735  ;;  %878 = vrot.lane.b32.xlu0 %v5995_v18, %s5743_s14 }
 0x187   : > { %7418 = vst [vmem:[#allocation19_spill] sm:$0xff] %v6085_v47 }
 0x188   : > { %v6090_v51 = vpop.permute.xlu0 %753  ;;  %882 = vrot.lane.b32.xlu1 %v6000_v19, %s5743_s14 }
 0x189   : > { %7419 = vst [vmem:[#allocation20_spill] sm:$0xff] %v6090_v51 }
 0x18a   : > { %v6096_v55 = vpop.permute.xlu1 %739  ;;  %918 = vrot.lane.b32.xlu0 %v5995_v18, %s5744_s15 }
 0x18b   : > { %7420 = vst [vmem:[#allocation21_spill] sm:$0xff] %v6096_v55 }
 0x18c   : > { %v6101_v57 = vpop.permute.xlu0 %761  ;;  %910 = vrot.lane.b32.xlu1 %v5987_v16, %s5744_s15 }
 0x18d   : > { %7421 = vst [vmem:[#allocation22_spill] sm:$0xff] %v6101_v57 }
 0x18e   : > { %v6108_v60 = vpop.permute.xlu1 %755  ;;  %2417 = vrot.lane.b32.xlu0 %v6105_v58, %s5746_s16 }
 0x18f   : > { %7422 = vst [vmem:[#allocation23_spill] sm:$0xff] %v6108_v60 }
 0x190   : > { %v6116_v62 = vpop.permute.xlu0 %783  ;;  %912 = vrot.lane.b32.xlu1 %v5901_v8, %s5744_s15 }
 0x191   : > { %7423 = vst [vmem:[#allocation24_spill] sm:$0xff] %v6116_v62 }
 0x192   : > { %v6120_v63 = vpop.permute.xlu1 %765  ;;  %922 = vrot.lane.b32.xlu0 %v6000_v19, %s5744_s15 }
 0x193   : > { %7424 = vst [vmem:[#allocation25_spill] sm:$0xff] %v6120_v63 }
 0x194   : > { %v6126_v1 = vpop.permute.xlu0 %791  ;;  %2466 = vrot.lane.b32.xlu1 %v6124_v0, %s5746_s16 }
 0x195   : > { %7425 = vst [vmem:[#allocation26_spill] sm:$0xff] %v6126_v1 }
 0x196   : > { %v6130_v2 = vpop.permute.xlu1 %769 }
 0x197   : > { %7426 = vst [vmem:[#allocation27_spill] sm:$0xff] %v6130_v2 }
 0x198   : > { %v814_v3 = vpop.permute.xlu0 %813 }
 0x199   : > { %v833_v23 = vrot.slane %v814_v3, 1 }
 0x19a   : > { %v6132_v6 = vpop.permute.xlu1 %785 }
 0x19b   : > { %7427 = vst [vmem:[#allocation28_spill] sm:$0xff] %v6132_v6  ;;  %v6145_v36 = vsel %vm843_vm2, %v814_v3, %v833_v23 }
 0x19c   : > { %v6134_v10 = vpop.permute.xlu0 %821  ;;  %v6153_v42 = vmul.f32 0.35355338, %v6145_v36 }
 0x19e   : > { %v6136_v13 = vpop.permute.xlu1 %795 }
 0x1a0   : > { %v6138_v17 = vpop.permute.xlu0 %864 }
 0x1a1   : > { %v7357_v56 = vrot.slane %v6138_v17, 1 }
 0x1a2   : > { %v6140_v21 = vpop.permute.xlu1 %799 }
 0x1a3   : > { %v6176_v23 = vmul.f32 0.35355338, %v7357_v56 }
 0x1a4   : > { %v6142_v32 = vpop.permute.xlu0 %695 }
 0x1a5   : > { %7428 = vst [vmem:[#allocation29_spill] sm:$0xff] %v6142_v32  ;;  %v1838_v56 = vcombine.low %v6040_v20, %v6142_v32  ;;  %v950_v32 = vmul.f32 0.35355338, %v5924_v14 }
 0x1a6   : > { %v816_v33 = vpop.permute.xlu1 %815 }
 0x1a7   : > { %v834_v38 = vrot.slane %v816_v33, 1  ;;  %v1846_v16 = vrot.slane %v1838_v56, %v5821_v9 }
 0x1a8   : > { %v6147_v39 = vpop.permute.xlu0 %705 }
 0x1a9   : > { %v6150_v41 = vsel %vm843_vm2, %v816_v33, %v834_v38  ;;  %v1877_v22 = vcombine.low %v6058_v34, %v6147_v39 }
 0x1aa   : > { %v6156_v44 = vmul.f32 0.35355338, %v6150_v41  ;;  %v6158_v45 = vpop.permute.xlu1 %825 }
 0x1ab   : > { %v1885_v35 = vrot.slane %v1877_v22, %v5821_v9 }
 0x1ac   : > { %v6162_v49 = vpop.permute.xlu0 %709 }
 0x1ad   : > { %7429 = vst [vmem:[#allocation30_spill] sm:$0xff] %v6162_v49 }
 0x1ae   : > { %v6164_v53 = vpop.permute.xlu1 %829 }
 0x1b0   : > { %v6166_v54 = vpop.permute.xlu0 %727 }
 0x1b1   : > { %7430 = vst [vmem:[#allocation31_spill] sm:$0xff] %v6166_v54 }
 0x1b2   : > { %v6169_v59 = vpop.permute.xlu1 %866 }
 0x1b3   : > { %v7359_v61 = vrot.slane %v6169_v59, 1 }
 0x1b4   : > { %v6172_v3 = vpop.permute.xlu0 %733 }
 0x1b5   : > { %7431 = vst [vmem:[#allocation32_spill] sm:$0xff] %v6172_v3  ;;  %v6180_v33 = vmul.f32 0.35355338, %v7359_v61 }
 0x1b6   : > { %v6182_v38 = vpop.permute.xlu1 %876 }
 0x1b8   : > { %v6186_v48 = vpop.permute.xlu0 %757 }
 0x1b9   : > { %7432 = vst [vmem:[#allocation33_spill] sm:$0xff] %v6186_v48 }
 0x1ba   : > { %v6188_v5 = vpop.permute.xlu1 %880 }
 0x1bc   : > { %v6190_v52 = vpop.permute.xlu0 %763 }
 0x1bd   : > { %7433 = vst [vmem:[#allocation34_spill] sm:$0xff] %v6190_v52 }
 0x1be   : > { %v6196_v61 = vpop.permute.xlu1 %699 }
 0x1bf   : > { %v1839_v46 = vcombine.low %v6048_v24, %v6196_v61 }
 0x1c0   : > { %v6202_v25 = vpop.permute.xlu0 %787 }
 0x1c1   : > { %7434 = vst [vmem:[#allocation35_spill] sm:$0xff] %v6202_v25  ;;  %v1853_v12 = vrot.slane %v1839_v46, %v5821_v9  ;;  %v1119_v46 = vrot.slane %v1105_v26, %v5821_v9 }
 0x1c2   : > { %v6211_v20 = vpop.permute.xlu1 %707 }
 0x1c3   : > { %v1861_v31 = vcombine.low %v1846_v16, %v1853_v12  ;;  %v1878_v18 = vcombine.low %v6211_v20, %v6162_v49  ;;  %v1143_v16 = vcombine.low %v949_v4, %v950_v32  ;;  %v948_v49 = vmul.f32 0.35355338, %v5901_v8 }
 0x1c4   : > { %v6218_v56 = vpop.permute.xlu0 %793  ;;  %v1127_v29 = vcombine.low %v1112_v15, %v1119_v46 }
 0x1c5   : > { %v1892_v34 = vrot.slane %v1878_v18, %v5821_v9  ;;  %v1868_v14 = vrot.slane %v1861_v31, %v5821_v9  ;;  %v1158_v18 = vrot.slane %v1144_v30, %v5821_v9  ;;  %v839_v31 = vrot.slane %v6158_v45, 1 }
 0x1c6   : > { %v6224_v11 = vpop.permute.xlu1 %711  ;;  %v1151_v4 = vrot.slane %v1143_v16, %v5821_v9  ;;  %v1126_v46 = vrot.slane %v948_v49, %v5821_v9  ;;  %v953_v30 = vmul.f32 0.35355338, %v6000_v19  ;;  %v1134_v15 = vrot.slane %v1127_v29, %v5821_v9 }
 0x1c7   : > { %7435 = vst [vmem:[#allocation36_spill] sm:$0xff] %v6224_v11  ;;  %v1900_v12 = vcombine.low %v1885_v35, %v1892_v34  ;;  %v1899_v26 = vrot.slane %v6224_v11, %v5821_v9  ;;  %v1876_v22 = vcombine.low %v1868_v14, %v1875_v28  ;;  %v6254_v16 = vsel %vm843_vm2, %v6158_v45, %v839_v31 }
 0x1c8   : > { %v6231_v27 = vpop.permute.xlu0 %817  ;;  %v1938_v19 = vrot.slane %v6077_v43, %v5821_v9  ;;  %v837_v49 = vrot.slane %v6134_v10, 1  ;;  %v1165_v45 = vrot.slane %v953_v30, %v5821_v9  ;;  %v6270_v31 = vmul.f32 0.35355338, %v6254_v16 }
 0x1c9   : > { %v1907_v50 = vrot.slane %v1900_v12, %v5821_v9  ;;  %v1914_v34 = vrot.slane %v1899_v26, %v5821_v9  ;;  %v6241_v8 = vpack.c.bf16 %v1876_v22, %v1876_v22  ;;  %v1166_v12 = vcombine.low %v1151_v4, %v1158_v18 }
 0x1ca   : > { %v6239_v32 = vpop.permute.xlu1 %729  ;;  %v1924_v26 = vrot.slane %v1916_v7, %v5821_v9  ;;  %v1141_v7 = vrot.slane %v1126_v46, %v5821_v9  ;;  %v1953_v46 = vrot.slane %v1938_v19, %v5821_v9  ;;  %v1994_v30 = vcombine.low %v6090_v51, %v6108_v60 }
 0x1cb   : > { %v1917_v28 = vcombine.low %v6166_v54, %v6239_v32  ;;  %2515 = vrot.lane.b32.xlu0 %v6241_v8, %s5746_s16  ;;  %v1915_v14 = vcombine.low %v1907_v50, %v1914_v34  ;;  %v2094_v19 = vrot.slane %v6126_v1, %v5821_v9  ;;  %v7438_v60 = vrot.slane %v6182_v38, 1 }
 0x1cc   : > { %v824_v35 = vpop.permute.xlu0 %823 }
 0x1cd   : > { %v1931_v22 = vrot.slane %v1917_v28, %v5821_v9  ;;  %v838_v11 = vrot.slane %v824_v35, 1  ;;  %v6262_v50 = vpack.c.bf16 %v1915_v14, %v1915_v14  ;;  %v6280_v14 = vcombine.low %v1134_v15, %v1141_v7 }
 0x1ce   : > { %v6260_v37 = vpop.permute.xlu1 %741  ;;  %v2072_v7 = vcombine.low %v6116_v62, %v6132_v6  ;;  %v6321_v15 = vmul.f32 0.35355338, %v7438_v60 }
 0x1cf   : > { %7436 = vst [vmem:[#allocation37_spill] sm:$0xff] %v6260_v37  ;;  %v1939_v29 = vcombine.low %v1924_v26, %v1931_v22  ;;  %v6265_v18 = vsel %vm843_vm2, %v824_v35, %v838_v11  ;;  %2564 = vrot.lane.b32.xlu1 %v6262_v50, %s5746_s16  ;;  %v1173_v11 = vrot.slane %v1166_v12, %v5821_v9 }
 0x1d0   : > { %v6273_v34 = vmul.f32 0.35355338, %v6265_v18  ;;  %v6277_v4 = vpop.permute.xlu0 %868  ;;  %v848_v35 = vsel %vm843_vm2, %v6134_v10, %v837_v49  ;;  %v1180_v12 = vrot.slane %v1165_v45, %v5821_v9  ;;  %v2002_v45 = vrot.slane %v1994_v30, %v5821_v9 }
 0x1d1   : > { %v1946_v28 = vrot.slane %v1939_v29, %v5821_v9  ;;  %v2016_v29 = vrot.slane %v6101_v57, %v5821_v9  ;;  %v998_v51 = vmul.f32 0.35355338, %v848_v35  ;;  %v2172_v1 = vrot.slane %v848_v35, %v5821_v9 }
 0x1d2   : > { %v6290_v22 = vpop.permute.xlu1 %759  ;;  %v6307_v57 = vcombine.low %v1173_v11, %v1180_v12  ;;  %v6329_v12 = vrot.slane %v2094_v19, %v5821_v9  ;;  %v6345_v19 = vmul.f32 0.35355338, %v6140_v21 }
 0x1d3   : > { %7437 = vst [vmem:[#allocation38_spill] sm:$0xff] %v6290_v22  ;;  %v1995_v10 = vcombine.low %v6186_v48, %v6290_v22  ;;  %v1954_v26 = vcombine.low %v1946_v28, %v1953_v46  ;;  %v841_v28 = vrot.slane %v6164_v53, 1  ;;  %v1955_v46 = vcombine.low %v6172_v3, %v6085_v47 }
 0x1d4   : > { %v6302_v49 = vpop.permute.xlu0 %874  ;;  %v2031_v35 = vrot.slane %v2016_v29, %v5821_v9  ;;  %v1516_v60 = vrot.slane %v998_v51, %v5821_v9  ;;  %v990_v3 = vmul.f32 0.35355338, %v6136_v13  ;;  %v6353_v51 = vrot.slane %v2172_v1, %v5821_v9 }
 0x1d5   : > { %v2009_v6 = vrot.slane %v1995_v10, %v5821_v9  ;;  %v6314_v48 = vpack.c.bf16 %v1954_v26, %v1954_v26  ;;  %v7439_v11 = vrot.slane %v6302_v49, 1  ;;  %v6332_v26 = vrot.slane %v2072_v7, %v5821_v9 }
 0x1d6   : > { %v6312_v62 = vpop.permute.xlu1 %906  ;;  %v6357_v43 = vsel %vm843_vm2, %v6164_v53, %v841_v28  ;;  %v1963_v22 = vrot.slane %v1955_v46, %v5821_v9  ;;  %v1977_v1 = vrot.slane %v6260_v37, %v5821_v9  ;;  %v2033_v28 = vcombine.low %v6190_v52, %v6120_v63 }
 0x1d7   : > { %v6325_v30 = vmul.f32 0.35355338, %v7439_v11  ;;  %v2017_v10 = vcombine.low %v2002_v45, %v2009_v6  ;;  %2613 = vrot.lane.b32.xlu0 %v6314_v48, %s5746_s16  ;;  %v2150_v11 = vcombine.low %v6145_v36, %v6150_v41  ;;  %v7442_v36 = vrot.slane %v6169_v59, 1 }
 0x1d8   : > { %v6336_v47 = vpop.permute.xlu0 %737  ;;  %v7443_v41 = vrot.slane %v6138_v17, 1  ;;  %v6374_v59 = vrot.slane %v1516_v60, %v5821_v9  ;;  %v2111_v46 = vcombine.low %v6218_v56, %v6136_v13  ;;  %v7446_v13 = vcombine.low %v6176_v23, %v6180_v33 }
 0x1d9   : > { %7440 = vst [vmem:[#allocation39_spill] sm:$0xff] %v6336_v47  ;;  %v1956_v6 = vcombine.low %v6336_v47, %v6096_v55  ;;  %v2024_v45 = vrot.slane %v2017_v10, %v5821_v9  ;;  %v989_v55 = vmul.f32 0.35355338, %v6218_v56  ;;  %v7391_v47 = vrot.slane %v6188_v5, 1 }
 0x1da   : > { %v6349_v7 = vpop.permute.xlu1 %771  ;;  %v6363_v29 = vcombine.low %v7443_v41, %v7442_v36  ;;  %v6377_v17 = vrot.slane %v2150_v11, %v5821_v9  ;;  %v7444_v36 = vcombine.low %v6153_v42, %v6156_v44  ;;  %v6395_v11 = vmul.f32 0.35355338, %v6357_v43 }
 0x1db   : > { %7441 = vst [vmem:[#allocation40_spill] sm:$0xff] %v6349_v7  ;;  %v1970_v10 = vrot.slane %v1956_v6, %v5821_v9  ;;  %v2032_v53 = vcombine.low %v2024_v45, %v2031_v35  ;;  %v835_v35 = vrot.slane %v6231_v27, 1  ;;  %v6401_v56 = vrot.slane %v7446_v13, %v5821_v9 }
 0x1dc   : > { %v6371_v54 = vpop.permute.xlu0 %872  ;;  %v6387_v6 = vrot.slane %v7444_v36, %v5821_v9  ;;  %v1455_v44 = vcombine.low %v989_v55, %v990_v3  ;;  %v2041_v33 = vrot.slane %v2033_v28, %v5821_v9  ;;  %v6419_v55 = vrot.slane %v2111_v46, %v5821_v9 }
 0x1dd   : > { %v1978_v45 = vcombine.low %v1963_v22, %v1970_v10  ;;  %v6392_v41 = vpack.c.bf16 %v2032_v53, %v2032_v53  ;;  %v6407_v22 = vmul.f32 0.35355338, %v7391_v47  ;;  %v1992_v10 = vrot.slane %v1977_v1, %v5821_v9 }
 0x1de   : > { %v6390_v60 = vpop.permute.xlu1 %789  ;;  %v2189_v3 = vcombine.low %v6265_v18, %v6254_v16  ;;  %v846_v13 = vsel %vm843_vm2, %v6231_v27, %v835_v35  ;;  %v6430_v28 = vrot.slane %v1455_v44, %v5821_v9  ;;  %v7448_v46 = vrot.slane %v6182_v38, 1 }
 0x1df   : > { %7445 = vst [vmem:[#allocation41_spill] sm:$0xff] %v6390_v60  ;;  %v2073_v53 = vcombine.low %v6202_v25, %v6390_v60  ;;  %2711 = vrot.lane.b32.xlu0 %v6392_v41, %s5746_s16  ;;  %v1985_v23 = vrot.slane %v1978_v45, %v5821_v9  ;;  %v7449_v37 = vrot.slane %v6302_v49, 1  ;;  %v925_v18 = vrot.slane %v6312_v62, 1 }
 0x1e0   : > { %v6414_v36 = vpop.permute.xlu0 %767  ;;  %v2055_v27 = vrot.slane %v6349_v7, %v5821_v9  ;;  %v888_v35 = vrot.slane %v6371_v54, 1  ;;  %v996_v1 = vmul.f32 0.35355338, %v846_v13  ;;  %v6447_v38 = vrot.slane %v2189_v3, %v5821_v9 }
 0x1e1   : > { %7447 = vst [vmem:[#allocation42_spill] sm:$0xff] %v6414_v36  ;;  %v2087_v42 = vrot.slane %v2073_v53, %v5821_v9  ;;  %v2034_v47 = vcombine.low %v6414_v36, %v6130_v2  ;;  %v1993_v45 = vcombine.low %v1985_v23, %v1992_v10  ;;  %v6436_v16 = vcombine.low %v7449_v37, %v7448_v46 }
 0x1e2   : > { %v802_v63 = vpop.permute.xlu1 %801  ;;  %v7450_v37 = vrot.slane %v6277_v4, 1  ;;  %v7451_v54 = vcombine.low %v6273_v34, %v6270_v31  ;;  %v1008_v31 = vmul.f32 0.35355338, %v888_v35 }
 0x1e3   : > { %v2095_v53 = vcombine.low %v6332_v26, %v2087_v42  ;;  %v2048_v10 = vrot.slane %v2034_v47, %v5821_v9  ;;  %v6444_v44 = vpack.c.bf16 %v1993_v45, %v1993_v45  ;;  %v993_v47 = vmul.f32 0.35355338, %v802_v63 }
 0x1e4   : > { %v905_v23 = vpop.permute.xlu0 %904  ;;  %v6451_v49 = vmul.f32 0.35355338, %v7450_v37  ;;  %v6457_v46 = vrot.slane %v7451_v54, %v5821_v9  ;;  %v6464_v37 = vmul.f32 0.35355338, %v925_v18  ;;  %v2133_v52 = vrot.slane %v802_v63, %v5821_v9 }
 0x1e5   : > { %v924_v62 = vrot.slane %v905_v23, 1  ;;  %v2056_v26 = vcombine.low %v2041_v33, %v2048_v10  ;;  %2662 = vrot.lane.b32.xlu1 %v6444_v44, %s5746_s16  ;;  %v2102_v3 = vrot.slane %v2095_v53, %v5821_v9  ;;  %v2070_v23 = vrot.slane %v2055_v27, %v5821_v9 }
 0x1e6   : > { %v820_v42 = vpop.permute.xlu1 %819  ;;  %v1477_v36 = vrot.slane %v993_v47, %v5821_v9  ;;  %v6490_v47 = vrot.slane %v888_v35, %v5821_v9 }
 0x1e7   : > { %v6467_v7 = vmul.f32 0.35355338, %v924_v62  ;;  %v836_v34 = vrot.slane %v820_v42, 1  ;;  %v2110_v33 = vcombine.low %v2102_v3, %v6329_v12  ;;  %v2063_v10 = vrot.slane %v2056_v26, %v5821_v9 }
 0x1e8   : > { %v798_v54 = vpop.permute.xlu0 %797  ;;  %v7452_v12 = vcombine.low %v6325_v30, %v6321_v15  ;;  %v6501_v35 = vcombine.low %v924_v62, %v925_v18 }
 0x1e9   : > { %v991_v2 = vmul.f32 0.35355338, %v798_v54  ;;  %v2112_v45 = vcombine.low %v798_v54, %v6140_v21  ;;  %v847_v27 = vsel %vm843_vm2, %v820_v42, %v836_v34  ;;  %v6479_v60 = vpack.c.bf16 %v2110_v33, %v2110_v33 }
 0x1ea   : > { %v6477_v25 = vpop.permute.xlu1 %916  ;;  %v2071_v40 = vcombine.low %v2063_v10, %v2070_v23  ;;  %v6485_v63 = vrot.slane %v7452_v12, %v5821_v9  ;;  %v997_v26 = vmul.f32 0.35355338, %v847_v27  ;;  %v2151_v3 = vcombine.low %v846_v13, %v847_v27 }
 0x1eb   : > { %v1456_v53 = vcombine.low %v991_v2, %v6345_v19  ;;  %v1594_v21 = vrot.slane %v1008_v31, %v5821_v9  ;;  %v2126_v42 = vrot.slane %v2112_v45, %v5821_v9  ;;  %2809 = vrot.lane.b32.xlu0 %v6479_v60, %s5746_s16  ;;  %v1492_v2 = vrot.slane %v1477_v36, %v5821_v9 }
 0x1ec   : > { %v828_v23 = vpop.permute.xlu0 %827  ;;  %v6495_v34 = vpack.c.bf16 %v2071_v40, %v2071_v40  ;;  %v1495_v15 = vcombine.low %v996_v1, %v997_v26  ;;  %v2165_v30 = vrot.slane %v2151_v3, %v5821_v9  ;;  %v2148_v19 = vrot.slane %v2133_v52, %v5821_v9 }
 0x1ed   : > { %v1470_v13 = vrot.slane %v1456_v53, %v5821_v9  ;;  %v840_v54 = vrot.slane %v828_v23, 1  ;;  %v2134_v45 = vcombine.low %v6419_v55, %v2126_v42  ;;  %v930_v12 = vrot.slane %v6477_v25, 1 }
 0x1ee   : > { %2760 = vrot.lane.b32.xlu1 %v6495_v34, %s5746_s16  ;;  %v832_v31 = vpop.permute.xlu1 %831  ;;  %v1509_v40 = vrot.slane %v1495_v15, %v5821_v9  ;;  %v2173_v1 = vcombine.low %v6377_v17, %v2165_v30  ;;  %v6529_v25 = vrot.slane %v1594_v21, %v5821_v9 }
 0x1ef   : > { %v1478_v33 = vcombine.low %v6430_v28, %v1470_v13  ;;  %v851_v10 = vsel %vm843_vm2, %v828_v23, %v840_v54  ;;  %v842_v52 = vrot.slane %v832_v31, 1  ;;  %v2141_v55 = vrot.slane %v2134_v45, %v5821_v9 }
 0x1f0   : > { %v1001_v53 = vmul.f32 0.35355338, %v851_v10  ;;  %v2190_v36 = vcombine.low %v851_v10, %v6357_v43  ;;  %v6511_v18 = vpop.permute.xlu0 %908  ;;  %v1517_v62 = vcombine.low %v6387_v6, %v1509_v40  ;;  %v2180_v17 = vrot.slane %v2173_v1, %v5821_v9 }
 0x1f1   : > { %v1485_v27 = vrot.slane %v1478_v33, %v5821_v9  ;;  %v853_v3 = vsel %vm843_vm2, %v832_v31, %v842_v52  ;;  %v2149_v42 = vcombine.low %v2141_v55, %v2148_v19  ;;  %v2265_v23 = vrot.slane %v6490_v47, %v5821_v9 }
 0x1f2   : > { %v1534_v28 = vcombine.low %v1001_v53, %v6395_v11  ;;  %v2204_v26 = vrot.slane %v2190_v36, %v5821_v9  ;;  %v6521_v43 = vpop.permute.xlu1 %920  ;;  %v1003_v6 = vmul.f32 0.35355338, %v853_v3  ;;  %v2211_v30 = vrot.slane %v853_v3, %v5821_v9 }
 0x1f3   : > { %v6525_v15 = vcombine.low %v1485_v27, %v1492_v2  ;;  %v2314_v11 = vrot.slane %v6501_v35, %v5821_v9  ;;  %v1020_v19 = vmul.f32 0.35355338, %v930_v12  ;;  %v6536_v2 = vpack.c.bf16 %v2149_v42, %v2149_v42 }
 0x1f4   : > { %v1548_v13 = vrot.slane %v1534_v28, %v5821_v9  ;;  %v2212_v54 = vcombine.low %v6447_v38, %v2204_v26  ;;  %v915_v45 = vpop.permute.xlu0 %914  ;;  %v1555_v31 = vrot.slane %v1003_v6, %v5821_v9  ;;  %v2226_v33 = vrot.slane %v2211_v30, %v5821_v9 }
 0x1f5   : > { %v929_v40 = vrot.slane %v915_v45, 1  ;;  %v2188_v21 = vcombine.low %v2180_v17, %v6353_v51  ;;  %v926_v36 = vrot.slane %v6511_v18, 1  ;;  %v932_v38 = vrot.slane %v6521_v43, 1  ;;  %2858 = vrot.lane.b32.xlu1 %v6536_v2, %s5746_s16 }
 0x1f6   : > { %v1556_v1 = vcombine.low %v6457_v46, %v1548_v13  ;;  %v871_v10 = vpop.permute.xlu1 %870  ;;  %v2219_v53 = vrot.slane %v2212_v54, %v5821_v9  ;;  %v1570_v46 = vrot.slane %v1555_v31, %v5821_v9  ;;  %v7453_v18 = vrot.slane %v6277_v4, 1 }
 0x1f7   : > { %v1019_v52 = vmul.f32 0.35355338, %v929_v40  ;;  %v887_v55 = vrot.slane %v871_v10, 1  ;;  %v6548_v28 = vpack.c.bf16 %v2188_v21, %v2188_v21  ;;  %v2345_v3 = vcombine.low %v929_v40, %v930_v12 }
 0x1f8   : > { %v1563_v27 = vrot.slane %v1556_v1, %v5821_v9  ;;  %v879_v26 = vpop.permute.xlu0 %878  ;;  %v2227_v51 = vcombine.low %v2219_v53, %v2226_v33  ;;  %v1524_v43 = vrot.slane %v1517_v62, %v5821_v9  ;;  %v1016_v40 = vmul.f32 0.35355338, %v926_v36 }
 0x1f9   : > { %v1689_v17 = vcombine.low %v1019_v52, %v1020_v19  ;;  %v1007_v42 = vmul.f32 0.35355338, %v887_v55  ;;  %v2229_v6 = vcombine.low %v7453_v18, %v887_v55  ;;  %2907 = vrot.lane.b32.xlu0 %v6548_v28, %s5746_s16  ;;  %v891_v13 = vrot.slane %v879_v26, 1 }
 0x1fa   : > { %v6553_v30 = vcombine.low %v1563_v27, %v1570_v46  ;;  %v883_v54 = vpop.permute.xlu1 %882  ;;  %v6557_v45 = vpack.c.bf16 %v2227_v51, %v2227_v51  ;;  %v7454_v19 = vcombine.low %v6467_v7, %v6464_v37  ;;  %v1022_v1 = vmul.f32 0.35355338, %v932_v38 }
 0x1fb   : > { %v1573_v4 = vcombine.low %v6451_v49, %v1007_v42  ;;  %v2243_v31 = vrot.slane %v2229_v6, %v5821_v9  ;;  %v893_v62 = vrot.slane %v883_v54, 1  ;;  %v1011_v33 = vmul.f32 0.35355338, %v891_v13 }
 0x1fc   : > { %v6563_v12 = vrot.slane %v7454_v19, %v5821_v9  ;;  %v7455_v21 = vrot.slane %v6188_v5, 1  ;;  %v919_v53 = vpop.permute.xlu0 %918  ;;  %2956 = vrot.lane.b32.xlu1 %v6557_v45, %s5746_s16  ;;  %v6572_v52 = vrot.slane %v1689_v17, %v5821_v9  ;;  %v2353_v7 = vrot.slane %v2345_v3, %v5821_v9 }
 0x1fd   : > { %v1587_v49 = vrot.slane %v1573_v4, %v5821_v9  ;;  %v1013_v37 = vmul.f32 0.35355338, %v893_v62  ;;  %v1612_v55 = vcombine.low %v1011_v33, %v6407_v22  ;;  %v931_v46 = vrot.slane %v919_v53, 1 }
 0x1fe   : > { %v2268_v10 = vcombine.low %v891_v13, %v7455_v21  ;;  %v911_v26 = vpop.permute.xlu1 %910  ;;  %v6579_v5 = vcombine.low %v1524_v43, %v6374_v59  ;;  %v7456_v17 = vrot.slane %v6363_v29, %v5821_v9  ;;  %v7457_v22 = vrot.slane %v6436_v16, %v5821_v9 }
 0x1ff   : > { %v1595_v51 = vcombine.low %v6401_v56, %v1587_v49  ;;  %v1633_v3 = vrot.slane %v1013_v37, %v5821_v9  ;;  %v927_v18 = vrot.slane %v911_v26, 1  ;;  %v1626_v6 = vrot.slane %v1612_v55, %v5821_v9 }
 0x200   : > { %v2282_v27 = vrot.slane %v2268_v10, %v5821_v9  ;;  %v2251_v42 = vcombine.low %v7456_v17, %v2243_v31  ;;  %v1021_v54 = vmul.f32 0.35355338, %v931_v46  ;;  %v2346_v19 = vcombine.low %v931_v46, %v932_v38  ;;  %v2418_v4 = vpop.permute.xlu0 %2417 }
 0x201   : > { %v1648_v59 = vrot.slane %v1633_v3, %v5821_v9  ;;  %v2289_v56 = vrot.slane %v893_v62, %v5821_v9  ;;  %v1017_v43 = vmul.f32 0.35355338, %v927_v18  ;;  %v2307_v33 = vcombine.low %v926_v36, %v927_v18 }
 0x202   : > { %v2290_v13 = vcombine.low %v7457_v22, %v2282_v27  ;;  %v1634_v29 = vcombine.low %v6485_v63, %v1626_v6  ;;  %v1690_v31 = vcombine.low %v1021_v54, %v1022_v1  ;;  %v2360_v21 = vrot.slane %v2346_v19, %v5821_v9  ;;  %v913_v53 = vpop.permute.xlu1 %912 }
 0x203   : > { %v2423_v10 = vsel %vm843_vm2, %v2418_v4, 0  ;;  %v1651_v49 = vcombine.low %v1016_v40, %v1017_v43  ;;  %v2321_v16 = vrot.slane %v2307_v33, %v5821_v9  ;;  %v928_v38 = vrot.slane %v913_v53, 1 }
 0x204   : > { %5382 = vmatpush3.bf16.xpose.msra.mxu1 %v2423_v10  ;;  %v2258_v37 = vrot.slane %v2251_v42, %v5821_v9  ;;  %v1641_v55 = vrot.slane %v1634_v29, %v5821_v9  ;;  %v1704_v62 = vrot.slane %v1690_v31, %v5821_v9  ;;  %v2368_v36 = vcombine.low %v2353_v7, %v2360_v21  ;;  %v923_v27 = vpop.permute.xlu0 %922 }
 0x205   : > { %v2297_v63 = vrot.slane %v2290_v13, %v5821_v9  ;;  %v7458_v1 = vmov 0.0   ;;  %v1665_v46 = vrot.slane %v1651_v49, %v5821_v9  ;;  %v2329_v40 = vcombine.low %v2314_v11, %v2321_v16 }
 0x206   : > { %5387 = vmatprep.subr.bf16.mxu1 %v7458_v1  ;;  %v1018_v26 = vmul.f32 0.35355338, %v928_v38  ;;  %v2328_v17 = vrot.slane %v928_v38, %v5821_v9  ;;  %v6606_v42 = vcombine.low %v1641_v55, %v1648_v59  ;;  %v1712_v3 = vcombine.low %v6572_v52, %v1704_v62  ;;  %v2467_v6 = vpop.permute.xlu1 %2466 }
 0x207   : > { %v933_v18 = vrot.slane %v923_v27, 1  ;;  %v2266_v7 = vcombine.low %v2258_v37, %v2265_v23  ;;  %v1602_v22 = vrot.slane %v1595_v51, %v5821_v9  ;;  %v2304_v13 = vrot.slane %v2289_v56, %v5821_v9 }
 0x208   : > { %v1673_v35 = vcombine.low %v6563_v12, %v1665_v46  ;;  %v1672_v11 = vrot.slane %v1018_v26, %v5821_v9  ;;  %v2343_v54 = vrot.slane %v2328_v17, %v5821_v9  ;;  %v2472_v52 = vsel %vm843_vm2, %v2467_v6, 0  ;;  %v7463_v46 = vld [vmem:[#allocation14_spill] sm:$0xff] }
 0x209   : > { %v1023_v19 = vmul.f32 0.35355338, %v933_v18  ;;  %v2367_v4 = vrot.slane %v933_v18, %v5821_v9  ;;  %v6621_v23 = vpack.c.bf16 %v2266_v7, %v2266_v7  ;;  %v2305_v51 = vcombine.low %v2297_v63, %v2304_v13 }
 0x20a   : > { %v1680_v59 = vrot.slane %v1673_v35, %v5821_v9  ;;  %v1687_v47 = vrot.slane %v1672_v11, %v5821_v9  ;;  %v7459_v43 = vpack.c.bf16 %v6280_v14, %v6280_v14  ;;  %v2336_v33 = vrot.slane %v2329_v40, %v5821_v9  ;;  %v7464_v40 = vld [vmem:[#allocation15_spill] sm:$0xff]  ;;  %v7467_v35 = vld [vmem:[#allocation16_spill] sm:$0xff] }
 0x20b   : > { %v1711_v56 = vrot.slane %v1023_v19, %v5821_v9  ;;  %v2382_v12 = vrot.slane %v2367_v4, %v5821_v9  ;;  %v2375_v29 = vrot.slane %v2368_v36, %v5821_v9  ;;  %v1719_v21 = vrot.slane %v1712_v3, %v5821_v9  ;;  %3005 = vrot.lane.b32.xlu0 %v6621_v23, %s5746_s16  ;;  %v7468_v19 = vld [vmem:[#allocation36_spill] sm:$0xff] }
 0x20c   : > { %5384 = vmatmul.mubr.msk.bf16.vlgmr.msra.gmra.mrb[0].mxu1 %vm843_vm2, %v7459_v43  ;;  %v6631_v31 = vcombine.low %v1680_v59, %v1687_v47  ;;  %v6636_v10 = vpack.c.bf16 %v2305_v51, %v2305_v51  ;;  %v2344_v49 = vcombine.low %v2336_v33, %v2343_v54  ;;  %v6645_v16 = vcombine.low %v1602_v22, %v6529_v25  ;;  %v7466_v22 = vld [vmem:[#allocation31_spill] sm:$0xff] }
 0x20d   : > { %5388 = vmatpush3.bf16.xpose.msra.mxu1 %v2472_v52  ;;  %v1726_v53 = vrot.slane %v1711_v56, %v5821_v9  ;;  %v2383_v14 = vcombine.low %v2375_v29, %v2382_v12  ;;  %5389 = vmatprep.mubr.msk.bf16.mxu1 %vm5747_vm1, %v7458_v1  ;;  %v1745_v62 = vpack.c.bf16 %v6307_v57, %v6307_v57  ;;  %v957_v57 = vmul.f32 0.35355338, %v6196_v61  ;;  %v7469_v29 = vld [vmem:[#allocation38_spill] sm:$0xff] }
 0x20e   : > { %5393 = vmatprep.subr.bf16.mxu1 %v7458_v1  ;;  %3054 = vrot.lane.b32.xlu1 %v6636_v10, %s5746_s16  ;;  %v6649_v37 = vpack.c.bf16 %v2344_v49, %v2344_v49  ;;  %v960_v27 = vmul.f32 0.35355338, %v6147_v39  ;;  %v967_v3 = vmul.f32 0.35355338, %v6239_v32  ;;  %v966_v13 = vmul.f32 0.35355338, %v7466_v22 }
 0x20f   : > { %v6647_v38 = vcombine.low %v1719_v21, %v1726_v53  ;;  %v6651_v55 = vpack.c.bf16 %v2383_v14, %v2383_v14  ;;  %v964_v11 = vmul.f32 0.35355338, %v7467_v35  ;;  %v963_v4 = vmul.f32 0.35355338, %v7468_v19  ;;  %v7470_v14 = vld [vmem:[#allocation18_spill] sm:$0xff] }
 0x210   : > { %3103 = vrot.lane.b32.xlu0 %v6649_v37, %s5746_s16  ;;  %v1261_v52 = vcombine.low %v966_v13, %v967_v3  ;;  %v977_v21 = vmul.f32 0.35355338, %v7469_v29  ;;  %v7478_v13 = vld [vmem:[#allocation22_spill] sm:$0xff]  ;;  %v7481_v29 = vld [vmem:[#allocation28_spill] sm:$0xff] }
 0x211   : > { %v1243_v43 = vrot.slane %v963_v4, %v5821_v9 }
 0x212   : > { %3152 = vrot.lane.b32.xlu1 %v6651_v55, %s5746_s16  ;;  %v1275_v33 = vrot.slane %v1261_v52, %v5821_v9 }
 0x214   : > { %5390 = vmatmul.mubr.msk.bf16.vlgmr.msra.gmra.mrb[4].mxu1 %vm843_vm2, %v1745_v62  ;;  %3446 = vrot.lane.b32.xlu0 %v6124_v0, %s5743_s14  ;;  %v7460_v0 = vld [vmem:[#allocation29_spill] sm:$0xff]  ;;  %v968_v62 = vmul.f32 0.35355338, %v7470_v14 }
 0x215   : > { %5395 = vmatprep.mubr.msk.bf16.mxu1 %vm5747_vm1, %v7458_v1 }
 0x216   : > { %3393 = vrot.lane.b32.xlu1 %v6105_v58, %s5743_s14  ;;  %v956_v58 = vmul.f32 0.35355338, %v6048_v24  ;;  %v959_v24 = vmul.f32 0.35355338, %v7464_v40 }
 0x218   : > { %3542 = vrot.lane.b32.xlu0 %v6262_v50, %s5743_s14  ;;  %v7461_v50 = vld [vmem:[#allocation13_spill] sm:$0xff]  ;;  %v1183_v25 = vcombine.low %v956_v58, %v957_v57  ;;  %v1221_v18 = vcombine.low %v959_v24, %v960_v27  ;;  %v7471_v57 = vld [vmem:[#allocation23_spill] sm:$0xff]  ;;  %v7475_v24 = vld [vmem:[#allocation32_spill] sm:$0xff] }
 0x219   : > { %v975_v58 = vmul.f32 0.35355338, %v7471_v57 }
 0x21a   : > { %3494 = vrot.lane.b32.xlu1 %v6241_v8, %s5743_s14  ;;  %v955_v8 = vmul.f32 0.35355338, %v7460_v0  ;;  %v1229_v59 = vrot.slane %v1221_v18, %v5821_v9  ;;  %v7472_v0 = vld [vmem:[#allocation33_spill] sm:$0xff] }
 0x21c   : > { %3638 = vrot.lane.b32.xlu0 %v6444_v44, %s5743_s14  ;;  %v954_v44 = vmul.f32 0.35355338, %v7461_v50  ;;  %v7473_v50 = vld [vmem:[#allocation20_spill] sm:$0xff] }
 0x21e   : > { %3590 = vrot.lane.b32.xlu1 %v6314_v48, %s5743_s14  ;;  %v1182_v36 = vcombine.low %v954_v44, %v955_v8  ;;  %v961_v48 = vmul.f32 0.35355338, %v6211_v20  ;;  %v7465_v20 = vld [vmem:[#allocation17_spill] sm:$0xff]  ;;  %v976_v8 = vmul.f32 0.35355338, %v7472_v0 }
 0x21f   : > { %v965_v6 = vmul.f32 0.35355338, %v7465_v20  ;;  %v974_v44 = vmul.f32 0.35355338, %v7473_v50 }
 0x220   : > { %3734 = vrot.lane.b32.xlu0 %v6495_v34, %s5743_s14  ;;  %v1197_v34 = vrot.slane %v1183_v25, %v5821_v9  ;;  %v1190_v61 = vrot.slane %v1182_v36, %v5821_v9  ;;  %v1339_v27 = vcombine.low %v976_v8, %v977_v21  ;;  %v985_v21 = vmul.f32 0.35355338, %v7481_v29  ;;  %v7485_v8 = vld [vmem:[#allocation34_spill] sm:$0xff] }
 0x221   : > { %v1260_v51 = vcombine.low %v964_v11, %v965_v6  ;;  %v7477_v6 = vld [vmem:[#allocation19_spill] sm:$0xff]  ;;  %v979_v50 = vmul.f32 0.35355338, %v7485_v8 }
 0x222   : > { %3686 = vrot.lane.b32.xlu1 %v6392_v41, %s5743_s14  ;;  %v7462_v41 = vld [vmem:[#allocation30_spill] sm:$0xff]  ;;  %v1205_v17 = vcombine.low %v1190_v61, %v1197_v34  ;;  %v1353_v20 = vrot.slane %v1339_v27, %v5821_v9  ;;  %v970_v22 = vmul.f32 0.35355338, %v7477_v6 }
 0x223   : > { %v962_v63 = vmul.f32 0.35355338, %v7462_v41  ;;  %v1268_v49 = vrot.slane %v1260_v51, %v5821_v9 }
 0x224   : > { %v1212_v54 = vrot.slane %v1205_v17, %v5821_v9  ;;  %v7476_v17 = vld [vmem:[#allocation21_spill] sm:$0xff] }
 0x225   : > { %v1222_v26 = vcombine.low %v961_v48, %v962_v63  ;;  %v1258_v48 = vrot.slane %v1243_v43, %v5821_v9  ;;  %v1283_v34 = vcombine.low %v1268_v49, %v1275_v33  ;;  %v1282_v63 = vrot.slane %v968_v62, %v5821_v9  ;;  %v7480_v43 = vld [vmem:[#allocation24_spill] sm:$0xff]  ;;  %v7483_v62 = vld [vmem:[#allocation42_spill] sm:$0xff] }
 0x226   : > { %3782 = vrot.lane.b32.xlu1 %v6479_v60, %s5743_s14  ;;  %v958_v60 = vmul.f32 0.35355338, %v7463_v46  ;;  %v1338_v46 = vcombine.low %v974_v44, %v975_v58  ;;  %v972_v3 = vmul.f32 0.35355338, %v7476_v17  ;;  %v984_v33 = vmul.f32 0.35355338, %v7480_v43 }
 0x227   : > { %v1236_v39 = vrot.slane %v1222_v26, %v5821_v9  ;;  %v969_v26 = vmul.f32 0.35355338, %v7475_v24  ;;  %v1297_v11 = vrot.slane %v1282_v63, %v5821_v9  ;;  %v981_v57 = vmul.f32 0.35355338, %v7483_v62  ;;  %v7484_v58 = vld [vmem:[#allocation27_spill] sm:$0xff]  ;;  %v7486_v44 = vld [vmem:[#allocation37_spill] sm:$0xff] }
 0x228   : > { %v1204_v7 = vrot.slane %v958_v60, %v5821_v9  ;;  %v7474_v60 = vld [vmem:[#allocation39_spill] sm:$0xff]  ;;  %v982_v0 = vmul.f32 0.35355338, %v7484_v58  ;;  %v7487_v63 = vld [vmem:[#allocation25_spill] sm:$0xff] }
 0x229   : > { %v1244_v12 = vcombine.low %v1229_v59, %v1236_v39  ;;  %v971_v61 = vmul.f32 0.35355338, %v7474_v60  ;;  %v978_v39 = vmul.f32 0.35355338, %v7478_v13  ;;  %v1299_v52 = vcombine.low %v969_v26, %v970_v22 }
 0x22a   : > { %v1219_v32 = vrot.slane %v1204_v7, %v5821_v9  ;;  %v1290_v7 = vrot.slane %v1283_v34, %v5821_v9  ;;  %v1378_v24 = vcombine.low %v981_v57, %v982_v0 }
 0x22b   : > { %v1251_v25 = vrot.slane %v1244_v12, %v5821_v9  ;;  %v1300_v19 = vcombine.low %v971_v61, %v972_v3  ;;  %v1360_v12 = vrot.slane %v978_v39, %v5821_v9  ;;  %v1416_v61 = vcombine.low %v984_v33, %v985_v21 }
 0x22c   : > { %v1220_v53 = vcombine.low %v1212_v54, %v1219_v32  ;;  %v1346_v54 = vrot.slane %v1338_v46, %v5821_v9  ;;  %v7479_v32 = vld [vmem:[#allocation41_spill] sm:$0xff]  ;;  %v980_v46 = vmul.f32 0.35355338, %v7487_v63  ;;  %v1392_v39 = vrot.slane %v1378_v24, %v5821_v9 }
 0x22d   : > { %v1259_v18 = vcombine.low %v1251_v25, %v1258_v48  ;;  %v987_v51 = vmul.f32 0.35355338, %v7479_v32  ;;  %v1314_v14 = vrot.slane %v1300_v19, %v5821_v9  ;;  %v973_v25 = vmul.f32 0.35355338, %v7486_v44  ;;  %v7489_v19 = vld [vmem:[#allocation40_spill] sm:$0xff] }
 0x22e   : > { %v1746_v41 = vpack.c.bf16 %v1220_v53, %v1220_v53  ;;  %v7482_v53 = vld [vmem:[#allocation35_spill] sm:$0xff]  ;;  %v1377_v17 = vcombine.low %v979_v50, %v980_v46  ;;  %v1424_v22 = vrot.slane %v1416_v61, %v5821_v9  ;;  %v1754_v63 = vpack.c.bf16 %v6579_v5, %v6579_v5 }
 0x22f   : > { %v1747_v59 = vpack.c.bf16 %v1259_v18, %v1259_v18  ;;  %v986_v49 = vmul.f32 0.35355338, %v7482_v53  ;;  %v1321_v3 = vrot.slane %v973_v25, %v5821_v9  ;;  %v1755_v46 = vpack.c.bf16 %v6553_v30, %v6553_v30 }
 0x231   : > { %v1417_v34 = vcombine.low %v986_v49, %v987_v51 }
 0x233   : > { %v1431_v18 = vrot.slane %v1417_v34, %v5821_v9 }
 0x23d   : > { %v2516_v47 = vpop.permute.xlu0 %2515 }
 0x23e   : > { %v2521_v56 = vsel %vm843_vm2, %v2516_v47, 0  ;;  %v1361_v47 = vcombine.low %v1346_v54, %v1353_v20  ;;  %v7488_v20 = vld [vmem:[#allocation26_spill] sm:$0xff] }
 0x23f   : > { %5394 = vmatpush3.bf16.xpose.msra.mxu1 %v2521_v56  ;;  %v1298_v56 = vcombine.low %v1290_v7, %v1297_v11  ;;  %v988_v6 = vmul.f32 0.35355338, %v7488_v20  ;;  %v1336_v11 = vrot.slane %v1321_v3, %v5821_v9 }
 0x240   : > { %5399 = vmatprep.subr.bf16.mxu1 %v7458_v1  ;;  %v1368_v48 = vrot.slane %v1361_v47, %v5821_v9 }
 0x241   : > { %v2565_v36 = vpop.permute.xlu1 %2564  ;;  %v1748_v27 = vpack.c.bf16 %v1298_v56, %v1298_v56  ;;  %v1438_v32 = vrot.slane %v988_v6, %v5821_v9  ;;  %v1758_v6 = vpack.c.bf16 %v6631_v31, %v6631_v31 }
 0x242   : > { %v2570_v40 = vsel %vm843_vm2, %v2565_v36, 0  ;;  %v1307_v36 = vrot.slane %v1299_v52, %v5821_v9  ;;  %v1439_v52 = vcombine.low %v1424_v22, %v1431_v18  ;;  %v5748_v18 = vmov 65535  }
 0x243   : > { %v1453_v29 = vrot.slane %v1438_v32, %v5821_v9 }
 0x244   : > { %v1446_v43 = vrot.slane %v1439_v52, %v5821_v9 }
 0x246   : > { %5396 = vmatmul.mubr.msk.bf16.vlgmr.msra.gmra.mrb[8].mxu1 %vm843_vm2, %v1746_v41  ;;  %v1375_v41 = vrot.slane %v1360_v12, %v5821_v9  ;;  %v1454_v58 = vcombine.low %v1446_v43, %v1453_v29 }
 0x247   : > { %5400 = vmatpush3.bf16.xpose.msra.mxu1 %v2570_v40  ;;  %5401 = vmatprep.mubr.msk.bf16.mxu1 %vm5747_vm1, %v7458_v1  ;;  %v1322_v40 = vcombine.low %v1307_v36, %v1314_v14 }
 0x248   : > { %5411 = vmatprep.subr.bf16.mxu1 %v7458_v1  ;;  %v1376_v7 = vcombine.low %v1368_v48, %v1375_v41  ;;  %v1752_v8 = vpack.c.bf16 %v1454_v58, %v1454_v58  ;;  %v1753_v41 = vpack.c.bf16 %v6525_v15, %v6525_v15 }
 0x249   : > { %v2614_v35 = vpop.permute.xlu0 %2613  ;;  %v1329_v13 = vrot.slane %v1322_v40, %v5821_v9 }
 0x24a   : > { %v2619_v4 = vsel %vm843_vm2, %v2614_v35, 0  ;;  %v1385_v35 = vrot.slane %v1377_v17, %v5821_v9  ;;  %v1750_v47 = vpack.c.bf16 %v1376_v7, %v1376_v7  ;;  %v1757_v17 = vpack.c.bf16 %v6606_v42, %v6606_v42 }
 0x24b   : > { %5406 = vmatpush3.bf16.xpose.msra.mxu0 %v2619_v4  ;;  %v983_v4 = vmul.f32 0.35355338, %v7489_v19  ;;  %v1337_v56 = vcombine.low %v1329_v13, %v1336_v11  ;;  %v3401_v7 = vsel %vm3399_vm3, 4294967295, %v5748_v18  ;;  %v1759_v13 = vpack.c.bf16 %v6647_v38, %v6647_v38 }
 0x24c   : > { %5417 = vmatprep.subr.bf16.mxu0 %v7458_v1  ;;  %v1400_v51 = vcombine.low %v1385_v35, %v1392_v39  ;;  %v6823_v42 = vsel %vm3400_vm4, %v3401_v7, 0 }
 0x24d   : > { %v1399_v12 = vrot.slane %v983_v4, %v5821_v9  ;;  %v1749_v49 = vpack.c.bf16 %v1337_v56, %v1337_v56 }
 0x24e   : > { %5402 = vmatmul.mubr.msk.bf16.vlgmr.msra.gmra.mrb[12].mxu1 %vm843_vm2, %v1747_v59  ;;  %v1407_v21 = vrot.slane %v1400_v51, %v5821_v9 }
 0x24f   : > { %5413 = vmatprep.mubr.msk.bf16.mxu1 %vm5747_vm1, %v7458_v1  ;;  %v1414_v62 = vrot.slane %v1399_v12, %v5821_v9 }
 0x251   : > { %v2712_v60 = vpop.permute.xlu0 %2711  ;;  %v1415_v0 = vcombine.low %v1407_v21, %v1414_v62 }
 0x252   : > { %v2717_v26 = vsel %vm843_vm2, %v2712_v60, 0  ;;  %5408 = vmatmul.mubr.msk.bf16.vlgmr.msra.gmra.mrb[4].mxu0 %vm843_vm2, %v1748_v27 }
 0x253   : > { %5418 = vmatpush3.bf16.xpose.msra.mxu0 %v2717_v26  ;;  %5419 = vmatprep.mubr.msk.bf16.mxu0 %vm5747_vm1, %v7458_v1  ;;  %v1751_v50 = vpack.c.bf16 %v1415_v0, %v1415_v0  ;;  %v1756_v26 = vpack.c.bf16 %v6645_v16, %v6645_v16 }
 0x254   : > { %5429 = vmatprep.subr.bf16.mxu0 %v7458_v1 }
 0x257   : > { %v2663_v54 = vpop.permute.xlu1 %2662 }
 0x258   : > { %v2668_v59 = vsel %vm843_vm2, %v2663_v54, 0 }
 0x259   : > { %5412 = vmatpush3.bf16.xpose.msra.mxu1 %v2668_v59 }
 0x25a   : > { %5420 = vmatmul.mubr.msk.bf16.vlgmr.msra.gmra.mrb[8].mxu0 %vm843_vm2, %v1750_v47  ;;  %5423 = vmatprep.subr.bf16.mxu1 %v7458_v1 }
 0x25b   : > { %5431 = vmatprep.mubr.msk.bf16.mxu0 %vm5747_vm1, %v7458_v1 }
 0x25d   : > { %v2810_v33 = vpop.permute.xlu0 %2809 }
 0x25e   : > { %v2815_v53 = vsel %vm843_vm2, %v2810_v33, 0 }
 0x25f   : > { %5430 = vmatpush3.bf16.xpose.msra.mxu0 %v2815_v53 }
 0x260   : > { %v2761_v14 = vpop.permute.xlu1 %2760  ;;  %5414 = vmatmul.mubr.msk.bf16.vlgmr.msra.gmra.mrb[16].mxu1 %vm843_vm2, %v1749_v49  ;;  %5441 = vmatprep.subr.bf16.mxu0 %v7458_v1 }
 0x261   : > { %v2766_v57 = vsel %vm843_vm2, %v2761_v14, 0  ;;  %5425 = vmatprep.mubr.msk.bf16.mxu1 %vm5747_vm1, %v7458_v1 }
 0x262   : > { %5424 = vmatpush3.bf16.xpose.msra.mxu1 %v2766_v57 }
 0x263   : > { %5435 = vmatprep.subr.bf16.mxu1 %v7458_v1 }
 0x266   : > { %5432 = vmatmul.mubr.msk.bf16.vlgmr.msra.gmra.mrb[12].mxu0 %vm843_vm2, %v1752_v8 }
 0x267   : > { %5443 = vmatprep.mubr.msk.bf16.mxu0 %vm5747_vm1, %v7458_v1  ;;  %v2859_v44 = vpop.permute.xlu1 %2858 }
 0x268   : > { %v2864_v25 = vsel %vm843_vm2, %v2859_v44, 0 }
 0x269   : > { %5426 = vmatmul.mubr.msk.bf16.vlgmr.msra.gmra.mrb[20].mxu1 %vm843_vm2, %v1751_v50 }
 0x26a   : > { %5437 = vmatprep.mubr.msk.bf16.mxu1 %vm5747_vm1, %v7458_v1  ;;  %5436 = vmatpush3.bf16.xpose.msra.mxu1 %v2864_v25 }
 0x26b   : > { %v2908_v36 = vpop.permute.xlu0 %2907  ;;  %5447 = vmatprep.subr.bf16.mxu1 %v7458_v1 }
 0x26c   : > { %v2913_v48 = vsel %vm843_vm2, %v2908_v36, 0 }
 0x26d   : > { %5442 = vmatpush3.bf16.xpose.msra.mxu0 %v2913_v48 }
 0x26e   : > { %v2957_v34 = vpop.permute.xlu1 %2956  ;;  %5453 = vmatprep.subr.bf16.mxu0 %v7458_v1 }
 0x26f   : > { %v2962_v27 = vsel %vm843_vm2, %v2957_v34, 0 }
 0x271   : > { %5438 = vmatmul.mubr.msk.bf16.vlgmr.msra.gmra.mrb[24].mxu1 %vm843_vm2, %v1753_v41 }
 0x272   : > { %5448 = vmatpush3.bf16.xpose.msra.mxu1 %v2962_v27  ;;  %5449 = vmatprep.mubr.msk.bf16.mxu1 %vm5747_vm1, %v7458_v1 }
 0x273   : > { %5459 = vmatprep.subr.bf16.mxu1 %v7458_v1 }
 0x274   : > { %5444 = vmatmul.mubr.msk.bf16.vlgmr.msra.gmra.mrb[16].mxu0 %vm843_vm2, %v1754_v63 }
 0x275   : > { %5455 = vmatprep.mubr.msk.bf16.mxu0 %vm5747_vm1, %v7458_v1 }
 0x279   : > { %5450 = vmatmul.mubr.msk.bf16.vlgmr.msra.gmra.mrb[28].mxu1 %vm843_vm2, %v1755_v46 }
 0x27a   : > { %5461 = vmatprep.mubr.msk.bf16.mxu1 %vm5747_vm1, %v7458_v1 }
 0x27d   : > { %v3006_v15 = vpop.permute.xlu0 %3005 }
 0x27e   : > { %v3011_v5 = vsel %vm843_vm2, %v3006_v15, 0 }
 0x27f   : > { %5454 = vmatpush3.bf16.xpose.msra.mxu0 %v3011_v5 }
 0x280   : > { %v3055_v60 = vpop.permute.xlu1 %3054  ;;  %5465 = vmatprep.subr.bf16.mxu0 %v7458_v1 }
 0x281   : > { %v3060_v61 = vsel %vm843_vm2, %v3055_v60, 0 }
 0x282   : > { %5460 = vmatpush3.bf16.xpose.msra.mxu1 %v3060_v61  ;;  %v3104_v40 = vpop.permute.xlu0 %3103 }
 0x283   : > { %5471 = vmatprep.subr.bf16.mxu1 %v7458_v1  ;;  %v3109_v30 = vsel %vm843_vm2, %v3104_v40, 0 }
 0x284   : > { %v3153_v24 = vpop.permute.xlu1 %3152 }
 0x285   : > { %v3158_v3 = vsel %vm843_vm2, %v3153_v24, 0 }
 0x286   : > { %5456 = vmatmul.mubr.msk.bf16.vlgmr.msra.gmra.mrb[20].mxu0 %vm843_vm2, %v1756_v26  ;;  %v3447_v22 = vpop.permute.xlu0 %3446 }
 0x287   : > { %5466 = vmatpush3.bf16.xpose.msra.mxu0 %v3109_v30  ;;  %5467 = vmatprep.mubr.msk.bf16.mxu0 %vm5747_vm1, %v7458_v1  ;;  %v3452_v39 = vand.u32 %v3447_v22, %v6823_v42 }
 0x288   : > { %v3394_v20 = vpop.permute.xlu1 %3393  ;;  %5477 = vmatprep.subr.bf16.mxu0 %v7458_v1 }
 0x289   : > { %5462 = vmatmul.mubr.msk.bf16.vlgmr.msra.gmra.mrb[32].mxu1 %vm843_vm2, %v1757_v17  ;;  %v3404_v16 = vand.u32 %v6823_v42, %v3394_v20 }
 0x28a   : > { %5472 = vmatpush3.bf16.xpose.msra.mxu1 %v3158_v3  ;;  %5473 = vmatprep.mubr.msk.bf16.mxu1 %vm5747_vm1, %v7458_v1 }
 0x28b   : > { %5483 = vmatprep.subr.bf16.mxu1 %v7458_v1 }
 0x28e   : > { %5468 = vmatmul.mubr.msk.bf16.vlgmr.msra.gmra.mrb[24].mxu0 %vm843_vm2, %v1758_v6 }
 0x28f   : > { %5478 = vmatpush3.bf16.msra.mxu0 %v3404_v16  ;;  %5479 = vmatprep.mubr.msk.bf16.mxu0 %vm5747_vm1, %v7458_v1 }
 0x290   : > { %5489 = vmatprep.subr.bf16.mxu0 %v7458_v1 }
 0x291   : > { %5474 = vmatmul.mubr.msk.bf16.vlgmr.msra.gmra.mrb[36].mxu1 %vm843_vm2, %v1759_v13 }
 0x292   : > { %5484 = vmatpush3.bf16.msra.mxu1 %v3452_v39  ;;  %5485 = vmatprep.mubr.msk.bf16.mxu1 %vm5747_vm1, %v7458_v1 }
 0x293   : > { %5495 = vmatprep.subr.bf16.mxu1 %v7458_v1 }
 0x2df   : > { %v6840_v31 = vpop.f32.mrb[0].mxu1 }
 0x2e0   : > { %v5385_v38 = vpop.f32.mrb[1].mxu1  ;;  %v3201_v35 = vsel %vm3200_vm5, %v6840_v31, -inf }
 0x2e1   : > { %3202 = vmax.xlane.f32.xlu0 %v3201_v35  ;;  %v2462_v11 = vpop.f32.mrb[2].mxu1 }
 0x2e2   : > { %v5386_v54 = vpop.f32.mrb[3].mxu1 }
 0x2e7   : > { %v6844_v19 = vpop.f32.mrb[4].mxu1 }
 0x2e8   : > { %v5391_v4 = vpop.f32.mrb[5].mxu1  ;;  %v3204_v52 = vsel %vm3200_vm5, %v6844_v19, -inf }
 0x2e9   : > { %3205 = vmax.xlane.f32.xlu1 %v3204_v52  ;;  %v2511_v59 = vpop.f32.mrb[6].mxu1 }
 0x2ea   : > { %v5392_v47 = vpop.f32.mrb[7].mxu1  ;;  %v6888_v59 = vpop.permute.xlu0 %3542 }
 0x319   : > { %v6848_v32 = vpop.f32.mrb[8].mxu1 }
 0x31a   : > { %v5397_v51 = vpop.f32.mrb[9].mxu1  ;;  %v3207_v56 = vsel %vm3200_vm5, %v6848_v32, -inf }
 0x31b   : > { %3208 = vmax.xlane.f32.xlu0 %v3207_v56  ;;  %v2560_v12 = vpop.f32.mrb[10].mxu1  ;;  %v6892_v51 = vpop.permute.xlu1 %3494 }
 0x31c   : > { %v5398_v43 = vpop.f32.mrb[11].mxu1 }
 0x321   : > { %v6852_v33 = vpop.f32.mrb[12].mxu1 }
 0x322   : > { %v5403_v29 = vpop.f32.mrb[13].mxu1  ;;  %v3210_v21 = vsel %vm3200_vm5, %v6852_v33, -inf }
 0x323   : > { %3211 = vmax.xlane.f32.xlu0 %v3210_v21  ;;  %v2609_v53 = vpop.f32.mrb[14].mxu1 }
 0x324   : > { %v5404_v49 = vpop.f32.mrb[15].mxu1 }
 0x325   : > { %v6856_v14 = vpop.f32.mrb[4].mxu0 }
 0x326   : > { %v5409_v62 = vpop.f32.mrb[5].mxu0  ;;  %v3213_v57 = vsel %vm3200_vm5, %v6856_v14, -inf }
 0x327   : > { %v2658_v58 = vpop.f32.mrb[6].mxu0  ;;  %3214 = vmax.xlane.f32.xlu1 %v3213_v57 }
 0x328   : > { %v5410_v0 = vpop.f32.mrb[7].mxu0  ;;  %v6900_v58 = vpop.permute.xlu0 %3638 }
 0x32d   : > { %v6860_v8 = vpop.f32.mrb[8].mxu0 }
 0x32e   : > { %v5421_v50 = vpop.f32.mrb[9].mxu0  ;;  %v3219_v44 = vsel %vm3200_vm5, %v6860_v8, -inf }
 0x32f   : > { %v2756_v25 = vpop.f32.mrb[10].mxu0  ;;  %3220 = vmax.xlane.f32.xlu1 %v3219_v44  ;;  %v6904_v50 = vpop.permute.xlu1 %3590 }
 0x330   : > { %v5422_v36 = vpop.f32.mrb[11].mxu0 }
 0x333   : > { %v6864_v48 = vpop.f32.mrb[16].mxu1 }
 0x334   : > { %v5415_v34 = vpop.f32.mrb[17].mxu1  ;;  %v3216_v27 = vsel %vm3200_vm5, %v6864_v48, -inf }
 0x335   : > { %3217 = vmax.xlane.f32.xlu0 %v3216_v27  ;;  %v2707_v41 = vpop.f32.mrb[18].mxu1 }
 0x336   : > { %v5416_v63 = vpop.f32.mrb[19].mxu1 }
 0x339   : > { %v6868_v46 = vpop.f32.mrb[12].mxu0 }
 0x33a   : > { %v5433_v15 = vpop.f32.mrb[13].mxu0  ;;  %v3225_v5 = vsel %vm3200_vm5, %v6868_v46, -inf }
 0x33b   : > { %v2854_v60 = vpop.f32.mrb[14].mxu0  ;;  %3226 = vmax.xlane.f32.xlu1 %v3225_v5  ;;  %v6910_v5 = vpop.permute.xlu0 %3734 }
 0x33c   : > { %v6872_v61 = vpop.f32.mrb[20].mxu1  ;;  %v5434_v24 = vpop.f32.mrb[15].mxu0 }
 0x33d   : > { %v5427_v40 = vpop.f32.mrb[21].mxu1  ;;  %v3222_v30 = vsel %vm3200_vm5, %v6872_v61, -inf  ;;  %v6912_v60 = vpop.permute.xlu1 %3686 }
 0x33e   : > { %3223 = vmax.xlane.f32.xlu0 %v3222_v30  ;;  %v2805_v26 = vpop.f32.mrb[22].mxu1 }
 0x33f   : > { %v5428_v17 = vpop.f32.mrb[23].mxu1 }
 0x341   : > { %v6915_v26 = vpop.permute.xlu1 %3782 }
 0x344   : > { %v6876_v3 = vpop.f32.mrb[24].mxu1 }
 0x345   : > { %v5439_v18 = vpop.f32.mrb[25].mxu1  ;;  %v3228_v7 = vsel %vm3200_vm5, %v6876_v3, -inf }
 0x346   : > { %3229 = vmax.xlane.f32.xlu0 %v3228_v7  ;;  %v2903_v20 = vpop.f32.mrb[26].mxu1 }
 0x347   : > { %v6880_v16 = vpop.f32.mrb[16].mxu0  ;;  %v5440_v6 = vpop.f32.mrb[27].mxu1 }
 0x348   : > { %v5445_v22 = vpop.f32.mrb[17].mxu0  ;;  %v3231_v13 = vsel %vm3200_vm5, %v6880_v16, -inf }
 0x349   : > { %v2952_v39 = vpop.f32.mrb[18].mxu0  ;;  %3232 = vmax.xlane.f32.xlu1 %v3231_v13 }
 0x34a   : > { %v5446_v38 = vpop.f32.mrb[19].mxu0 }
 0x34c   : > { %v6884_v35 = vpop.f32.mrb[28].mxu1 }
 0x34d   : > { %v5451_v11 = vpop.f32.mrb[29].mxu1  ;;  %v3234_v54 = vsel %vm3200_vm5, %v6884_v35, -inf }
 0x34e   : > { %3235 = vmax.xlane.f32.xlu0 %v3234_v54  ;;  %v3001_v4 = vpop.f32.mrb[30].mxu1 }
 0x34f   : > { %v5452_v52 = vpop.f32.mrb[31].mxu1 }
 0x359   : > { %v6890_v47 = vpop.f32.mrb[20].mxu0 }
 0x35a   : > { %v5457_v56 = vpop.f32.mrb[21].mxu0  ;;  %v3237_v12 = vsel %vm3200_vm5, %v6890_v47, -inf }
 0x35b   : > { %v3050_v43 = vpop.f32.mrb[22].mxu0  ;;  %3238 = vmax.xlane.f32.xlu1 %v3237_v12 }
 0x35c   : > { %v6896_v29 = vpop.f32.mrb[32].mxu1  ;;  %v5458_v21 = vpop.f32.mrb[23].mxu0 }
 0x35d   : > { %v5463_v53 = vpop.f32.mrb[33].mxu1  ;;  %v3240_v49 = vsel %vm3200_vm5, %v6896_v29, -inf }
 0x35e   : > { %3241 = vmax.xlane.f32.xlu0 %v3240_v49  ;;  %v3099_v62 = vpop.f32.mrb[34].mxu1 }
 0x35f   : > { %v5464_v57 = vpop.f32.mrb[35].mxu1 }
 0x361   : > { %v6902_v0 = vpop.f32.mrb[24].mxu0 }
 0x362   : > { %v5469_v44 = vpop.f32.mrb[25].mxu0  ;;  %v3243_v25 = vsel %vm3200_vm5, %v6902_v0, -inf }
 0x363   : > { %v3148_v36 = vpop.f32.mrb[26].mxu0  ;;  %3244 = vmax.xlane.f32.xlu1 %v3243_v25 }
 0x364   : > { %v6908_v34 = vpop.f32.mrb[36].mxu1  ;;  %v5470_v27 = vpop.f32.mrb[27].mxu0 }
 0x365   : > { %v5475_v41 = vpop.f32.mrb[37].mxu1  ;;  %v3246_v13 = vsel %vm3200_vm5, %v6908_v34, -inf }
 0x366   : > { %v3197_v63 = vpop.f32.mrb[38].mxu1 }
 0x367   : > { %v5476_v15 = vpop.f32.mrb[39].mxu1 }
 0x36e   : > { %v3203_v40 = vpop.xlane.xlu0 %3202 }
 0x36f   : > { %v3249_v24 = vsub.f32 %v6840_v31, %v3203_v40 }
 0x371   : > { %v3265_v30 = vmul.f32 1.442695, %v3249_v24 }
 0x373   : > { %5644 = vpow2.f32 %v3265_v30 }
 0x376   : > { %v3206_v17 = vpop.xlane.xlu1 %3205 }
 0x377   : > { %v3250_v18 = vsub.f32 %v6844_v19, %v3206_v17 }
 0x379   : > { %v3267_v7 = vmul.f32 1.442695, %v3250_v18 }
 0x37b   : > { %5646 = vpow2.f32 %v3267_v7 }
 0x37d   : > { %v6918_v20 = vpop.eup %5644 }
 0x37e   : > { %v3297_v6 = vsel %vm3200_vm5, %v6918_v20, 0.0 }
 0x37f   : > { %3298 = vadd.xlane.f32.xlu1 %v3297_v6 }
 0x385   : > { %v6922_v22 = vpop.eup %5646 }
 0x386   : > { %v3300_v31 = vsel %vm3200_vm5, %v6922_v22, 0.0 }
 0x387   : > { %3301 = vadd.xlane.f32.xlu0 %v3300_v31 }
 0x38b   : > { %3247 = vmax.xlane.f32.xlu0 %v3246_v13 }
 0x390   : > { %3878 = vrot.lane.b32.xlu1 %v6548_v28, %s5743_s14 }
 0x394   : > { %3926 = vrot.lane.b32.xlu1 %v6557_v45, %s5743_s14 }
 0x3a1   : > { %3830 = vrot.lane.b32.xlu0 %v6536_v2, %s5743_s14 }
 0x3a8   : > { %v3209_v19 = vpop.xlane.xlu0 %3208 }
 0x3a9   : > { %v3251_v39 = vsub.f32 %v6848_v32, %v3209_v19 }
 0x3ab   : > { %v3269_v38 = vmul.f32 1.442695, %v3251_v39 }
 0x3ad   : > { %5648 = vpow2.f32 %v3269_v38 }
 0x3b0   : > { %v3212_v11 = vpop.xlane.xlu0 %3211 }
 0x3b1   : > { %v3252_v54 = vsub.f32 %v6852_v33, %v3212_v11 }
 0x3b3   : > { %v3271_v4 = vmul.f32 1.442695, %v3252_v54 }
 0x3b4   : > { %v3215_v52 = vpop.xlane.xlu1 %3214 }
 0x3b5   : > { %5650 = vpow2.f32 %v3271_v4  ;;  %v3253_v56 = vsub.f32 %v6856_v14, %v3215_v52 }
 0x3b7   : > { %v6937_v28 = vpop.eup %5648  ;;  %v3273_v12 = vmul.f32 1.442695, %v3253_v56 }
 0x3b8   : > { %v3303_v45 = vsel %vm3200_vm5, %v6937_v28, 0.0 }
 0x3b9   : > { %5652 = vpow2.f32 %v3273_v12  ;;  %3304 = vadd.xlane.f32.xlu1 %v3303_v45 }
 0x3bc   : > { %v3221_v2 = vpop.xlane.xlu1 %3220 }
 0x3bd   : > { %v3255_v32 = vsub.f32 %v6860_v8, %v3221_v2 }
 0x3bf   : > { %v6942_v43 = vpop.eup %5650  ;;  %v3277_v21 = vmul.f32 1.442695, %v3255_v32 }
 0x3c0   : > { %v3306_v33 = vsel %vm3200_vm5, %v6942_v43, 0.0 }
 0x3c1   : > { %5654 = vpow2.f32 %v3277_v21  ;;  %3307 = vadd.xlane.f32.xlu0 %v3306_v33 }
 0x3c2   : > { %v3218_v14 = vpop.xlane.xlu0 %3217 }
 0x3c3   : > { %v6946_v53 = vpop.eup %5652  ;;  %v3254_v49 = vsub.f32 %v6864_v48, %v3218_v14 }
 0x3c4   : > { %v3309_v62 = vsel %vm3200_vm5, %v6946_v53, 0.0 }
 0x3c5   : > { %v3275_v57 = vmul.f32 1.442695, %v3254_v49  ;;  %3310 = vadd.xlane.f32.xlu1 %v3309_v62 }
 0x3c7   : > { %5656 = vpow2.f32 %v3275_v57 }
 0x3c8   : > { %v3227_v8 = vpop.xlane.xlu1 %3226 }
 0x3c9   : > { %v3257_v44 = vsub.f32 %v6868_v46, %v3227_v8 }
 0x3cb   : > { %v3224_v25 = vpop.xlane.xlu0 %3223  ;;  %v6952_v36 = vpop.eup %5654  ;;  %v3281_v27 = vmul.f32 1.442695, %v3257_v44 }
 0x3cc   : > { %v3256_v41 = vsub.f32 %v6872_v61, %v3224_v25  ;;  %v3315_v63 = vsel %vm3200_vm5, %v6952_v36, 0.0 }
 0x3cd   : > { %5658 = vpow2.f32 %v3281_v27  ;;  %3316 = vadd.xlane.f32.xlu1 %v3315_v63 }
 0x3ce   : > { %v3279_v48 = vmul.f32 1.442695, %v3256_v41 }
 0x3d0   : > { %5660 = vpow2.f32 %v3279_v48 }
 0x3d1   : > { %v6957_v15 = vpop.eup %5656 }
 0x3d2   : > { %v3312_v40 = vsel %vm3200_vm5, %v6957_v15, 0.0 }
 0x3d3   : > { %v3230_v24 = vpop.xlane.xlu0 %3229  ;;  %3313 = vadd.xlane.f32.xlu0 %v3312_v40 }
 0x3d4   : > { %v3258_v46 = vsub.f32 %v6876_v3, %v3230_v24 }
 0x3d6   : > { %v3283_v30 = vmul.f32 1.442695, %v3258_v46  ;;  %v3233_v17 = vpop.xlane.xlu1 %3232 }
 0x3d7   : > { %v6962_v18 = vpop.eup %5658  ;;  %v3259_v61 = vsub.f32 %v6880_v16, %v3233_v17 }
 0x3d8   : > { %5662 = vpow2.f32 %v3283_v30  ;;  %v3321_v7 = vsel %vm3200_vm5, %v6962_v18, 0.0 }
 0x3d9   : > { %v3285_v31 = vmul.f32 1.442695, %v3259_v61  ;;  %3322 = vadd.xlane.f32.xlu1 %v3321_v7 }
 0x3da   : > { %v6967_v6 = vpop.eup %5660 }
 0x3db   : > { %v3318_v13 = vsel %vm3200_vm5, %v6967_v6, 0.0  ;;  %5664 = vpow2.f32 %v3285_v31  ;;  %v3236_v19 = vpop.xlane.xlu0 %3235 }
 0x3dc   : > { %3319 = vadd.xlane.f32.xlu0 %v3318_v13  ;;  %v3260_v3 = vsub.f32 %v6884_v35, %v3236_v19 }
 0x3de   : > { %v3287_v39 = vmul.f32 1.442695, %v3260_v3 }
 0x3e0   : > { %5666 = vpow2.f32 %v3287_v39 }
 0x3e2   : > { %v6972_v38 = vpop.eup %5662 }
 0x3e3   : > { %v3324_v16 = vsel %vm3200_vm5, %v6972_v38, 0.0 }
 0x3e4   : > { %3325 = vadd.xlane.f32.xlu0 %v3324_v16 }
 0x3e5   : > { %v6976_v11 = vpop.eup %5664 }
 0x3e6   : > { %v3327_v54 = vsel %vm3200_vm5, %v6976_v11, 0.0 }
 0x3e7   : > { %3328 = vadd.xlane.f32.xlu1 %v3327_v54  ;;  %v3644_v54 = vand.u32 %v6900_v58, %v6823_v42 }
 0x3e8   : > { %v3239_v4 = vpop.xlane.xlu1 %3238 }
 0x3e9   : > { %v3261_v52 = vsub.f32 %v6890_v47, %v3239_v4 }
 0x3ea   : > { %v6981_v56 = vpop.eup %5666 }
 0x3eb   : > { %v3289_v35 = vmul.f32 1.442695, %v3261_v52  ;;  %v3330_v12 = vsel %vm3200_vm5, %v6981_v56, 0.0  ;;  %v3242_v21 = vpop.xlane.xlu0 %3241 }
 0x3ec   : > { %3331 = vadd.xlane.f32.xlu0 %v3330_v12  ;;  %v3262_v33 = vsub.f32 %v6896_v29, %v3242_v21 }
 0x3ed   : > { %5668 = vpow2.f32 %v3289_v35 }
 0x3ee   : > { %v3291_v14 = vmul.f32 1.442695, %v3262_v33 }
 0x3f0   : > { %v3245_v32 = vpop.xlane.xlu1 %3244 }
 0x3f7   : > { %v6985_v45 = vpop.eup %5668 }
 0x3f8   : > { %v3333_v2 = vsel %vm3200_vm5, %v6985_v45, 0.0 }
 0x3f9   : > { %3334 = vadd.xlane.f32.xlu1 %v3333_v2 }
 0x402   : > { %3974 = vrot.lane.b32.xlu0 %v6621_v23, %s5743_s14  ;;  %v3263_v23 = vsub.f32 %v6902_v0, %v3245_v32  ;;  %v3788_v32 = vand.u32 %v6915_v26, %v6823_v42 }
 0x404   : > { %v3293_v29 = vmul.f32 1.442695, %v3263_v23 }
 0x40a   : > { %4022 = vrot.lane.b32.xlu1 %v6636_v10, %s5743_s14  ;;  %v3500_v10 = vand.u32 %v6892_v51, %v6823_v42  ;;  %v3548_v51 = vand.u32 %v6888_v59, %v6823_v42 }
 0x40c   : > { %v3299_v47 = vpop.xlane.xlu1 %3298 }
 0x40d   : > { %5670 = vrcp.f32 %v3299_v47  ;;  %v3740_v47 = vand.u32 %v6910_v5, %v6823_v42 }
 0x410   : > { %v7022_v24 = vpop.permute.xlu1 %3878 }
 0x411   : > { %v3884_v5 = vand.u32 %v7022_v24, %v6823_v42 }
 0x414   : > { %v3302_v49 = vpop.xlane.xlu0 %3301  ;;  %v7028_v46 = vpop.permute.xlu1 %3926 }
 0x415   : > { %5672 = vrcp.f32 %v3302_v49 }
 0x416   : > { %5674 = vpow2.f32 %v3291_v14 }
 0x417   : > { %v5671_v62 = vpop.eup %5670 }
 0x418   : > { %v3361_v57 = vmul.f32 %v5671_v62, %v6918_v20  ;;  %v3248_v8 = vpop.xlane.xlu0 %3247 }
 0x419   : > { %v3264_v44 = vsub.f32 %v6908_v34, %v3248_v8 }
 0x41a   : > { %v3377_v25 = vpack.c.bf16 %v3361_v57, %v3361_v57 }
 0x41b   : > { %v3295_v27 = vmul.f32 1.442695, %v3264_v44 }
 0x41c   : > { %5480 = vmatmul.mubr.msk.bf16.vlgmr.msra.gmra.mrb[28].mxu0 %vm3395_vm6, %v3377_v25  ;;  %v7030_v17 = vpop.permute.xlu0 %3830 }
 0x41d   : > { %5676 = vpow2.f32 %v3295_v27  ;;  %5490 = vmatpush3.bf16.msra.mxu0 %v3500_v10  ;;  %5491 = vmatprep.mubr.msk.bf16.mxu0 %vm5747_vm1, %v7458_v1  ;;  %v3836_v44 = vand.u32 %v7030_v17, %v6823_v42  ;;  %v3932_v27 = vand.u32 %v7028_v46, %v6823_v42 }
 0x41e   : > { %5501 = vmatprep.subr.bf16.mxu0 %v7458_v1  ;;  %5678 = vpow2.f32 %v3293_v29 }
 0x41f   : > { %v5673_v20 = vpop.eup %5672 }
 0x420   : > { %v7003_v34 = vpop.eup %5674  ;;  %v3362_v0 = vmul.f32 %v5673_v20, %v6922_v22 }
 0x421   : > { %v3336_v63 = vsel %vm3200_vm5, %v7003_v34, 0.0 }
 0x422   : > { %v3378_v41 = vpack.c.bf16 %v3362_v0, %v3362_v0  ;;  %3337 = vadd.xlane.f32.xlu0 %v3336_v63 }
 0x424   : > { %5486 = vmatmul.mubr.msk.bf16.vlgmr.msra.gmra.mrb[40].mxu1 %vm3395_vm6, %v3378_v41 }
 0x425   : > { %5496 = vmatpush3.bf16.msra.mxu1 %v3548_v51  ;;  %5497 = vmatprep.mubr.msk.bf16.mxu1 %vm5747_vm1, %v7458_v1 }
 0x426   : > { %5507 = vmatprep.subr.bf16.mxu1 %v7458_v1 }
 0x427   : > { %v7014_v48 = vpop.eup %5676 }
 0x428   : > { %v3342_v22 = vsel %vm3200_vm5, %v7014_v48, 0.0  ;;  %v7018_v40 = vpop.eup %5678 }
 0x429   : > { %3343 = vadd.xlane.f32.xlu0 %v3342_v22  ;;  %v3339_v59 = vsel %vm3200_vm5, %v7018_v40, 0.0 }
 0x42e   : > { %3340 = vadd.xlane.f32.xlu1 %v3339_v59 }
 0x43f   : > { %4070 = vrot.lane.b32.xlu0 %v6649_v37, %s5743_s14  ;;  %4118 = vrot.lane.b32.xlu1 %v6651_v55, %s5743_s14  ;;  %v3596_v37 = vand.u32 %v6904_v50, %v6823_v42 }
 0x446   : > { %v3305_v30 = vpop.xlane.xlu1 %3304 }
 0x447   : > { %5680 = vrcp.f32 %v3305_v30 }
 0x44e   : > { %v3308_v61 = vpop.xlane.xlu0 %3307 }
 0x44f   : > { %5682 = vrcp.f32 %v3308_v61 }
 0x451   : > { %v5681_v7 = vpop.eup %5680 }
 0x452   : > { %v3363_v31 = vmul.f32 %v5681_v7, %v6937_v28  ;;  %v3311_v13 = vpop.xlane.xlu1 %3310 }
 0x453   : > { %5684 = vrcp.f32 %v3311_v13 }
 0x454   : > { %v3379_v19 = vpack.c.bf16 %v3363_v31, %v3363_v31 }
 0x456   : > { %5492 = vmatmul.mubr.msk.bf16.vlgmr.msra.gmra.mrb[32].mxu0 %vm3395_vm6, %v3379_v19 }
 0x457   : > { %5502 = vmatpush3.bf16.msra.mxu0 %v3596_v37  ;;  %5503 = vmatprep.mubr.msk.bf16.mxu0 %vm5747_vm1, %v7458_v1 }
 0x458   : > { %5513 = vmatprep.subr.bf16.mxu0 %v7458_v1 }
 0x459   : > { %v5683_v55 = vpop.eup %5682 }
 0x45a   : > { %v3364_v3 = vmul.f32 %v5683_v55, %v6942_v43  ;;  %v3317_v39 = vpop.xlane.xlu1 %3316  ;;  %v3692_v43 = vand.u32 %v6912_v60, %v6823_v42 }
 0x45b   : > { %5686 = vrcp.f32 %v3317_v39 }
 0x45c   : > { %v3380_v28 = vpack.c.bf16 %v3364_v3, %v3364_v3 }
 0x45d   : > { %v5685_v16 = vpop.eup %5684 }
 0x45e   : > { %v3365_v50 = vmul.f32 %v5685_v16, %v6946_v53  ;;  %5498 = vmatmul.mubr.msk.bf16.vlgmr.msra.gmra.mrb[44].mxu1 %vm3395_vm6, %v3380_v28 }
 0x45f   : > { %5508 = vmatpush3.bf16.msra.mxu1 %v3644_v54  ;;  %5509 = vmatprep.mubr.msk.bf16.mxu1 %vm5747_vm1, %v7458_v1 }
 0x460   : > { %v3314_v4 = vpop.xlane.xlu0 %3313  ;;  %v3381_v52 = vpack.c.bf16 %v3365_v50, %v3365_v50  ;;  %5519 = vmatprep.subr.bf16.mxu1 %v7458_v1 }
 0x461   : > { %5688 = vrcp.f32 %v3314_v4 }
 0x462   : > { %5504 = vmatmul.mubr.msk.bf16.vlgmr.msra.gmra.mrb[36].mxu0 %vm3395_vm6, %v3381_v52 }
 0x463   : > { %5514 = vmatpush3.bf16.msra.mxu0 %v3692_v43  ;;  %5515 = vmatprep.mubr.msk.bf16.mxu0 %vm5747_vm1, %v7458_v1 }
 0x464   : > { %5525 = vmatprep.subr.bf16.mxu0 %v7458_v1 }
 0x465   : > { %v5687_v58 = vpop.eup %5686 }
 0x466   : > { %v3367_v53 = vmul.f32 %v5687_v58, %v6952_v36  ;;  %v3323_v35 = vpop.xlane.xlu1 %3322 }
 0x467   : > { %5690 = vrcp.f32 %v3323_v35 }
 0x468   : > { %v3383_v2 = vpack.c.bf16 %v3367_v53, %v3367_v53 }
 0x469   : > { %v3320_v12 = vpop.xlane.xlu0 %3319 }
 0x46a   : > { %5692 = vrcp.f32 %v3320_v12  ;;  %5516 = vmatmul.mubr.msk.bf16.vlgmr.msra.gmra.mrb[40].mxu0 %vm3395_vm6, %v3383_v2 }
 0x46b   : > { %v5689_v60 = vpop.eup %5688  ;;  %5526 = vmatpush3.bf16.msra.mxu0 %v3788_v32  ;;  %5527 = vmatprep.mubr.msk.bf16.mxu0 %vm5747_vm1, %v7458_v1 }
 0x46c   : > { %v3366_v21 = vmul.f32 %v5689_v60, %v6957_v15  ;;  %5537 = vmatprep.subr.bf16.mxu0 %v7458_v1 }
 0x46e   : > { %v3382_v36 = vpack.c.bf16 %v3366_v21, %v3366_v21 }
 0x470   : > { %5510 = vmatmul.mubr.msk.bf16.vlgmr.msra.gmra.mrb[48].mxu1 %vm3395_vm6, %v3382_v36 }
 0x471   : > { %v5691_v33 = vpop.eup %5690  ;;  %5520 = vmatpush3.bf16.msra.mxu1 %v3740_v47  ;;  %v3326_v26 = vpop.xlane.xlu0 %3325  ;;  %5521 = vmatprep.mubr.msk.bf16.mxu1 %vm5747_vm1, %v7458_v1 }
 0x472   : > { %v3369_v14 = vmul.f32 %v5691_v33, %v6962_v18  ;;  %5694 = vrcp.f32 %v3326_v26  ;;  %5531 = vmatprep.subr.bf16.mxu1 %v7458_v1 }
 0x474   : > { %v5693_v15 = vpop.eup %5692  ;;  %v3329_v62 = vpop.xlane.xlu1 %3328  ;;  %v3385_v57 = vpack.c.bf16 %v3369_v14, %v3369_v14 }
 0x475   : > { %v3368_v49 = vmul.f32 %v5693_v15, %v6967_v6  ;;  %5696 = vrcp.f32 %v3329_v62 }
 0x476   : > { %5528 = vmatmul.mubr.msk.bf16.vlgmr.msra.gmra.mrb[44].mxu0 %vm3395_vm6, %v3385_v57 }
 0x477   : > { %v3384_v8 = vpack.c.bf16 %v3368_v49, %v3368_v49  ;;  %5538 = vmatpush3.bf16.msra.mxu0 %v3884_v5  ;;  %5539 = vmatprep.mubr.msk.bf16.mxu0 %vm5747_vm1, %v7458_v1 }
 0x478   : > { %5549 = vmatprep.subr.bf16.mxu0 %v7458_v1 }
 0x479   : > { %5522 = vmatmul.mubr.msk.bf16.vlgmr.msra.gmra.mrb[52].mxu1 %vm3395_vm6, %v3384_v8  ;;  %v3332_v18 = vpop.xlane.xlu0 %3331 }
 0x47a   : > { %5532 = vmatpush3.bf16.msra.mxu1 %v3836_v44  ;;  %5533 = vmatprep.mubr.msk.bf16.mxu1 %vm5747_vm1, %v7458_v1  ;;  %5698 = vrcp.f32 %v3332_v18 }
 0x47b   : > { %5543 = vmatprep.subr.bf16.mxu1 %v7458_v1 }
 0x47c   : > { %v5695_v6 = vpop.eup %5694 }
 0x47d   : > { %v3370_v23 = vmul.f32 %v5695_v6, %v6972_v38  ;;  %v3975_v20 = vpop.permute.xlu0 %3974 }
 0x47e   : > { %v3980_v41 = vand.u32 %v3975_v20, %v6823_v42 }
 0x47f   : > { %v5697_v25 = vpop.eup %5696  ;;  %v3386_v10 = vpack.c.bf16 %v3370_v23, %v3370_v23 }
 0x480   : > { %v3371_v29 = vmul.f32 %v5697_v25, %v6976_v11 }
 0x481   : > { %5534 = vmatmul.mubr.msk.bf16.vlgmr.msra.gmra.mrb[56].mxu1 %vm3395_vm6, %v3386_v10 }
 0x482   : > { %5544 = vmatpush3.bf16.msra.mxu1 %v3932_v27  ;;  %v3387_v0 = vpack.c.bf16 %v3371_v29, %v3371_v29  ;;  %5545 = vmatprep.mubr.msk.bf16.mxu1 %vm5747_vm1, %v7458_v1 }
 0x483   : > { %5555 = vmatprep.subr.bf16.mxu1 %v7458_v1 }
 0x484   : > { %v5699_v38 = vpop.eup %5698  ;;  %5540 = vmatmul.mubr.msk.bf16.vlgmr.msra.gmra.mrb[48].mxu0 %vm3395_vm6, %v3387_v0 }
 0x485   : > { %v3372_v51 = vmul.f32 %v5699_v38, %v6981_v56  ;;  %5550 = vmatpush3.bf16.msra.mxu0 %v3980_v41  ;;  %5551 = vmatprep.mubr.msk.bf16.mxu0 %vm5747_vm1, %v7458_v1 }
 0x486   : > { %v3335_v63 = vpop.xlane.xlu1 %3334  ;;  %5561 = vmatprep.subr.bf16.mxu0 %v7458_v1 }
 0x487   : > { %5700 = vrcp.f32 %v3335_v63  ;;  %v3388_v11 = vpack.c.bf16 %v3372_v51, %v3372_v51 }
 0x489   : > { %5546 = vmatmul.mubr.msk.bf16.vlgmr.msra.gmra.mrb[60].mxu1 %vm3395_vm6, %v3388_v11 }
 0x48a   : > { %v4023_v22 = vpop.permute.xlu1 %4022  ;;  %5557 = vmatprep.mubr.msk.bf16.mxu1 %vm5747_vm1, %v7458_v1 }
 0x48b   : > { %v4028_v59 = vand.u32 %v4023_v22, %v6823_v42 }
 0x48d   : > { %5556 = vmatpush3.bf16.msra.mxu1 %v4028_v59 }
 0x48e   : > { %5567 = vmatprep.subr.bf16.mxu1 %v7458_v1 }
 0x491   : > { %v5701_v56 = vpop.eup %5700 }
 0x492   : > { %v3373_v24 = vmul.f32 %v5701_v56, %v6985_v45 }
 0x494   : > { %v3389_v46 = vpack.c.bf16 %v3373_v24, %v3373_v24 }
 0x496   : > { %5552 = vmatmul.mubr.msk.bf16.vlgmr.msra.gmra.mrb[52].mxu0 %vm3395_vm6, %v3389_v46 }
 0x497   : > { %5563 = vmatprep.mubr.msk.bf16.mxu0 %vm5747_vm1, %v7458_v1 }
 0x4af   : > { %v3338_v30 = vpop.xlane.xlu0 %3337 }
 0x4b0   : > { %5702 = vrcp.f32 %v3338_v30 }
 0x4b6   : > { %v3344_v17 = vpop.xlane.xlu0 %3343 }
 0x4b7   : > { %5704 = vrcp.f32 %v3344_v17 }
 0x4ba   : > { %v4071_v61 = vpop.permute.xlu0 %4070  ;;  %v5703_v31 = vpop.eup %5702 }
 0x4bb   : > { %v4076_v7 = vand.u32 %v4071_v61, %v6823_v42  ;;  %v3374_v13 = vmul.f32 %v5703_v31, %v7003_v34  ;;  %v3341_v19 = vpop.xlane.xlu1 %3340 }
 0x4bc   : > { %5706 = vrcp.f32 %v3341_v19 }
 0x4bd   : > { %5562 = vmatpush3.bf16.msra.mxu0 %v4076_v7  ;;  %v3390_v45 = vpack.c.bf16 %v3374_v13, %v3374_v13 }
 0x4be   : > { %5573 = vmatprep.subr.bf16.mxu0 %v7458_v1 }
 0x4bf   : > { %v4119_v55 = vpop.permute.xlu1 %4118  ;;  %5558 = vmatmul.mubr.msk.bf16.vlgmr.msra.gmra.mrb[64].mxu1 %vm3395_vm6, %v3390_v45 }
 0x4c0   : > { %v4124_v3 = vand.u32 %v4119_v55, %v6823_v42  ;;  %5569 = vmatprep.mubr.msk.bf16.mxu1 %vm5747_vm1, %v7458_v1 }
 0x4c1   : > { %v5705_v37 = vpop.eup %5704 }
 0x4c2   : > { %v3376_v39 = vmul.f32 %v5705_v37, %v7014_v48  ;;  %5568 = vmatpush3.bf16.msra.mxu1 %v4124_v3 }
 0x4c4   : > { %v3392_v28 = vpack.c.bf16 %v3376_v39, %v3376_v39 }
 0x4c6   : > { %v5707_v34 = vpop.eup %5706 }
 0x4c7   : > { %v3375_v16 = vmul.f32 %v5707_v34, %v7018_v40  ;;  %5570 = vmatmul.mubr.msk.bf16.vlgmr.msra.gmra.mrb[68].mxu1 %vm3395_vm6, %v3392_v28 }
 0x4c9   : > { %v3391_v54 = vpack.c.bf16 %v3375_v16, %v3375_v16 }
 0x4cb   : > { %5564 = vmatmul.mubr.msk.bf16.vlgmr.msra.gmra.mrb[56].mxu0 %vm3395_vm6, %v3391_v54 }
 0x4cc   : > { %5581 = vmatprep.mubr.msk.bf16.mxu0 %vm5747_vm1, %v7458_v1 }
 0x4ef   : > { %v7117_v50 = vpop.f32.mrb[28].mxu0 }
 0x4f0   : > { %v5481_v42 = vpop.f32.mrb[29].mxu0 }
 0x4f1   : > { %v3443_v4 = vpop.f32.mrb[30].mxu0 }
 0x4f2   : > { %v5482_v52 = vpop.f32.mrb[31].mxu0 }
 0x4f3   : > { %v5640_v52 = vld [vmem:[%s323_s29] sm:$0xff]  }
 0x4f4   : > { %5574 = vmatpush3.bf16.msra.mxu0 %v5640_v52 }
 0x4f5   : > { %5575 = vmatprep.subr.bf16.mxu0 %v7458_v1 }
 0x4f7   : > { %v7119_v43 = vpop.f32.mrb[40].mxu1 }
 0x4f8   : > { %v5487_v48 = vpop.f32.mrb[41].mxu1 }
 0x4f9   : > { %v3491_v58 = vpop.f32.mrb[42].mxu1  ;;  %v5641_v48 = vld [vmem:[%s323_s29 + $0x8] sm:$0xff]  }
 0x4fa   : > { %v5488_v53 = vpop.f32.mrb[43].mxu1  ;;  %5576 = vmatpush3.bf16.msra.mxu0 %v5641_v48  ;;  %v5642_v58 = vld [vmem:[%s323_s29 + $0x10] sm:$0xff]  }
 0x4fb   : > { %5577 = vmatprep.subr.bf16.mxu0 %v7458_v1  ;;  %v5643_v53 = vld [vmem:[%s323_s29 + $0x18] sm:$0xff]  }
 0x4fe   : > { %5578 = vmatpush3.bf16.msra.mxu0 %v5642_v58  ;;  %v7165_v58 = vld [vmem:[%s327_s8] sm:$0xff] }
 0x4ff   : > { %5579 = vmatprep.subr.bf16.mxu0 %v7458_v1 }
 0x502   : > { %5580 = vmatpush3.bf16.msra.mxu0 %v5643_v53  ;;  %v7490_v53 = vld [vmem:[#allocation11_spill] sm:$0xff] }
 0x529   : > { %v3536_v35 = vpop.f32.mrb[32].mxu0 }
 0x52a   : > { %v5493_v40 = vpop.f32.mrb[33].mxu0  ;;  %4168 = vrot.lane.b32.xlu0 %v3536_v35, %s5742_s13 }
 0x52b   : > { %v3539_v12 = vpop.f32.mrb[34].mxu0 }
 0x52c   : > { %v5494_v2 = vpop.f32.mrb[35].mxu0 }
 0x531   : > { %v3584_v32 = vpop.f32.mrb[44].mxu1 }
 0x532   : > { %4170 = vrot.lane.b32.xlu1 %v3584_v32, %s5742_s13  ;;  %v5499_v60 = vpop.f32.mrb[45].mxu1 }
 0x533   : > { %v3587_v21 = vpop.f32.mrb[46].mxu1 }
 0x534   : > { %v5500_v36 = vpop.f32.mrb[47].mxu1 }
 0x535   : > { %v3632_v47 = vpop.f32.mrb[36].mxu0 }
 0x536   : > { %v5505_v33 = vpop.f32.mrb[37].mxu0  ;;  %4176 = vrot.lane.b32.xlu0 %v3632_v47, %s5749_s17 }
 0x537   : > { %v3635_v26 = vpop.f32.mrb[38].mxu0 }
 0x538   : > { %v5506_v14 = vpop.f32.mrb[39].mxu0 }
 0x53d   : > { %v3728_v15 = vpop.f32.mrb[40].mxu0 }
 0x53e   : > { %v5517_v49 = vpop.f32.mrb[41].mxu0  ;;  %4184 = vrot.lane.b32.xlu0 %v3728_v15, %s5750_s22 }
 0x53f   : > { %v3731_v62 = vpop.f32.mrb[42].mxu0 }
 0x540   : > { %v5518_v57 = vpop.f32.mrb[43].mxu0 }
 0x543   : > { %v3680_v5 = vpop.f32.mrb[48].mxu1 }
 0x544   : > { %4178 = vrot.lane.b32.xlu1 %v3680_v5, %s5749_s17  ;;  %v5511_v8 = vpop.f32.mrb[49].mxu1 }
 0x545   : > { %v3683_v44 = vpop.f32.mrb[50].mxu1 }
 0x546   : > { %v5512_v18 = vpop.f32.mrb[51].mxu1 }
 0x549   : > { %v3824_v6 = vpop.f32.mrb[44].mxu0 }
 0x54a   : > { %v5529_v23 = vpop.f32.mrb[45].mxu0  ;;  %4192 = vrot.lane.b32.xlu0 %v3824_v6, %s5741_s12 }
 0x54b   : > { %v3827_v10 = vpop.f32.mrb[46].mxu0 }
 0x54c   : > { %v3776_v25 = vpop.f32.mrb[52].mxu1  ;;  %v5530_v27 = vpop.f32.mrb[47].mxu0 }
 0x54d   : > { %4186 = vrot.lane.b32.xlu1 %v3776_v25, %s5750_s22  ;;  %v5523_v29 = vpop.f32.mrb[53].mxu1 }
 0x54e   : > { %v3779_v20 = vpop.f32.mrb[54].mxu1 }
 0x54f   : > { %v5524_v0 = vpop.f32.mrb[55].mxu1 }
 0x554   : > { %v3872_v41 = vpop.f32.mrb[56].mxu1 }
 0x555   : > { %4194 = vrot.lane.b32.xlu1 %v3872_v41, %s5741_s12  ;;  %v5535_v38 = vpop.f32.mrb[57].mxu1 }
 0x556   : > { %v3875_v51 = vpop.f32.mrb[58].mxu1 }
 0x557   : > { %v3920_v63 = vpop.f32.mrb[48].mxu0  ;;  %v5536_v11 = vpop.f32.mrb[59].mxu1 }
 0x558   : > { %v5541_v22 = vpop.f32.mrb[49].mxu0  ;;  %4200 = vrot.lane.b32.xlu0 %v3920_v63, %s5751_s23 }
 0x559   : > { %v3923_v59 = vpop.f32.mrb[50].mxu0 }
 0x55a   : > { %v5542_v56 = vpop.f32.mrb[51].mxu0 }
 0x55c   : > { %v3968_v24 = vpop.f32.mrb[60].mxu1 }
 0x55d   : > { %4202 = vrot.lane.b32.xlu1 %v3968_v24, %s5751_s23  ;;  %v5547_v46 = vpop.f32.mrb[61].mxu1 }
 0x55e   : > { %v3971_v30 = vpop.f32.mrb[62].mxu1 }
 0x55f   : > { %v5548_v17 = vpop.f32.mrb[63].mxu1 }
 0x569   : > { %v4016_v61 = vpop.f32.mrb[52].mxu0 }
 0x56a   : > { %4208 = vrot.lane.b32.xlu0 %v4016_v61, %s5752_s24  ;;  %v5553_v7 = vpop.f32.mrb[53].mxu0 }
 0x56b   : > { %v4019_v31 = vpop.f32.mrb[54].mxu0 }
 0x56c   : > { %v5554_v13 = vpop.f32.mrb[55].mxu0 }
 0x592   : > { %v4064_v19 = vpop.f32.mrb[64].mxu1 }
 0x593   : > { %4210 = vrot.lane.b32.xlu1 %v4064_v19, %s5752_s24  ;;  %v5559_v45 = vpop.f32.mrb[65].mxu1 }
 0x594   : > { %v4067_v37 = vpop.f32.mrb[66].mxu1 }
 0x595   : > { %v5560_v55 = vpop.f32.mrb[67].mxu1 }
 0x59a   : > { %v4160_v3 = vpop.f32.mrb[68].mxu1 }
 0x59b   : > { %4218 = vrot.lane.b32.xlu1 %v4160_v3, %s5740_s11  ;;  %v5571_v39 = vpop.f32.mrb[69].mxu1 }
 0x59c   : > { %v4163_v28 = vpop.f32.mrb[70].mxu1  ;;  %v4169_v40 = vpop.permute.xlu0 %4168 }
 0x59d   : > { %v5572_v34 = vpop.f32.mrb[71].mxu1  ;;  %v4222_v62 = vsel %vm843_vm2, %v7117_v50, %v4169_v40 }
 0x59e   : > { %v4112_v16 = vpop.f32.mrb[56].mxu0 }
 0x59f   : > { %4216 = vrot.lane.b32.xlu0 %v4112_v16, %s5740_s11  ;;  %v5565_v54 = vpop.f32.mrb[57].mxu0  ;;  %s336_s11 = scalar_lea.vmem %s7349_s5, %s5308_s26 }
 0x5a0   : > { %v4115_v42 = vpop.f32.mrb[58].mxu0 }
 0x5a1   : > { %v5566_v4 = vpop.f32.mrb[59].mxu0 }
 0x5a4   : > { %v4171_v35 = vpop.permute.xlu1 %4170 }
 0x5a5   : > { %v4223_v33 = vsel %vm843_vm2, %v7119_v43, %v4171_v35  ;;  %v4400_v35 = vrot.slane %v7165_v58, %v7490_v53 }
 0x5a8   : > { %v4177_v2 = vpop.permute.xlu0 %4176 }
 0x5a9   : > { %v4225_v5 = vsel %vm4224_vm7, %v4222_v62, %v4177_v2  ;;  %v7492_v62 = vld [vmem:[#allocation6_spill] sm:$0xff] }
 0x5b0   : > { %v4185_v60 = vpop.permute.xlu0 %4184 }
 0x5b1   : > { %v4228_v18 = vsel %vm4227_vm8, %v4225_v5, %v4185_v60 }
 0x5b6   : > { %v4179_v12 = vpop.permute.xlu1 %4178 }
 0x5b7   : > { %v4226_v26 = vsel %vm4224_vm7, %v4223_v33, %v4179_v12 }
 0x5bc   : > { %v4193_v36 = vpop.permute.xlu0 %4192 }
 0x5bd   : > { %v4231_v23 = vsel %vm4230_vm9, %v4228_v18, %v4193_v36 }
 0x5bf   : > { %v4187_v32 = vpop.permute.xlu1 %4186 }
 0x5c0   : > { %v4229_v1 = vsel %vm4227_vm8, %v4226_v26, %v4187_v32 }
 0x5c7   : > { %v4195_v21 = vpop.permute.xlu1 %4194 }
 0x5c8   : > { %v4232_v49 = vsel %vm4230_vm9, %v4229_v1, %v4195_v21  ;;  %v7491_v1 = vld [vmem:[#allocation3_spill] sm:$0xff] }
 0x5ca   : > { %v4201_v14 = vpop.permute.xlu0 %4200 }
 0x5cb   : > { %v4234_v27 = vsel %vm4233_vm10, %v4231_v23, %v4201_v14 }
 0x5cf   : > { %v4203_v47 = vpop.permute.xlu1 %4202 }
 0x5d0   : > { %v4235_v57 = vsel %vm4233_vm10, %v4232_v49, %v4203_v47  ;;  %v380_v49 = vcombine.high %v7491_v1, %v7491_v1 }
 0x5dc   : > { %v4209_v8 = vpop.permute.xlu0 %4208 }
 0x5dd   : > { %v4237_v29 = vsel %vm4236_vm12, %v4234_v27, %v4209_v8 }
 0x605   : > { %v4211_v15 = vpop.permute.xlu1 %4210 }
 0x606   : > { %v4238_v44 = vsel %vm4236_vm12, %v4235_v57, %v4211_v15  ;;  %v381_v57 = vcombine.high %v7492_v62, %v7492_v62 }
 0x60d   : > { %v4219_v43 = vpop.permute.xlu1 %4218 }
 0x60e   : > { %v4241_v6 = vsel %vm4239_vm11, %v4238_v44, %v4219_v43 }
 0x60f   : > { %v4283_v25 = vcombine.high %v4241_v6, %v4241_v6  ;;  %v4290_v10 = vrot.slane %v4241_v6, %v5821_v9 }
 0x611   : > { %v4217_v20 = vpop.permute.xlu0 %4216  ;;  %v4298_v0 = vcombine.high %v4290_v10, %v4290_v10  ;;  %v4305_v50 = vrot.slane %v4290_v10, %v5821_v9  ;;  %v4297_v38 = vrot.slane %v4283_v25, %v5821_v9 }
 0x612   : > { %v4240_v41 = vsel %vm4239_vm11, %v4237_v29, %v4217_v20 }
 0x613   : > { %v4244_v51 = vcombine.high %v4240_v41, %v4240_v41  ;;  %v4251_v63 = vrot.slane %v4240_v41, %v5821_v9  ;;  %v4319_v11 = vrot.slane %v4298_v0, %v5821_v9  ;;  %v4320_v22 = vcombine.high %v4305_v50, %v4305_v50 }
 0x614   : > { %v4312_v46 = vrot.slane %v4297_v38, %v5821_v9  ;;  %v7493_v38 = vld [vmem:[#allocation5_spill] sm:$0xff] }
 0x615   : > { %v4258_v59 = vrot.slane %v4244_v51, %v5821_v9  ;;  %v4259_v56 = vcombine.high %v4251_v63, %v4251_v63  ;;  %v4321_v24 = vcombine.high %v4319_v11, %v4319_v11  ;;  %v4325_v30 = vcombine.low %v4319_v11, %v4320_v22 }
 0x616   : > { %v4266_v17 = vrot.slane %v4251_v63, %v5821_v9  ;;  %v7494_v63 = vld [vmem:[#allocation4_spill] sm:$0xff] }
 0x617   : > { %v4273_v61 = vrot.slane %v4258_v59, %v5821_v9  ;;  %v4280_v7 = vrot.slane %v4259_v56, %v5821_v9  ;;  %v4371_v31 = vcombine.low %v4321_v24, %v4312_v46  ;;  %v4353_v37 = vrot.slane %v4325_v30, %v5821_v9  ;;  %v7495_v59 = vld [vmem:[#allocation10_spill] sm:$0xff]  ;;  %v7496_v24 = vld [vmem:[#allocation7_spill] sm:$0xff]  ;;  %v7497_v30 = vld [vmem:[#allocation8_spill] sm:$0xff] }
 0x619   : > { %v4322_v13 = vcombine.low %v4266_v17, %v4280_v7  ;;  %v5300_v19 = vcombine.high %v4266_v17, %v4280_v7  ;;  %v4324_v45 = vcombine.low %v4273_v61, %v4305_v50  ;;  %v4378_v16 = vrot.slane %v4371_v31, %v5821_v9  ;;  %v7498_v61 = vld [vmem:[#allocation9_spill] sm:$0xff] }
 0x61b   : > { %v4332_v55 = vrot.slane %v4322_v13, %v5821_v9  ;;  %v4339_v3 = vrot.slane %v5300_v19, %v5821_v9  ;;  %v4346_v39 = vrot.slane %v4324_v45, %v5821_v9  ;;  %v4385_v4 = vrot.slane %v4378_v16, %v5821_v9 }
 0x61d   : > { %v4354_v28 = vcombine.low %v4332_v55, %v4339_v3  ;;  %v4355_v34 = vcombine.low %v4346_v39, %v4353_v37 }
 0x61f   : > { %v4362_v54 = vrot.slane %v4354_v28, %v5821_v9  ;;  %v4369_v42 = vrot.slane %v4355_v34, %v5821_v9 }
 0x621   : > { %v4370_v52 = vcombine.low %v4362_v54, %v4369_v42 }
 0x623   : > { %v4388_v48 = vpack.c.bf16 %v4385_v4, %v4370_v52 }
 0x625   : > { %5582 = vmatmul.mubr.msk.bf16.vlgmr.msra.gmra.mrb[60].mxu0 %vm559_vm0, %v4388_v48 }
 0x6f8   : > { %v4462_v40 = vpop.f32.mrb[60].mxu0 }
 0x6f9   : > { %v4463_v12 = vadd.f32 %v4462_v40, %v4400_v35  ;;  %v5583_v2 = vpop.f32.mrb[61].mxu0 }
 0x6fa   : > { %v4465_v32 = vpop.f32.mrb[62].mxu0 }
 0x6fb   : > { %v4471_v60 = vcombine.high %v4463_v12, %v4463_v12  ;;  %v4478_v21 = vrot.slane %v4463_v12, %v5821_v9  ;;  %v4466_v36 = vadd.f32 %v4465_v32, %v4400_v35  ;;  %v5584_v47 = vpop.f32.mrb[63].mxu0  ;;  %v7499_v32 = vld [vmem:[#allocation12_spill] sm:$0xff] }
 0x6fd   : > { %v4485_v33 = vrot.slane %v4471_v60, %v5821_v9  ;;  %v4486_v26 = vcombine.high %v4478_v21, %v4478_v21  ;;  %v4494_v14 = vrot.slane %v4478_v21, %v5821_v9  ;;  %v4526_v15 = vrot.slane %v4466_v36, %v5821_v9  ;;  %v7500_v21 = vld [vmem:[#allocation2_spill] sm:$0xff] }
 0x6fe   : > { %v7203_v36 = vsub.s32 2, %v7500_v21  ;;  %v4664_v47 = vsub.s32 3, %v7500_v21 }
 0x6ff   : > { %v4487_v5 = vcombine.high %v4485_v33, %v4485_v33  ;;  %v4501_v8 = vrot.slane %v4485_v33, %v5821_v9  ;;  %v4508_v44 = vrot.slane %v4486_v26, %v5821_v9  ;;  %v4516_v43 = vcombine.high %v4494_v14, %v4494_v14 }
 0x700   : > { %v4527_v18 = vcombine.high %v4526_v15, %v4526_v15  ;;  %v4534_v6 = vrot.slane %v4526_v15, %v5821_v9  ;;  %v4552_v29 = vadd.f32 %v4494_v14, %v7491_v1  ;;  %v4668_v33 = vsub.s32 4, %v7500_v21 }
 0x701   : > { %v4515_v23 = vrot.slane %v4487_v5, %v5821_v9  ;;  %v4517_v25 = vcombine.high %v4501_v8, %v4501_v8  ;;  %v4518_v10 = vcombine.high %v4508_v44, %v4508_v44  ;;  %v4553_v27 = vadd.f32 %v4508_v44, %v7492_v62 }
 0x702   : > { %v4554_v20 = vadd.f32 %v4516_v43, %v380_v49  ;;  %v4541_v0 = vrot.slane %v4527_v18, %v5821_v9  ;;  %v4556_v51 = vadd.f32 %v4501_v8, %v7493_v38  ;;  %v4560_v56 = vadd.f32 %v4534_v6, %v7495_v59 }
 0x703   : > { %v4519_v50 = vcombine.high %v4515_v23, %v4515_v23  ;;  %v4555_v41 = vadd.f32 %v4518_v10, %v381_v57  ;;  %v4557_v11 = vadd.f32 %v4515_v23, %v7494_v63  ;;  %v4572_v22 = vcombine.low %v4552_v29, %v4553_v27 }
 0x704   : > { %v4561_v46 = vadd.f32 %v4541_v0, %v7496_v24  ;;  %v4558_v17 = vadd.f32 %v4517_v25, %v7497_v30  ;;  %v4672_v26 = vsub.s32 5, %v7500_v21  ;;  %v4676_v49 = vsub.s32 6, %v7500_v21 }
 0x705   : > { %v4559_v7 = vadd.f32 %v4519_v50, %v7498_v61  ;;  %v4573_v31 = vcombine.low %v4554_v20, %v4555_v41  ;;  %v4574_v13 = vcombine.low %v4556_v51, %v4557_v11  ;;  %v4582_v37 = vrot.slane %v4572_v22, %v5821_v9 }
 0x706   : > { %v4621_v19 = vcombine.low %v4560_v56, %v4561_v46  ;;  %v4680_v62 = vsub.s32 7, %v7500_v21 }
 0x707   : > { %v4575_v45 = vcombine.low %v4558_v17, %v4559_v7  ;;  %v4589_v55 = vrot.slane %v4573_v31, %v5821_v9  ;;  %v4596_v39 = vrot.slane %v4574_v13, %v5821_v9 }
 0x708   : > { %v4628_v3 = vrot.slane %v4621_v19, %v5821_v9 }
 0x709   : > { %v4603_v28 = vrot.slane %v4575_v45, %v5821_v9  ;;  %v4604_v34 = vcombine.low %v4582_v37, %v4589_v55 }
 0x70a   : > { %v4635_v16 = vrot.slane %v4628_v3, %v5821_v9 }
 0x70b   : > { %v4605_v54 = vcombine.low %v4596_v39, %v4603_v28  ;;  %v4612_v4 = vrot.slane %v4604_v34, %v5821_v9 }
 0x70c   : > { %v4642_v42 = vsel %vm4641_vm13, %v4635_v16, 0.0 }
 0x70d   : > { %4643 = vadd.xlane.f32.xlu1 %v4642_v42  ;;  %v4619_v52 = vrot.slane %v4605_v54, %v5821_v9 }
 0x70f   : > { %v4620_v48 = vcombine.low %v4612_v4, %v4619_v52 }
 0x711   : > { %v4638_v35 = vsel %vm559_vm0, %v4620_v48, 0.0 }
 0x712   : > { %4639 = vadd.xlane.f32.xlu0 %v4638_v35  ;;  %v4873_v35 = vrot.slane %v7165_v58, %v7499_v32 }
 0x79a   : > { %v4644_v40 = vpop.xlane.xlu1 %4643 }
 0x79b   : > { %v4647_v12 = vmul.f32 0.015625, %v4644_v40  ;;  %v4875_v40 = vcombine.high %v4873_v35, %v4873_v35 }
 0x79d   : > { %v4685_v2 = vrot.slane %v4647_v12, %v7490_v53  ;;  %v4689_v60 = vrot.slane %v4647_v12, %v7499_v32  ;;  %v4945_v12 = vrot.slane %v7165_v58, %v7203_v36 }
 0x79f   : > { %v7208_v14 = vsub.f32 %v4560_v56, %v4685_v2  ;;  %v7210_v15 = vsub.f32 %v4561_v46, %v4689_v60  ;;  %v4640_v1 = vpop.xlane.xlu0 %4639 }
 0x7a0   : > { %v4646_v57 = vmul.f32 0.015625, %v4640_v1  ;;  %v4882_v1 = vrot.slane %v4873_v35, %v5821_v9 }
 0x7a1   : > { %v4718_v5 = vmul.f32 %v7208_v14, %v7208_v14  ;;  %v4719_v8 = vmul.f32 %v7210_v15, %v7210_v15 }
 0x7a2   : > { %v4653_v44 = vrot.slane %v4646_v57, %v7490_v53  ;;  %v4657_v43 = vrot.slane %v4646_v57, %v7499_v32  ;;  %v4661_v18 = vrot.slane %v4646_v57, %v7203_v36  ;;  %v4665_v6 = vrot.slane %v4646_v57, %v4664_v47 }
 0x7a3   : > { %v4669_v23 = vrot.slane %v4646_v57, %v4668_v33  ;;  %v4673_v25 = vrot.slane %v4646_v57, %v4672_v26  ;;  %v4677_v10 = vrot.slane %v4646_v57, %v4676_v49  ;;  %v4681_v0 = vrot.slane %v4646_v57, %v4680_v62 }
 0x7a4   : > { %v7231_v50 = vsub.f32 %v4552_v29, %v4653_v44  ;;  %v7233_v38 = vsub.f32 %v4553_v27, %v4657_v43  ;;  %v7235_v63 = vsub.f32 %v4554_v20, %v4661_v18  ;;  %v7237_v22 = vsub.f32 %v4555_v41, %v4665_v6 }
 0x7a5   : > { %v7239_v59 = vsub.f32 %v4556_v51, %v4669_v23  ;;  %v7241_v56 = vsub.f32 %v4557_v11, %v4673_v25  ;;  %v7243_v24 = vsub.f32 %v4558_v17, %v4677_v10  ;;  %v7245_v46 = vsub.f32 %v4559_v7, %v4681_v0 }
 0x7a6   : > { %v4710_v30 = vmul.f32 %v7231_v50, %v7231_v50  ;;  %v4711_v29 = vmul.f32 %v7233_v38, %v7233_v38  ;;  %v4712_v27 = vmul.f32 %v7235_v63, %v7235_v63  ;;  %v4713_v20 = vmul.f32 %v7237_v22, %v7237_v22 }
 0x7a7   : > { %v4714_v41 = vmul.f32 %v7239_v59, %v7239_v59  ;;  %v4715_v51 = vmul.f32 %v7241_v56, %v7241_v56  ;;  %v4716_v11 = vmul.f32 %v7243_v24, %v7243_v24  ;;  %v4717_v17 = vmul.f32 %v7245_v46, %v7245_v46 }
 0x7a8   : > { %v4730_v61 = vcombine.low %v4710_v30, %v4711_v29  ;;  %v4731_v7 = vcombine.low %v4712_v27, %v4713_v20  ;;  %v4779_v3 = vcombine.low %v4718_v5, %v4719_v8  ;;  %v4889_v57 = vrot.slane %v4875_v40, %v5821_v9 }
 0x7a9   : > { %v4732_v31 = vcombine.low %v4714_v41, %v4715_v51  ;;  %v4733_v13 = vcombine.low %v4716_v11, %v4717_v17  ;;  %v4947_v5 = vcombine.high %v4945_v12, %v4945_v12  ;;  %v4954_v8 = vrot.slane %v4945_v12, %v5821_v9 }
 0x7aa   : > { %v4740_v19 = vrot.slane %v4730_v61, %v5821_v9  ;;  %v4747_v45 = vrot.slane %v4731_v7, %v5821_v9  ;;  %v4786_v54 = vrot.slane %v4779_v3, %v5821_v9  ;;  %v4890_v6 = vcombine.high %v4882_v1, %v4882_v1 }
 0x7ab   : > { %v4754_v37 = vrot.slane %v4732_v31, %v5821_v9  ;;  %v4761_v55 = vrot.slane %v4733_v13, %v5821_v9  ;;  %v4891_v23 = vcombine.high %v4889_v57, %v4889_v57  ;;  %v4961_v25 = vrot.slane %v4947_v5, %v5821_v9 }
 0x7ac   : > { %v4762_v39 = vcombine.low %v4740_v19, %v4747_v45  ;;  %v4793_v52 = vrot.slane %v4786_v54, %v5821_v9  ;;  %v4962_v10 = vcombine.high %v4954_v8, %v4954_v8  ;;  %v4898_v58 = vrot.slane %v4882_v1, %v5821_v9 }
 0x7ad   : > { %v4763_v28 = vcombine.low %v4754_v37, %v4761_v55  ;;  %v4905_v30 = vrot.slane %v4889_v57, %v5821_v9  ;;  %v4912_v29 = vrot.slane %v4890_v6, %v5821_v9  ;;  %v7285_v27 = vrot.slane %v4954_v8, %v5821_v9 }
 0x7ae   : > { %v4770_v34 = vrot.slane %v4762_v39, %v5821_v9  ;;  %v4799_v48 = vsel %vm4641_vm13, %v4793_v52, 0.0  ;;  %v4919_v20 = vrot.slane %v4891_v23, %v5821_v9  ;;  %v4963_v41 = vcombine.high %v4961_v25, %v4961_v25 }
 0x7af   : > { %v4777_v16 = vrot.slane %v4763_v28, %v5821_v9  ;;  %v4984_v51 = vrot.slane %v4962_v10, %v5821_v9  ;;  %v4920_v11 = vcombine.high %v4898_v58, %v4898_v58  ;;  %v4921_v17 = vcombine.high %v4905_v30, %v4905_v30 }
 0x7b0   : > { %v4922_v61 = vcombine.high %v4912_v29, %v4912_v29  ;;  %v4977_v7 = vrot.slane %v4961_v25, %v5821_v9  ;;  %v4923_v13 = vcombine.high %v4919_v20, %v4919_v20  ;;  %v4991_v19 = vrot.slane %v4963_v41, %v5821_v9 }
 0x7b1   : > { %v4778_v42 = vcombine.low %v4770_v34, %v4777_v16  ;;  %v4992_v45 = vcombine.high %v7285_v27, %v7285_v27  ;;  %v4994_v37 = vcombine.high %v4984_v51, %v4984_v51 }
 0x7b3   : > { %v4796_v4 = vsel %vm559_vm0, %v4778_v42, 0.0 }
 0x7b4   : > { %4797 = vadd.xlane.f32.xlu0 %v4796_v4 }
 0x7b8   : > { %4800 = vadd.xlane.f32.xlu0 %v4799_v48  ;;  %v4993_v48 = vcombine.high %v4977_v7, %v4977_v7 }
 0x841   : > { %v4798_v2 = vpop.xlane.xlu0 %4797 }
 0x842   : > { %v4802_v60 = vmul.f32 0.015625, %v4798_v2 }
 0x844   : > { %v4804_v44 = vadd.f32 1e-05, %v4802_v60 }
 0x845   : > { %v4801_v43 = vpop.xlane.xlu0 %4800 }
 0x846   : > { %5708 = vrsqrt.f32 %v4804_v44  ;;  %v4803_v18 = vmul.f32 0.015625, %v4801_v43 }
 0x848   : > { %v4805_v0 = vadd.f32 1e-05, %v4803_v18 }
 0x84a   : > { %5710 = vrsqrt.f32 %v4805_v0 }
 0x850   : > { %v5709_v31 = vpop.eup %5708 }
 0x851   : > { %v4813_v55 = vrot.slane %v5709_v31, %v7490_v53  ;;  %v4817_v3 = vrot.slane %v5709_v31, %v7499_v32  ;;  %v4821_v39 = vrot.slane %v5709_v31, %v7203_v36  ;;  %v4825_v28 = vrot.slane %v5709_v31, %v4664_v47 }
 0x852   : > { %v4829_v34 = vrot.slane %v5709_v31, %v4668_v33  ;;  %v4833_v16 = vrot.slane %v5709_v31, %v4672_v26  ;;  %v4837_v54 = vrot.slane %v5709_v31, %v4676_v49  ;;  %v4841_v42 = vrot.slane %v5709_v31, %v4680_v62 }
 0x853   : > { %v4860_v4 = vmul.f32 %v4813_v55, %v7231_v50  ;;  %v4861_v52 = vmul.f32 %v4817_v3, %v7233_v38  ;;  %v4862_v36 = vmul.f32 %v4821_v39, %v7235_v63  ;;  %v4863_v47 = vmul.f32 %v4825_v28, %v7237_v22 }
 0x854   : > { %v4864_v33 = vmul.f32 %v4829_v34, %v7239_v59  ;;  %v4865_v35 = vmul.f32 %v4833_v16, %v7241_v56  ;;  %v4866_v26 = vmul.f32 %v4837_v54, %v7243_v24  ;;  %v5711_v62 = vpop.eup %5710  ;;  %v4867_v50 = vmul.f32 %v4841_v42, %v7245_v46 }
 0x855   : > { %v4932_v40 = vmul.f32 %v4898_v58, %v4860_v4  ;;  %v4933_v49 = vmul.f32 %v4912_v29, %v4861_v52  ;;  %v4934_v12 = vmul.f32 %v4920_v11, %v4862_v36  ;;  %v4935_v21 = vmul.f32 %v4922_v61, %v4863_v47 }
 0x856   : > { %v4936_v2 = vmul.f32 %v4905_v30, %v4864_v33  ;;  %v4937_v38 = vmul.f32 %v4919_v20, %v4865_v35  ;;  %v4938_v60 = vmul.f32 %v4921_v17, %v4866_v26  ;;  %v4995_v59 = vcombine.high %v4991_v19, %v4991_v19 }
 0x857   : > { %v5004_v63 = vadd.f32 %v7285_v27, %v4932_v40  ;;  %v5005_v22 = vadd.f32 %v4984_v51, %v4933_v49  ;;  %v5006_v1 = vadd.f32 %v4992_v45, %v4934_v12  ;;  %v5007_v57 = vadd.f32 %v4994_v37, %v4935_v21 }
 0x858   : > { %v5008_v5 = vadd.f32 %v4977_v7, %v4936_v2  ;;  %v4845_v24 = vrot.slane %v5711_v62, %v7490_v53  ;;  %v4849_v44 = vrot.slane %v5711_v62, %v7499_v32  ;;  %v4939_v43 = vmul.f32 %v4923_v13, %v4867_v50 }
 0x859   : > { %v5024_v56 = vcombine.low %v5004_v63, %v5005_v22  ;;  %v5025_v8 = vcombine.low %v5006_v1, %v5007_v57  ;;  %v5009_v18 = vadd.f32 %v4991_v19, %v4937_v38  ;;  %v5010_v46 = vadd.f32 %v4993_v48, %v4938_v60 }
 0x85a   : > { %v5046_v6 = vrot.slane %v5008_v5, %v5821_v9  ;;  %v4868_v10 = vmul.f32 %v4845_v24, %v7208_v14  ;;  %v4869_v0 = vmul.f32 %v4849_v44, %v7210_v15  ;;  %v5011_v53 = vadd.f32 %v4995_v59, %v4939_v43 }
 0x85b   : > { %v5032_v23 = vrot.slane %v5024_v56, %v5821_v9  ;;  %v5039_v25 = vrot.slane %v5025_v8, %v5821_v9  ;;  %v5063_v11 = vcombine.low %v5009_v18, %v5010_v46 }
 0x85c   : > { %v4940_v20 = vmul.f32 %v4898_v58, %v4868_v10  ;;  %v4941_v41 = vmul.f32 %v4912_v29, %v4869_v0  ;;  %v5061_v17 = vrot.slane %v5046_v6, %v5821_v9 }
 0x85d   : > { %v5047_v30 = vcombine.low %v5032_v23, %v5039_v25  ;;  %v5071_v58 = vrot.slane %v5063_v11, %v5821_v9 }
 0x85e   : > { %v5012_v61 = vadd.f32 %v7285_v27, %v4940_v20  ;;  %v5013_v7 = vadd.f32 %v4984_v51, %v4941_v41 }
 0x85f   : > { %v5054_v32 = vrot.slane %v5047_v30, %v5821_v9 }
 0x860   : > { %v5064_v15 = vcombine.low %v5011_v53, %v5012_v61  ;;  %v5085_v31 = vrot.slane %v5013_v7, %v5821_v9 }
 0x861   : > { %v5062_v14 = vcombine.low %v5054_v32, %v5061_v17 }
 0x862   : > { %v5078_v29 = vrot.slane %v5064_v15, %v5821_v9  ;;  %v5100_v27 = vrot.slane %v5085_v31, %v5821_v9 }
 0x863   : > { %5105 = vst.msk [vmem:[%s336_s11] sm:$0x1f] %vm5104_vm14, %v5062_v14 }
 0x864   : > { %v5086_v13 = vcombine.low %v5071_v58, %v5078_v29 }
 0x866   : > { %v5093_v19 = vrot.slane %v5086_v13, %v5821_v9 }
 0x868   : > { %v5101_v51 = vcombine.low %v5093_v19, %v5100_v27 }
 0x86a   : > { %5106 = vst.msk [vmem:[%s336_s11 + $0x8] sm:$0x1f] %vm5104_vm14, %v5101_v51 }
 0x86b PF: > { %s15_s20 = sadd.s32 1, %s5734_s20   ;;  %s7501_s18 = smov %s5730_s19 }
 0x86c   : > { %p12_p5 = scmp.ge.s32.totalorder %s15_s20, 4   ;;  %s7502_s19 = smov %s7504_s21 }
 0x86e   :  { %14 = sbr.rel (!%p12_p5) target bundleno = 2 (0x2), region = 82 }

</bundles_post_ra>
